<compile_context>
chip_gen: v7x
topology: tpu7x:2x2x1
jax: 0.10.0
libtpu: 0.0.40
codegen_flags: <defaults>
</compile_context>

<pallas_src>
import numpy as np
import jax
import jax.numpy as jnp
from jax import lax
from jax.experimental import pallas as pl
from jax.experimental.pallas import tpu as pltpu


def _bilinear_matrix(n_in, n_out):
    """1-D bilinear interpolation matrix (align_corners=True): out = L @ in."""
    L = np.zeros((n_out, n_in), dtype=np.float32)
    if n_out == 1 or n_in == 1:
        L[:, 0] = 1.0
        return jnp.asarray(L)
    scale = (n_in - 1) / (n_out - 1)
    for o in range(n_out):
        src = o * scale
        i0 = min(int(np.floor(src)), n_in - 1)
        i1 = min(i0 + 1, n_in - 1)
        f = src - i0
        L[o, i0] += 1.0 - f
        L[o, i1] += f
    return jnp.asarray(L)


def _lin_taps(n_in, n_out):
    """Static (i0, i1, frac) 2-tap weights for 1-D bilinear, align_corners=True."""
    if n_out == 1 or n_in == 1:
        return [(0, 0, 0.0)] * n_out
    scale = (n_in - 1) / (n_out - 1)
    taps = []
    for o in range(n_out):
        src = o * scale
        i0 = min(int(np.floor(src)), n_in - 1)
        i1 = min(i0 + 1, n_in - 1)
        taps.append((i0, i1, float(src - i0)))
    return taps


def up_forward(x1_nchw, x2_nchw, params):
    """Pallas forward of `up` (x2 provided).  Inputs/outputs are NCHW."""
    N, C1, H1, W1 = x1_nchw.shape
    _, C2, H2, W2 = x2_nchw.shape
    assert (H2, W2) == (2 * H1, 2 * W1), "cat-before-pad requires matching sizes"
    Cin = C1 + C2
    Cout = params["w1"].shape[-1]
    Cpad = max(Cin, Cout)
    HW = H2 * W2

    # Layout plumbing (wrapper side): NHWC activations; x1 additionally
    # flattened to (N, H1, W1*C1) so the H-upsample is a single 2-D matmul.
    x1 = jnp.transpose(x1_nchw, (0, 2, 3, 1)).astype(jnp.float32)
    x1 = x1.reshape(N, H1, W1 * C1)
    x2 = jnp.transpose(x2_nchw, (0, 2, 3, 1)).astype(jnp.float32)

    LH = _bilinear_matrix(H1, H2)          # (H2, H1) - only O(H1*H2) memory
    wtaps = _lin_taps(W1, W2)              # static python taps for W direction

    # Fold eval-mode BatchNorm into the conv weights / biases (host side).
    eps = 1e-5
    s1 = params["bn1_gamma"] / jnp.sqrt(params["bn1_var"] + eps)
    s2 = params["bn2_gamma"] / jnp.sqrt(params["bn2_var"] + eps)
    w1f = (params["w1"] * s1).astype(jnp.float32)                  # (3,3,Cin,Cout)
    w2f = (params["w2"] * s2).astype(jnp.float32)                  # (3,3,Cout,Cout)
    b1f = ((params["b1"] - params["bn1_mean"]) * s1
           + params["bn1_beta"]).reshape(1, Cout).astype(jnp.float32)
    b2f = ((params["b2"] - params["bn2_mean"]) * s2
           + params["bn2_beta"]).reshape(1, Cout).astype(jnp.float32)

    def kernel(lh_ref, x1_ref, x2_ref, w1_ref, b1_ref, w2_ref, b2_ref,
               o_ref, pad):
        # --- zero only the 1-pixel border of the shared padded scratch ------
        # (interior is fully overwritten every grid step below)
        pad[0:1, :, :] = jnp.zeros((1, W2 + 2, Cpad), jnp.float32)
        pad[H2 + 1:H2 + 2, :, :] = jnp.zeros((1, W2 + 2, Cpad), jnp.float32)
        pad[:, 0:1, :] = jnp.zeros((H2 + 2, 1, Cpad), jnp.float32)
        pad[:, W2 + 1:W2 + 2, :] = jnp.zeros((H2 + 2, 1, Cpad), jnp.float32)

        # --- skip connection goes straight into channels [0:C2] (no concat) -
        pad[1:H2 + 1, 1:W2 + 1, 0:C2] = x2_ref[0]

        # --- separable bilinear 2x upsample of x1 (align_corners=True) ------
        # H direction: one small MXU matmul on the (H1, W1*C1) slab.
        th = jnp.dot(lh_ref[...], x1_ref[0],
                     preferred_element_type=jnp.float32)           # (H2, W1*C1)
        # W direction: static 2-tap lerp per output column, written into the
        # upsample channel range [C2:Cin] of the padded scratch interior.
        for w2, (i0, i1, f) in enumerate(wtaps):
            lo = th[:, i0 * C1:(i0 + 1) * C1]                      # (H2, C1)
            hi = th[:, i1 * C1:(i1 + 1) * C1]
            col = (1.0 - f) * lo + f * hi
            pad[1:H2 + 1, 1 + w2, C2:Cin] = col

        # --- conv1 3x3 (pad=1) + folded BN + ReLU: 9 shifted MXU matmuls ----
        acc = jnp.zeros((HW, Cout), jnp.float32) + b1_ref[...]
        for dy in range(3):
            for dx in range(3):
                xs = pad[dy:dy + H2, dx:dx + W2, 0:Cin].reshape(HW, Cin)
                acc = acc + jnp.dot(xs, w1_ref[dy, dx],
                                    preferred_element_type=jnp.float32)
        h = jnp.maximum(acc, 0.0)

        # --- conv2 3x3 (pad=1) + folded BN + ReLU (scratch buffer reused) ---
        pad[1:H2 + 1, 1:W2 + 1, 0:Cout] = h.reshape(H2, W2, Cout)
        acc2 = jnp.zeros((HW, Cout), jnp.float32) + b2_ref[...]
        for dy in range(3):
            for dx in range(3):
                xs = pad[dy:dy + H2, dx:dx + W2, 0:Cout].reshape(HW, Cout)
                acc2 = acc2 + jnp.dot(xs, w2_ref[dy, dx],
                                      preferred_element_type=jnp.float32)
        o_ref[0] = jnp.maximum(acc2, 0.0).reshape(H2, W2, Cout)

    flops_per_img = (2 * H2 * H1 * W1 * C1        # H-upsample matmul
                     + 3 * H2 * W2 * C1           # W-direction lerps (VPU)
                     + 2 * 9 * HW * Cin * Cout    # conv1
                     + 2 * 9 * HW * Cout * Cout)  # conv2
    bytes_accessed = 4 * (N * (H1 * W1 * C1 + H2 * W2 * C2 + HW * Cout)
                          + 9 * Cin * Cout + 9 * Cout * Cout
                          + H2 * H1 + 2 * Cout)

    out = pl.pallas_call(
        kernel,
        out_shape=jax.ShapeDtypeStruct((N, H2, W2, Cout), jnp.float32),
        grid_spec=pltpu.PrefetchScalarGridSpec(
            num_scalar_prefetch=0,
            grid=(N,),
            in_specs=[
                pl.BlockSpec((H2, H1), lambda n: (0, 0)),
                pl.BlockSpec((1, H1, W1 * C1), lambda n: (n, 0, 0)),
                pl.BlockSpec((1, H2, W2, C2), lambda n: (n, 0, 0, 0)),
                pl.BlockSpec((3, 3, Cin, Cout), lambda n: (0, 0, 0, 0)),
                pl.BlockSpec((1, Cout), lambda n: (0, 0)),
                pl.BlockSpec((3, 3, Cout, Cout), lambda n: (0, 0, 0, 0)),
                pl.BlockSpec((1, Cout), lambda n: (0, 0)),
            ],
            out_specs=pl.BlockSpec((1, H2, W2, Cout), lambda n: (n, 0, 0, 0)),
            scratch_shapes=[
                pltpu.VMEM((H2 + 2, W2 + 2, Cpad), jnp.float32),
            ],
        ),
        compiler_params=pltpu.CompilerParams(
            dimension_semantics=("parallel",)),
        cost_estimate=pl.CostEstimate(
            flops=int(N * flops_per_img),
            transcendentals=0,
            bytes_accessed=int(bytes_accessed)),
    )(LH, x1, x2, w1f, b1f, w2f, b2f)

    return jnp.transpose(out, (0, 3, 1, 2))                        # back to NCHW


def up_reference(x1_nchw, x2_nchw, params):
    """Pure-JAX reference (independent of the kernel code path)."""
    x1 = jnp.transpose(x1_nchw, (0, 2, 3, 1)).astype(jnp.float32)
    x2 = jnp.transpose(x2_nchw, (0, 2, 3, 1)).astype(jnp.float32)
    H1, W1 = x1.shape[1:3]
    H2, W2 = x2.shape[1:3]
    LH = _bilinear_matrix(H1, H2)
    LW = _bilinear_matrix(W1, W2)
    up = jnp.einsum('oh,pw,nhwc->nopc', LH, LW, x1)
    x = jnp.concatenate([x2, up], axis=-1)
    eps = 1e-5

    def conv_bn_relu(x, w, b, g, beta, mean, var):
        y = lax.conv_general_dilated(
            x, w, (1, 1), 'SAME',
            dimension_numbers=('NHWC', 'HWIO', 'NHWC')) + b
        y = (y - mean) / jnp.sqrt(var + eps) * g + beta
        return jnp.maximum(y, 0.0)

    y = conv_bn_relu(x, params["w1"], params["b1"], params["bn1_gamma"],
                     params["bn1_beta"], params["bn1_mean"], params["bn1_var"])
    y = conv_bn_relu(y, params["w2"], params["b2"], params["bn2_gamma"],
                     params["bn2_beta"], params["bn2_mean"], params["bn2_var"])
    return jnp.transpose(y, (0, 3, 1, 2))


if __name__ == "__main__":
    key = jax.random.PRNGKey(0)
    N, C1, H1, W1 = 2, 2, 8, 8            # x1 (to be upsampled 2x)
    C2, H2, W2 = 2, 16, 16                # x2 (skip connection)
    in_ch, out_ch = C1 + C2, 4            # up(in_ch=4, out_ch=4, bilinear=True)

    ks = jax.random.split(key, 6)
    x1 = jax.random.normal(ks[0], (N, C1, H1, W1), jnp.float32)
    x2 = jax.random.normal(ks[1], (N, C2, H2, W2), jnp.float32)

    params = {
        # conv weights in HWIO; deterministic synthetic init
        "w1": jax.random.normal(ks[2], (3, 3, in_ch, out_ch), jnp.float32) * 0.2,
        "b1": jax.random.normal(ks[3], (out_ch,), jnp.float32) * 0.1,
        "w2": jax.random.normal(ks[4], (3, 3, out_ch, out_ch), jnp.float32) * 0.2,
        "b2": jax.random.normal(ks[5], (out_ch,), jnp.float32) * 0.1,
        # BatchNorm2d __init__ defaults (eval mode running stats)
        "bn1_gamma": jnp.ones((out_ch,), jnp.float32),
        "bn1_beta": jnp.zeros((out_ch,), jnp.float32),
        "bn1_mean": jnp.zeros((out_ch,), jnp.float32),
        "bn1_var": jnp.ones((out_ch,), jnp.float32),
        "bn2_gamma": jnp.ones((out_ch,), jnp.float32),
        "bn2_beta": jnp.zeros((out_ch,), jnp.float32),
        "bn2_mean": jnp.zeros((out_ch,), jnp.float32),
        "bn2_var": jnp.ones((out_ch,), jnp.float32),
    }

    y = up_forward(x1, x2, params)
    jax.block_until_ready(y)

    y_ref = up_reference(x1, x2, params)
    err = float(jnp.max(jnp.abs(y - y_ref)))
    assert jnp.allclose(y, y_ref, atol=5e-4, rtol=5e-4), f"max abs err = {err}"

    print("KERNEL_OK")
</pallas_src>

<mosaic_0001>
module attributes {stable_mosaic.version = 11 : i64} {
  func.func @kernel(%arg0: i32, %arg1: memref<16x8xf32, #tpu.memory_space<vmem>>, %arg2: memref<1x8x16xf32, #tpu.memory_space<vmem>>, %arg3: memref<1x16x16x2xf32, #tpu.memory_space<vmem>>, %arg4: memref<3x3x4x4xf32, #tpu.memory_space<vmem>>, %arg5: memref<1x4xf32, #tpu.memory_space<vmem>>, %arg6: memref<3x3x4x4xf32, #tpu.memory_space<vmem>>, %arg7: memref<1x4xf32, #tpu.memory_space<vmem>>, %arg8: memref<1x16x16x4xf32, #tpu.memory_space<vmem>>, %arg9: memref<18x18x4xf32, #tpu.memory_space<vmem>>) attributes {dimension_semantics = [#tpu.dimension_semantics<parallel>], iteration_bounds = array<i64: 2>, scalar_prefetch = 0 : i64, scratch_operands = 1 : i64, tpu.core_type = #tpu.core_type<tc>, window_params = [{pipeline_mode = #tpu.pipeline_mode<synchronous>, transform_indices = @transform_0, window_bounds = array<i64: 16, 8>}, {transform_indices = @transform_1, window_bounds = array<i64: 1, 8, 16>}, {transform_indices = @transform_2, window_bounds = array<i64: 1, 16, 16, 2>}, {pipeline_mode = #tpu.pipeline_mode<synchronous>, transform_indices = @transform_3, window_bounds = array<i64: 3, 3, 4, 4>}, {pipeline_mode = #tpu.pipeline_mode<synchronous>, transform_indices = @transform_4, window_bounds = array<i64: 1, 4>}, {pipeline_mode = #tpu.pipeline_mode<synchronous>, transform_indices = @transform_5, window_bounds = array<i64: 3, 3, 4, 4>}, {pipeline_mode = #tpu.pipeline_mode<synchronous>, transform_indices = @transform_6, window_bounds = array<i64: 1, 4>}, {transform_indices = @transform_7, window_bounds = array<i64: 1, 16, 16, 4>}]} {
    %cst = arith.constant 0.000000e+00 : f32
    %0 = vector.broadcast %cst : f32 to vector<1x18x4xf32>
    %c0 = arith.constant 0 : index
    %c0_0 = arith.constant 0 : index
    %c0_1 = arith.constant 0 : index
    %1 = vector.load %arg9[%c0, %c0_0, %c0_1] : memref<18x18x4xf32, #tpu.memory_space<vmem>>, vector<1x18x4xf32>
    tpu.vector_store %arg9[%c0, %c0_0, %c0_1], %0 {strides = array<i32>} : memref<18x18x4xf32, #tpu.memory_space<vmem>>, vector<1x18x4xf32>,
    %cst_2 = arith.constant 0.000000e+00 : f32
    %2 = vector.broadcast %cst_2 : f32 to vector<1x18x4xf32>
    %c17 = arith.constant 17 : index
    %c0_3 = arith.constant 0 : index
    %c0_4 = arith.constant 0 : index
    %3 = vector.load %arg9[%c17, %c0_3, %c0_4] : memref<18x18x4xf32, #tpu.memory_space<vmem>>, vector<1x18x4xf32>
    tpu.vector_store %arg9[%c17, %c0_3, %c0_4], %2 {strides = array<i32>} : memref<18x18x4xf32, #tpu.memory_space<vmem>>, vector<1x18x4xf32>,
    %cst_5 = arith.constant 0.000000e+00 : f32
    %4 = vector.broadcast %cst_5 : f32 to vector<18x1x4xf32>
    %c0_6 = arith.constant 0 : index
    %c0_7 = arith.constant 0 : index
    %c0_8 = arith.constant 0 : index
    %5 = vector.load %arg9[%c0_6, %c0_7, %c0_8] : memref<18x18x4xf32, #tpu.memory_space<vmem>>, vector<18x1x4xf32>
    tpu.vector_store %arg9[%c0_6, %c0_7, %c0_8], %4 {strides = array<i32>} : memref<18x18x4xf32, #tpu.memory_space<vmem>>, vector<18x1x4xf32>,
    %cst_9 = arith.constant 0.000000e+00 : f32
    %6 = vector.broadcast %cst_9 : f32 to vector<18x1x4xf32>
    %c0_10 = arith.constant 0 : index
    %c17_11 = arith.constant 17 : index
    %c0_12 = arith.constant 0 : index
    %7 = vector.load %arg9[%c0_10, %c17_11, %c0_12] : memref<18x18x4xf32, #tpu.memory_space<vmem>>, vector<18x1x4xf32>
    tpu.vector_store %arg9[%c0_10, %c17_11, %c0_12], %6 {strides = array<i32>} : memref<18x18x4xf32, #tpu.memory_space<vmem>>, vector<18x1x4xf32>,
    %c0_13 = arith.constant 0 : index
    %c0_14 = arith.constant 0 : index
    %c0_15 = arith.constant 0 : index
    %c0_16 = arith.constant 0 : index
    %8 = vector.load %arg3[%c0_13, %c0_14, %c0_15, %c0_16] : memref<1x16x16x2xf32, #tpu.memory_space<vmem>>, vector<1x16x16x2xf32>
    %9 = vector.shape_cast %8 : vector<1x16x16x2xf32> to vector<16x16x2xf32>
    %c1 = arith.constant 1 : index
    %c1_17 = arith.constant 1 : index
    %c0_18 = arith.constant 0 : index
    %10 = vector.load %arg9[%c1, %c1_17, %c0_18] : memref<18x18x4xf32, #tpu.memory_space<vmem>>, vector<16x16x2xf32>
    tpu.vector_store %arg9[%c1, %c1_17, %c0_18], %9 {strides = array<i32>} : memref<18x18x4xf32, #tpu.memory_space<vmem>>, vector<16x16x2xf32>,
    %c0_19 = arith.constant 0 : index
    %c0_20 = arith.constant 0 : index
    %11 = vector.load %arg1[%c0_19, %c0_20] : memref<16x8xf32, #tpu.memory_space<vmem>>, vector<16x8xf32>
    %c0_21 = arith.constant 0 : index
    %c0_22 = arith.constant 0 : index
    %c0_23 = arith.constant 0 : index
    %12 = vector.load %arg2[%c0_21, %c0_22, %c0_23] : memref<1x8x16xf32, #tpu.memory_space<vmem>>, vector<1x8x16xf32>
    %13 = vector.shape_cast %12 : vector<1x8x16xf32> to vector<8x16xf32>
    %cst_24 = arith.constant dense<0.000000e+00> : vector<16x16xf32>
    %14 = tpu.matmul %11, %13, %cst_24 {dimension_numbers = #tpu.dot_dimension_numbers<[1], [0], [0], [1], [0, 0, 1, 1], [], []>} : vector<16x8xf32>, vector<8x16xf32>, vector<16x16xf32> -> vector<16x16xf32>
    %15 = vector.extract_strided_slice %14 {offsets = [0, 0], sizes = [16, 2], strides = [1, 1]} : vector<16x16xf32> to vector<16x2xf32>
    %16 = vector.extract_strided_slice %14 {offsets = [0, 2], sizes = [16, 2], strides = [1, 1]} : vector<16x16xf32> to vector<16x2xf32>
    %cst_25 = arith.constant 1.000000e+00 : f32
    %17 = vector.broadcast %cst_25 : f32 to vector<16x2xf32>
    %18 = arith.mulf %17, %15 : vector<16x2xf32>
    %cst_26 = arith.constant 0.000000e+00 : f32
    %19 = vector.broadcast %cst_26 : f32 to vector<16x2xf32>
    %20 = arith.mulf %19, %16 : vector<16x2xf32>
    %21 = arith.addf %18, %20 : vector<16x2xf32>
    %c1_27 = arith.constant 1 : index
    %c1_28 = arith.constant 1 : index
    %c2 = arith.constant 2 : index
    %22 = vector.load %arg9[%c1_27, %c1_28, %c2] : memref<18x18x4xf32, #tpu.memory_space<vmem>>, vector<16x1x2xf32>
    %23 = vector.shape_cast %22 : vector<16x1x2xf32> to vector<16x2xf32>
    %24 = vector.shape_cast %21 : vector<16x2xf32> to vector<16x1x2xf32>
    tpu.vector_store %arg9[%c1_27, %c1_28, %c2], %24 {strides = array<i32>} : memref<18x18x4xf32, #tpu.memory_space<vmem>>, vector<16x1x2xf32>,
    %25 = vector.extract_strided_slice %14 {offsets = [0, 0], sizes = [16, 2], strides = [1, 1]} : vector<16x16xf32> to vector<16x2xf32>
    %26 = vector.extract_strided_slice %14 {offsets = [0, 2], sizes = [16, 2], strides = [1, 1]} : vector<16x16xf32> to vector<16x2xf32>
    %cst_29 = arith.constant 0.533333361 : f32
    %27 = vector.broadcast %cst_29 : f32 to vector<16x2xf32>
    %28 = arith.mulf %27, %25 : vector<16x2xf32>
    %cst_30 = arith.constant 0.466666669 : f32
    %29 = vector.broadcast %cst_30 : f32 to vector<16x2xf32>
    %30 = arith.mulf %29, %26 : vector<16x2xf32>
    %31 = arith.addf %28, %30 : vector<16x2xf32>
    %c1_31 = arith.constant 1 : index
    %c2_32 = arith.constant 2 : index
    %c2_33 = arith.constant 2 : index
    %32 = vector.load %arg9[%c1_31, %c2_32, %c2_33] : memref<18x18x4xf32, #tpu.memory_space<vmem>>, vector<16x1x2xf32>
    %33 = vector.shape_cast %32 : vector<16x1x2xf32> to vector<16x2xf32>
    %34 = vector.shape_cast %31 : vector<16x2xf32> to vector<16x1x2xf32>
    tpu.vector_store %arg9[%c1_31, %c2_32, %c2_33], %34 {strides = array<i32>} : memref<18x18x4xf32, #tpu.memory_space<vmem>>, vector<16x1x2xf32>,
    %35 = vector.extract_strided_slice %14 {offsets = [0, 0], sizes = [16, 2], strides = [1, 1]} : vector<16x16xf32> to vector<16x2xf32>
    %36 = vector.extract_strided_slice %14 {offsets = [0, 2], sizes = [16, 2], strides = [1, 1]} : vector<16x16xf32> to vector<16x2xf32>
    %cst_34 = arith.constant 0.0666666701 : f32
    %37 = vector.broadcast %cst_34 : f32 to vector<16x2xf32>
    %38 = arith.mulf %37, %35 : vector<16x2xf32>
    %cst_35 = arith.constant 0.933333337 : f32
    %39 = vector.broadcast %cst_35 : f32 to vector<16x2xf32>
    %40 = arith.mulf %39, %36 : vector<16x2xf32>
    %41 = arith.addf %38, %40 : vector<16x2xf32>
    %c1_36 = arith.constant 1 : index
    %c3 = arith.constant 3 : index
    %c2_37 = arith.constant 2 : index
    %42 = vector.load %arg9[%c1_36, %c3, %c2_37] : memref<18x18x4xf32, #tpu.memory_space<vmem>>, vector<16x1x2xf32>
    %43 = vector.shape_cast %42 : vector<16x1x2xf32> to vector<16x2xf32>
    %44 = vector.shape_cast %41 : vector<16x2xf32> to vector<16x1x2xf32>
    tpu.vector_store %arg9[%c1_36, %c3, %c2_37], %44 {strides = array<i32>} : memref<18x18x4xf32, #tpu.memory_space<vmem>>, vector<16x1x2xf32>,
    %45 = vector.extract_strided_slice %14 {offsets = [0, 2], sizes = [16, 2], strides = [1, 1]} : vector<16x16xf32> to vector<16x2xf32>
    %46 = vector.extract_strided_slice %14 {offsets = [0, 4], sizes = [16, 2], strides = [1, 1]} : vector<16x16xf32> to vector<16x2xf32>
    %cst_38 = arith.constant 6.000000e-01 : f32
    %47 = vector.broadcast %cst_38 : f32 to vector<16x2xf32>
    %48 = arith.mulf %47, %45 : vector<16x2xf32>
    %cst_39 = arith.constant 4.000000e-01 : f32
    %49 = vector.broadcast %cst_39 : f32 to vector<16x2xf32>
    %50 = arith.mulf %49, %46 : vector<16x2xf32>
    %51 = arith.addf %48, %50 : vector<16x2xf32>
    %c1_40 = arith.constant 1 : index
    %c4 = arith.constant 4 : index
    %c2_41 = arith.constant 2 : index
    %52 = vector.load %arg9[%c1_40, %c4, %c2_41] : memref<18x18x4xf32, #tpu.memory_space<vmem>>, vector<16x1x2xf32>
    %53 = vector.shape_cast %52 : vector<16x1x2xf32> to vector<16x2xf32>
    %54 = vector.shape_cast %51 : vector<16x2xf32> to vector<16x1x2xf32>
    tpu.vector_store %arg9[%c1_40, %c4, %c2_41], %54 {strides = array<i32>} : memref<18x18x4xf32, #tpu.memory_space<vmem>>, vector<16x1x2xf32>,
    %55 = vector.extract_strided_slice %14 {offsets = [0, 2], sizes = [16, 2], strides = [1, 1]} : vector<16x16xf32> to vector<16x2xf32>
    %56 = vector.extract_strided_slice %14 {offsets = [0, 4], sizes = [16, 2], strides = [1, 1]} : vector<16x16xf32> to vector<16x2xf32>
    %cst_42 = arith.constant 0.13333334 : f32
    %57 = vector.broadcast %cst_42 : f32 to vector<16x2xf32>
    %58 = arith.mulf %57, %55 : vector<16x2xf32>
    %cst_43 = arith.constant 0.866666674 : f32
    %59 = vector.broadcast %cst_43 : f32 to vector<16x2xf32>
    %60 = arith.mulf %59, %56 : vector<16x2xf32>
    %61 = arith.addf %58, %60 : vector<16x2xf32>
    %c1_44 = arith.constant 1 : index
    %c5 = arith.constant 5 : index
    %c2_45 = arith.constant 2 : index
    %62 = vector.load %arg9[%c1_44, %c5, %c2_45] : memref<18x18x4xf32, #tpu.memory_space<vmem>>, vector<16x1x2xf32>
    %63 = vector.shape_cast %62 : vector<16x1x2xf32> to vector<16x2xf32>
    %64 = vector.shape_cast %61 : vector<16x2xf32> to vector<16x1x2xf32>
    tpu.vector_store %arg9[%c1_44, %c5, %c2_45], %64 {strides = array<i32>} : memref<18x18x4xf32, #tpu.memory_space<vmem>>, vector<16x1x2xf32>,
    %65 = vector.extract_strided_slice %14 {offsets = [0, 4], sizes = [16, 2], strides = [1, 1]} : vector<16x16xf32> to vector<16x2xf32>
    %66 = vector.extract_strided_slice %14 {offsets = [0, 6], sizes = [16, 2], strides = [1, 1]} : vector<16x16xf32> to vector<16x2xf32>
    %cst_46 = arith.constant 0.666666686 : f32
    %67 = vector.broadcast %cst_46 : f32 to vector<16x2xf32>
    %68 = arith.mulf %67, %65 : vector<16x2xf32>
    %cst_47 = arith.constant 0.333333343 : f32
    %69 = vector.broadcast %cst_47 : f32 to vector<16x2xf32>
    %70 = arith.mulf %69, %66 : vector<16x2xf32>
    %71 = arith.addf %68, %70 : vector<16x2xf32>
    %c1_48 = arith.constant 1 : index
    %c6 = arith.constant 6 : index
    %c2_49 = arith.constant 2 : index
    %72 = vector.load %arg9[%c1_48, %c6, %c2_49] : memref<18x18x4xf32, #tpu.memory_space<vmem>>, vector<16x1x2xf32>
    %73 = vector.shape_cast %72 : vector<16x1x2xf32> to vector<16x2xf32>
    %74 = vector.shape_cast %71 : vector<16x2xf32> to vector<16x1x2xf32>
    tpu.vector_store %arg9[%c1_48, %c6, %c2_49], %74 {strides = array<i32>} : memref<18x18x4xf32, #tpu.memory_space<vmem>>, vector<16x1x2xf32>,
    %75 = vector.extract_strided_slice %14 {offsets = [0, 4], sizes = [16, 2], strides = [1, 1]} : vector<16x16xf32> to vector<16x2xf32>
    %76 = vector.extract_strided_slice %14 {offsets = [0, 6], sizes = [16, 2], strides = [1, 1]} : vector<16x16xf32> to vector<16x2xf32>
    %cst_50 = arith.constant 2.000000e-01 : f32
    %77 = vector.broadcast %cst_50 : f32 to vector<16x2xf32>
    %78 = arith.mulf %77, %75 : vector<16x2xf32>
    %cst_51 = arith.constant 8.000000e-01 : f32
    %79 = vector.broadcast %cst_51 : f32 to vector<16x2xf32>
    %80 = arith.mulf %79, %76 : vector<16x2xf32>
    %81 = arith.addf %78, %80 : vector<16x2xf32>
    %c1_52 = arith.constant 1 : index
    %c7 = arith.constant 7 : index
    %c2_53 = arith.constant 2 : index
    %82 = vector.load %arg9[%c1_52, %c7, %c2_53] : memref<18x18x4xf32, #tpu.memory_space<vmem>>, vector<16x1x2xf32>
    %83 = vector.shape_cast %82 : vector<16x1x2xf32> to vector<16x2xf32>
    %84 = vector.shape_cast %81 : vector<16x2xf32> to vector<16x1x2xf32>
    tpu.vector_store %arg9[%c1_52, %c7, %c2_53], %84 {strides = array<i32>} : memref<18x18x4xf32, #tpu.memory_space<vmem>>, vector<16x1x2xf32>,
    %85 = vector.extract_strided_slice %14 {offsets = [0, 6], sizes = [16, 2], strides = [1, 1]} : vector<16x16xf32> to vector<16x2xf32>
    %86 = vector.extract_strided_slice %14 {offsets = [0, 8], sizes = [16, 2], strides = [1, 1]} : vector<16x16xf32> to vector<16x2xf32>
    %cst_54 = arith.constant 0.733333349 : f32
    %87 = vector.broadcast %cst_54 : f32 to vector<16x2xf32>
    %88 = arith.mulf %87, %85 : vector<16x2xf32>
    %cst_55 = arith.constant 0.266666681 : f32
    %89 = vector.broadcast %cst_55 : f32 to vector<16x2xf32>
    %90 = arith.mulf %89, %86 : vector<16x2xf32>
    %91 = arith.addf %88, %90 : vector<16x2xf32>
    %c1_56 = arith.constant 1 : index
    %c8 = arith.constant 8 : index
    %c2_57 = arith.constant 2 : index
    %92 = vector.load %arg9[%c1_56, %c8, %c2_57] : memref<18x18x4xf32, #tpu.memory_space<vmem>>, vector<16x1x2xf32>
    %93 = vector.shape_cast %92 : vector<16x1x2xf32> to vector<16x2xf32>
    %94 = vector.shape_cast %91 : vector<16x2xf32> to vector<16x1x2xf32>
    tpu.vector_store %arg9[%c1_56, %c8, %c2_57], %94 {strides = array<i32>} : memref<18x18x4xf32, #tpu.memory_space<vmem>>, vector<16x1x2xf32>,
    %95 = vector.extract_strided_slice %14 {offsets = [0, 6], sizes = [16, 2], strides = [1, 1]} : vector<16x16xf32> to vector<16x2xf32>
    %96 = vector.extract_strided_slice %14 {offsets = [0, 8], sizes = [16, 2], strides = [1, 1]} : vector<16x16xf32> to vector<16x2xf32>
    %cst_58 = arith.constant 0.266666681 : f32
    %97 = vector.broadcast %cst_58 : f32 to vector<16x2xf32>
    %98 = arith.mulf %97, %95 : vector<16x2xf32>
    %cst_59 = arith.constant 0.733333349 : f32
    %99 = vector.broadcast %cst_59 : f32 to vector<16x2xf32>
    %100 = arith.mulf %99, %96 : vector<16x2xf32>
    %101 = arith.addf %98, %100 : vector<16x2xf32>
    %c1_60 = arith.constant 1 : index
    %c9 = arith.constant 9 : index
    %c2_61 = arith.constant 2 : index
    %102 = vector.load %arg9[%c1_60, %c9, %c2_61] : memref<18x18x4xf32, #tpu.memory_space<vmem>>, vector<16x1x2xf32>
    %103 = vector.shape_cast %102 : vector<16x1x2xf32> to vector<16x2xf32>
    %104 = vector.shape_cast %101 : vector<16x2xf32> to vector<16x1x2xf32>
    tpu.vector_store %arg9[%c1_60, %c9, %c2_61], %104 {strides = array<i32>} : memref<18x18x4xf32, #tpu.memory_space<vmem>>, vector<16x1x2xf32>,
    %105 = vector.extract_strided_slice %14 {offsets = [0, 8], sizes = [16, 2], strides = [1, 1]} : vector<16x16xf32> to vector<16x2xf32>
    %106 = vector.extract_strided_slice %14 {offsets = [0, 10], sizes = [16, 2], strides = [1, 1]} : vector<16x16xf32> to vector<16x2xf32>
    %cst_62 = arith.constant 8.000000e-01 : f32
    %107 = vector.broadcast %cst_62 : f32 to vector<16x2xf32>
    %108 = arith.mulf %107, %105 : vector<16x2xf32>
    %cst_63 = arith.constant 2.000000e-01 : f32
    %109 = vector.broadcast %cst_63 : f32 to vector<16x2xf32>
    %110 = arith.mulf %109, %106 : vector<16x2xf32>
    %111 = arith.addf %108, %110 : vector<16x2xf32>
    %c1_64 = arith.constant 1 : index
    %c10 = arith.constant 10 : index
    %c2_65 = arith.constant 2 : index
    %112 = vector.load %arg9[%c1_64, %c10, %c2_65] : memref<18x18x4xf32, #tpu.memory_space<vmem>>, vector<16x1x2xf32>
    %113 = vector.shape_cast %112 : vector<16x1x2xf32> to vector<16x2xf32>
    %114 = vector.shape_cast %111 : vector<16x2xf32> to vector<16x1x2xf32>
    tpu.vector_store %arg9[%c1_64, %c10, %c2_65], %114 {strides = array<i32>} : memref<18x18x4xf32, #tpu.memory_space<vmem>>, vector<16x1x2xf32>,
    %115 = vector.extract_strided_slice %14 {offsets = [0, 8], sizes = [16, 2], strides = [1, 1]} : vector<16x16xf32> to vector<16x2xf32>
    %116 = vector.extract_strided_slice %14 {offsets = [0, 10], sizes = [16, 2], strides = [1, 1]} : vector<16x16xf32> to vector<16x2xf32>
    %cst_66 = arith.constant 0.333333343 : f32
    %117 = vector.broadcast %cst_66 : f32 to vector<16x2xf32>
    %118 = arith.mulf %117, %115 : vector<16x2xf32>
    %cst_67 = arith.constant 0.666666686 : f32
    %119 = vector.broadcast %cst_67 : f32 to vector<16x2xf32>
    %120 = arith.mulf %119, %116 : vector<16x2xf32>
    %121 = arith.addf %118, %120 : vector<16x2xf32>
    %c1_68 = arith.constant 1 : index
    %c11 = arith.constant 11 : index
    %c2_69 = arith.constant 2 : index
    %122 = vector.load %arg9[%c1_68, %c11, %c2_69] : memref<18x18x4xf32, #tpu.memory_space<vmem>>, vector<16x1x2xf32>
    %123 = vector.shape_cast %122 : vector<16x1x2xf32> to vector<16x2xf32>
    %124 = vector.shape_cast %121 : vector<16x2xf32> to vector<16x1x2xf32>
    tpu.vector_store %arg9[%c1_68, %c11, %c2_69], %124 {strides = array<i32>} : memref<18x18x4xf32, #tpu.memory_space<vmem>>, vector<16x1x2xf32>,
    %125 = vector.extract_strided_slice %14 {offsets = [0, 10], sizes = [16, 2], strides = [1, 1]} : vector<16x16xf32> to vector<16x2xf32>
    %126 = vector.extract_strided_slice %14 {offsets = [0, 12], sizes = [16, 2], strides = [1, 1]} : vector<16x16xf32> to vector<16x2xf32>
    %cst_70 = arith.constant 0.866666674 : f32
    %127 = vector.broadcast %cst_70 : f32 to vector<16x2xf32>
    %128 = arith.mulf %127, %125 : vector<16x2xf32>
    %cst_71 = arith.constant 0.13333334 : f32
    %129 = vector.broadcast %cst_71 : f32 to vector<16x2xf32>
    %130 = arith.mulf %129, %126 : vector<16x2xf32>
    %131 = arith.addf %128, %130 : vector<16x2xf32>
    %c1_72 = arith.constant 1 : index
    %c12 = arith.constant 12 : index
    %c2_73 = arith.constant 2 : index
    %132 = vector.load %arg9[%c1_72, %c12, %c2_73] : memref<18x18x4xf32, #tpu.memory_space<vmem>>, vector<16x1x2xf32>
    %133 = vector.shape_cast %132 : vector<16x1x2xf32> to vector<16x2xf32>
    %134 = vector.shape_cast %131 : vector<16x2xf32> to vector<16x1x2xf32>
    tpu.vector_store %arg9[%c1_72, %c12, %c2_73], %134 {strides = array<i32>} : memref<18x18x4xf32, #tpu.memory_space<vmem>>, vector<16x1x2xf32>,
    %135 = vector.extract_strided_slice %14 {offsets = [0, 10], sizes = [16, 2], strides = [1, 1]} : vector<16x16xf32> to vector<16x2xf32>
    %136 = vector.extract_strided_slice %14 {offsets = [0, 12], sizes = [16, 2], strides = [1, 1]} : vector<16x16xf32> to vector<16x2xf32>
    %cst_74 = arith.constant 4.000000e-01 : f32
    %137 = vector.broadcast %cst_74 : f32 to vector<16x2xf32>
    %138 = arith.mulf %137, %135 : vector<16x2xf32>
    %cst_75 = arith.constant 6.000000e-01 : f32
    %139 = vector.broadcast %cst_75 : f32 to vector<16x2xf32>
    %140 = arith.mulf %139, %136 : vector<16x2xf32>
    %141 = arith.addf %138, %140 : vector<16x2xf32>
    %c1_76 = arith.constant 1 : index
    %c13 = arith.constant 13 : index
    %c2_77 = arith.constant 2 : index
    %142 = vector.load %arg9[%c1_76, %c13, %c2_77] : memref<18x18x4xf32, #tpu.memory_space<vmem>>, vector<16x1x2xf32>
    %143 = vector.shape_cast %142 : vector<16x1x2xf32> to vector<16x2xf32>
    %144 = vector.shape_cast %141 : vector<16x2xf32> to vector<16x1x2xf32>
    tpu.vector_store %arg9[%c1_76, %c13, %c2_77], %144 {strides = array<i32>} : memref<18x18x4xf32, #tpu.memory_space<vmem>>, vector<16x1x2xf32>,
    %145 = vector.extract_strided_slice %14 {offsets = [0, 12], sizes = [16, 2], strides = [1, 1]} : vector<16x16xf32> to vector<16x2xf32>
    %146 = vector.extract_strided_slice %14 {offsets = [0, 14], sizes = [16, 2], strides = [1, 1]} : vector<16x16xf32> to vector<16x2xf32>
    %cst_78 = arith.constant 0.933333337 : f32
    %147 = vector.broadcast %cst_78 : f32 to vector<16x2xf32>
    %148 = arith.mulf %147, %145 : vector<16x2xf32>
    %cst_79 = arith.constant 0.0666666701 : f32
    %149 = vector.broadcast %cst_79 : f32 to vector<16x2xf32>
    %150 = arith.mulf %149, %146 : vector<16x2xf32>
    %151 = arith.addf %148, %150 : vector<16x2xf32>
    %c1_80 = arith.constant 1 : index
    %c14 = arith.constant 14 : index
    %c2_81 = arith.constant 2 : index
    %152 = vector.load %arg9[%c1_80, %c14, %c2_81] : memref<18x18x4xf32, #tpu.memory_space<vmem>>, vector<16x1x2xf32>
    %153 = vector.shape_cast %152 : vector<16x1x2xf32> to vector<16x2xf32>
    %154 = vector.shape_cast %151 : vector<16x2xf32> to vector<16x1x2xf32>
    tpu.vector_store %arg9[%c1_80, %c14, %c2_81], %154 {strides = array<i32>} : memref<18x18x4xf32, #tpu.memory_space<vmem>>, vector<16x1x2xf32>,
    %155 = vector.extract_strided_slice %14 {offsets = [0, 12], sizes = [16, 2], strides = [1, 1]} : vector<16x16xf32> to vector<16x2xf32>
    %156 = vector.extract_strided_slice %14 {offsets = [0, 14], sizes = [16, 2], strides = [1, 1]} : vector<16x16xf32> to vector<16x2xf32>
    %cst_82 = arith.constant 0.466666669 : f32
    %157 = vector.broadcast %cst_82 : f32 to vector<16x2xf32>
    %158 = arith.mulf %157, %155 : vector<16x2xf32>
    %cst_83 = arith.constant 0.533333361 : f32
    %159 = vector.broadcast %cst_83 : f32 to vector<16x2xf32>
    %160 = arith.mulf %159, %156 : vector<16x2xf32>
    %161 = arith.addf %158, %160 : vector<16x2xf32>
    %c1_84 = arith.constant 1 : index
    %c15 = arith.constant 15 : index
    %c2_85 = arith.constant 2 : index
    %162 = vector.load %arg9[%c1_84, %c15, %c2_85] : memref<18x18x4xf32, #tpu.memory_space<vmem>>, vector<16x1x2xf32>
    %163 = vector.shape_cast %162 : vector<16x1x2xf32> to vector<16x2xf32>
    %164 = vector.shape_cast %161 : vector<16x2xf32> to vector<16x1x2xf32>
    tpu.vector_store %arg9[%c1_84, %c15, %c2_85], %164 {strides = array<i32>} : memref<18x18x4xf32, #tpu.memory_space<vmem>>, vector<16x1x2xf32>,
    %165 = vector.extract_strided_slice %14 {offsets = [0, 14], sizes = [16, 2], strides = [1, 1]} : vector<16x16xf32> to vector<16x2xf32>
    %166 = vector.extract_strided_slice %14 {offsets = [0, 14], sizes = [16, 2], strides = [1, 1]} : vector<16x16xf32> to vector<16x2xf32>
    %cst_86 = arith.constant 1.000000e+00 : f32
    %167 = vector.broadcast %cst_86 : f32 to vector<16x2xf32>
    %168 = arith.mulf %167, %165 : vector<16x2xf32>
    %cst_87 = arith.constant 0.000000e+00 : f32
    %169 = vector.broadcast %cst_87 : f32 to vector<16x2xf32>
    %170 = arith.mulf %169, %166 : vector<16x2xf32>
    %171 = arith.addf %168, %170 : vector<16x2xf32>
    %c1_88 = arith.constant 1 : index
    %c16 = arith.constant 16 : index
    %c2_89 = arith.constant 2 : index
    %172 = vector.load %arg9[%c1_88, %c16, %c2_89] : memref<18x18x4xf32, #tpu.memory_space<vmem>>, vector<16x1x2xf32>
    %173 = vector.shape_cast %172 : vector<16x1x2xf32> to vector<16x2xf32>
    %174 = vector.shape_cast %171 : vector<16x2xf32> to vector<16x1x2xf32>
    tpu.vector_store %arg9[%c1_88, %c16, %c2_89], %174 {strides = array<i32>} : memref<18x18x4xf32, #tpu.memory_space<vmem>>, vector<16x1x2xf32>,
    %cst_90 = arith.constant 0.000000e+00 : f32
    %175 = vector.broadcast %cst_90 : f32 to vector<256x4xf32>
    %c0_91 = arith.constant 0 : index
    %c0_92 = arith.constant 0 : index
    %176 = vector.load %arg5[%c0_91, %c0_92] : memref<1x4xf32, #tpu.memory_space<vmem>>, vector<1x4xf32>
    %177 = vector.broadcast %176 : vector<1x4xf32> to vector<256x4xf32>
    %178 = arith.addf %175, %177 : vector<256x4xf32>
    %c0_93 = arith.constant 0 : index
    %c0_94 = arith.constant 0 : index
    %c0_95 = arith.constant 0 : index
    %179 = vector.load %arg9[%c0_93, %c0_94, %c0_95] : memref<18x18x4xf32, #tpu.memory_space<vmem>>, vector<16x16x4xf32>
    %180 = vector.shape_cast %179 : vector<16x16x4xf32> to vector<256x4xf32>
    %c0_96 = arith.constant 0 : index
    %c0_97 = arith.constant 0 : index
    %c0_98 = arith.constant 0 : index
    %c0_99 = arith.constant 0 : index
    %181 = vector.load %arg4[%c0_96, %c0_97, %c0_98, %c0_99] : memref<3x3x4x4xf32, #tpu.memory_space<vmem>>, vector<1x1x4x4xf32>
    %182 = vector.shape_cast %181 : vector<1x1x4x4xf32> to vector<4x4xf32>
    %cst_100 = arith.constant dense<0.000000e+00> : vector<256x4xf32>
    %183 = tpu.matmul %180, %182, %cst_100 {dimension_numbers = #tpu.dot_dimension_numbers<[1], [0], [0], [1], [0, 0, 1, 1], [], []>} : vector<256x4xf32>, vector<4x4xf32>, vector<256x4xf32> -> vector<256x4xf32>
    %184 = arith.addf %178, %183 : vector<256x4xf32>
    %c0_101 = arith.constant 0 : index
    %c1_102 = arith.constant 1 : index
    %c0_103 = arith.constant 0 : index
    %185 = vector.load %arg9[%c0_101, %c1_102, %c0_103] : memref<18x18x4xf32, #tpu.memory_space<vmem>>, vector<16x16x4xf32>
    %186 = vector.shape_cast %185 : vector<16x16x4xf32> to vector<256x4xf32>
    %c0_104 = arith.constant 0 : index
    %c1_105 = arith.constant 1 : index
    %c0_106 = arith.constant 0 : index
    %c0_107 = arith.constant 0 : index
    %187 = vector.load %arg4[%c0_104, %c1_105, %c0_106, %c0_107] : memref<3x3x4x4xf32, #tpu.memory_space<vmem>>, vector<1x1x4x4xf32>
    %188 = vector.shape_cast %187 : vector<1x1x4x4xf32> to vector<4x4xf32>
    %cst_108 = arith.constant dense<0.000000e+00> : vector<256x4xf32>
    %189 = tpu.matmul %186, %188, %cst_108 {dimension_numbers = #tpu.dot_dimension_numbers<[1], [0], [0], [1], [0, 0, 1, 1], [], []>} : vector<256x4xf32>, vector<4x4xf32>, vector<256x4xf32> -> vector<256x4xf32>
    %190 = arith.addf %184, %189 : vector<256x4xf32>
    %c0_109 = arith.constant 0 : index
    %c2_110 = arith.constant 2 : index
    %c0_111 = arith.constant 0 : index
    %191 = vector.load %arg9[%c0_109, %c2_110, %c0_111] : memref<18x18x4xf32, #tpu.memory_space<vmem>>, vector<16x16x4xf32>
    %192 = vector.shape_cast %191 : vector<16x16x4xf32> to vector<256x4xf32>
    %c0_112 = arith.constant 0 : index
    %c2_113 = arith.constant 2 : index
    %c0_114 = arith.constant 0 : index
    %c0_115 = arith.constant 0 : index
    %193 = vector.load %arg4[%c0_112, %c2_113, %c0_114, %c0_115] : memref<3x3x4x4xf32, #tpu.memory_space<vmem>>, vector<1x1x4x4xf32>
    %194 = vector.shape_cast %193 : vector<1x1x4x4xf32> to vector<4x4xf32>
    %cst_116 = arith.constant dense<0.000000e+00> : vector<256x4xf32>
    %195 = tpu.matmul %192, %194, %cst_116 {dimension_numbers = #tpu.dot_dimension_numbers<[1], [0], [0], [1], [0, 0, 1, 1], [], []>} : vector<256x4xf32>, vector<4x4xf32>, vector<256x4xf32> -> vector<256x4xf32>
    %196 = arith.addf %190, %195 : vector<256x4xf32>
    %c1_117 = arith.constant 1 : index
    %c0_118 = arith.constant 0 : index
    %c0_119 = arith.constant 0 : index
    %197 = vector.load %arg9[%c1_117, %c0_118, %c0_119] : memref<18x18x4xf32, #tpu.memory_space<vmem>>, vector<16x16x4xf32>
    %198 = vector.shape_cast %197 : vector<16x16x4xf32> to vector<256x4xf32>
    %c1_120 = arith.constant 1 : index
    %c0_121 = arith.constant 0 : index
    %c0_122 = arith.constant 0 : index
    %c0_123 = arith.constant 0 : index
    %199 = vector.load %arg4[%c1_120, %c0_121, %c0_122, %c0_123] : memref<3x3x4x4xf32, #tpu.memory_space<vmem>>, vector<1x1x4x4xf32>
    %200 = vector.shape_cast %199 : vector<1x1x4x4xf32> to vector<4x4xf32>
    %cst_124 = arith.constant dense<0.000000e+00> : vector<256x4xf32>
    %201 = tpu.matmul %198, %200, %cst_124 {dimension_numbers = #tpu.dot_dimension_numbers<[1], [0], [0], [1], [0, 0, 1, 1], [], []>} : vector<256x4xf32>, vector<4x4xf32>, vector<256x4xf32> -> vector<256x4xf32>
    %202 = arith.addf %196, %201 : vector<256x4xf32>
    %c1_125 = arith.constant 1 : index
    %c1_126 = arith.constant 1 : index
    %c0_127 = arith.constant 0 : index
    %203 = vector.load %arg9[%c1_125, %c1_126, %c0_127] : memref<18x18x4xf32, #tpu.memory_space<vmem>>, vector<16x16x4xf32>
    %204 = vector.shape_cast %203 : vector<16x16x4xf32> to vector<256x4xf32>
    %c1_128 = arith.constant 1 : index
    %c1_129 = arith.constant 1 : index
    %c0_130 = arith.constant 0 : index
    %c0_131 = arith.constant 0 : index
    %205 = vector.load %arg4[%c1_128, %c1_129, %c0_130, %c0_131] : memref<3x3x4x4xf32, #tpu.memory_space<vmem>>, vector<1x1x4x4xf32>
    %206 = vector.shape_cast %205 : vector<1x1x4x4xf32> to vector<4x4xf32>
    %cst_132 = arith.constant dense<0.000000e+00> : vector<256x4xf32>
    %207 = tpu.matmul %204, %206, %cst_132 {dimension_numbers = #tpu.dot_dimension_numbers<[1], [0], [0], [1], [0, 0, 1, 1], [], []>} : vector<256x4xf32>, vector<4x4xf32>, vector<256x4xf32> -> vector<256x4xf32>
    %208 = arith.addf %202, %207 : vector<256x4xf32>
    %c1_133 = arith.constant 1 : index
    %c2_134 = arith.constant 2 : index
    %c0_135 = arith.constant 0 : index
    %209 = vector.load %arg9[%c1_133, %c2_134, %c0_135] : memref<18x18x4xf32, #tpu.memory_space<vmem>>, vector<16x16x4xf32>
    %210 = vector.shape_cast %209 : vector<16x16x4xf32> to vector<256x4xf32>
    %c1_136 = arith.constant 1 : index
    %c2_137 = arith.constant 2 : index
    %c0_138 = arith.constant 0 : index
    %c0_139 = arith.constant 0 : index
    %211 = vector.load %arg4[%c1_136, %c2_137, %c0_138, %c0_139] : memref<3x3x4x4xf32, #tpu.memory_space<vmem>>, vector<1x1x4x4xf32>
    %212 = vector.shape_cast %211 : vector<1x1x4x4xf32> to vector<4x4xf32>
    %cst_140 = arith.constant dense<0.000000e+00> : vector<256x4xf32>
    %213 = tpu.matmul %210, %212, %cst_140 {dimension_numbers = #tpu.dot_dimension_numbers<[1], [0], [0], [1], [0, 0, 1, 1], [], []>} : vector<256x4xf32>, vector<4x4xf32>, vector<256x4xf32> -> vector<256x4xf32>
    %214 = arith.addf %208, %213 : vector<256x4xf32>
    %c2_141 = arith.constant 2 : index
    %c0_142 = arith.constant 0 : index
    %c0_143 = arith.constant 0 : index
    %215 = vector.load %arg9[%c2_141, %c0_142, %c0_143] : memref<18x18x4xf32, #tpu.memory_space<vmem>>, vector<16x16x4xf32>
    %216 = vector.shape_cast %215 : vector<16x16x4xf32> to vector<256x4xf32>
    %c2_144 = arith.constant 2 : index
    %c0_145 = arith.constant 0 : index
    %c0_146 = arith.constant 0 : index
    %c0_147 = arith.constant 0 : index
    %217 = vector.load %arg4[%c2_144, %c0_145, %c0_146, %c0_147] : memref<3x3x4x4xf32, #tpu.memory_space<vmem>>, vector<1x1x4x4xf32>
    %218 = vector.shape_cast %217 : vector<1x1x4x4xf32> to vector<4x4xf32>
    %cst_148 = arith.constant dense<0.000000e+00> : vector<256x4xf32>
    %219 = tpu.matmul %216, %218, %cst_148 {dimension_numbers = #tpu.dot_dimension_numbers<[1], [0], [0], [1], [0, 0, 1, 1], [], []>} : vector<256x4xf32>, vector<4x4xf32>, vector<256x4xf32> -> vector<256x4xf32>
    %220 = arith.addf %214, %219 : vector<256x4xf32>
    %c2_149 = arith.constant 2 : index
    %c1_150 = arith.constant 1 : index
    %c0_151 = arith.constant 0 : index
    %221 = vector.load %arg9[%c2_149, %c1_150, %c0_151] : memref<18x18x4xf32, #tpu.memory_space<vmem>>, vector<16x16x4xf32>
    %222 = vector.shape_cast %221 : vector<16x16x4xf32> to vector<256x4xf32>
    %c2_152 = arith.constant 2 : index
    %c1_153 = arith.constant 1 : index
    %c0_154 = arith.constant 0 : index
    %c0_155 = arith.constant 0 : index
    %223 = vector.load %arg4[%c2_152, %c1_153, %c0_154, %c0_155] : memref<3x3x4x4xf32, #tpu.memory_space<vmem>>, vector<1x1x4x4xf32>
    %224 = vector.shape_cast %223 : vector<1x1x4x4xf32> to vector<4x4xf32>
    %cst_156 = arith.constant dense<0.000000e+00> : vector<256x4xf32>
    %225 = tpu.matmul %222, %224, %cst_156 {dimension_numbers = #tpu.dot_dimension_numbers<[1], [0], [0], [1], [0, 0, 1, 1], [], []>} : vector<256x4xf32>, vector<4x4xf32>, vector<256x4xf32> -> vector<256x4xf32>
    %226 = arith.addf %220, %225 : vector<256x4xf32>
    %c2_157 = arith.constant 2 : index
    %c2_158 = arith.constant 2 : index
    %c0_159 = arith.constant 0 : index
    %227 = vector.load %arg9[%c2_157, %c2_158, %c0_159] : memref<18x18x4xf32, #tpu.memory_space<vmem>>, vector<16x16x4xf32>
    %228 = vector.shape_cast %227 : vector<16x16x4xf32> to vector<256x4xf32>
    %c2_160 = arith.constant 2 : index
    %c2_161 = arith.constant 2 : index
    %c0_162 = arith.constant 0 : index
    %c0_163 = arith.constant 0 : index
    %229 = vector.load %arg4[%c2_160, %c2_161, %c0_162, %c0_163] : memref<3x3x4x4xf32, #tpu.memory_space<vmem>>, vector<1x1x4x4xf32>
    %230 = vector.shape_cast %229 : vector<1x1x4x4xf32> to vector<4x4xf32>
    %cst_164 = arith.constant dense<0.000000e+00> : vector<256x4xf32>
    %231 = tpu.matmul %228, %230, %cst_164 {dimension_numbers = #tpu.dot_dimension_numbers<[1], [0], [0], [1], [0, 0, 1, 1], [], []>} : vector<256x4xf32>, vector<4x4xf32>, vector<256x4xf32> -> vector<256x4xf32>
    %232 = arith.addf %226, %231 : vector<256x4xf32>
    %cst_165 = arith.constant 0.000000e+00 : f32
    %233 = vector.broadcast %cst_165 : f32 to vector<256x4xf32>
    %234 = arith.maximumf %232, %233 : vector<256x4xf32>
    %235 = vector.shape_cast %234 : vector<256x4xf32> to vector<16x16x4xf32>
    %c1_166 = arith.constant 1 : index
    %c1_167 = arith.constant 1 : index
    %c0_168 = arith.constant 0 : index
    %236 = vector.load %arg9[%c1_166, %c1_167, %c0_168] : memref<18x18x4xf32, #tpu.memory_space<vmem>>, vector<16x16x4xf32>
    tpu.vector_store %arg9[%c1_166, %c1_167, %c0_168], %235 {strides = array<i32>} : memref<18x18x4xf32, #tpu.memory_space<vmem>>, vector<16x16x4xf32>,
    %cst_169 = arith.constant 0.000000e+00 : f32
    %237 = vector.broadcast %cst_169 : f32 to vector<256x4xf32>
    %c0_170 = arith.constant 0 : index
    %c0_171 = arith.constant 0 : index
    %238 = vector.load %arg7[%c0_170, %c0_171] : memref<1x4xf32, #tpu.memory_space<vmem>>, vector<1x4xf32>
    %239 = vector.broadcast %238 : vector<1x4xf32> to vector<256x4xf32>
    %240 = arith.addf %237, %239 : vector<256x4xf32>
    %c0_172 = arith.constant 0 : index
    %c0_173 = arith.constant 0 : index
    %c0_174 = arith.constant 0 : index
    %241 = vector.load %arg9[%c0_172, %c0_173, %c0_174] : memref<18x18x4xf32, #tpu.memory_space<vmem>>, vector<16x16x4xf32>
    %242 = vector.shape_cast %241 : vector<16x16x4xf32> to vector<256x4xf32>
    %c0_175 = arith.constant 0 : index
    %c0_176 = arith.constant 0 : index
    %c0_177 = arith.constant 0 : index
    %c0_178 = arith.constant 0 : index
    %243 = vector.load %arg6[%c0_175, %c0_176, %c0_177, %c0_178] : memref<3x3x4x4xf32, #tpu.memory_space<vmem>>, vector<1x1x4x4xf32>
    %244 = vector.shape_cast %243 : vector<1x1x4x4xf32> to vector<4x4xf32>
    %cst_179 = arith.constant dense<0.000000e+00> : vector<256x4xf32>
    %245 = tpu.matmul %242, %244, %cst_179 {dimension_numbers = #tpu.dot_dimension_numbers<[1], [0], [0], [1], [0, 0, 1, 1], [], []>} : vector<256x4xf32>, vector<4x4xf32>, vector<256x4xf32> -> vector<256x4xf32>
    %246 = arith.addf %240, %245 : vector<256x4xf32>
    %c0_180 = arith.constant 0 : index
    %c1_181 = arith.constant 1 : index
    %c0_182 = arith.constant 0 : index
    %247 = vector.load %arg9[%c0_180, %c1_181, %c0_182] : memref<18x18x4xf32, #tpu.memory_space<vmem>>, vector<16x16x4xf32>
    %248 = vector.shape_cast %247 : vector<16x16x4xf32> to vector<256x4xf32>
    %c0_183 = arith.constant 0 : index
    %c1_184 = arith.constant 1 : index
    %c0_185 = arith.constant 0 : index
    %c0_186 = arith.constant 0 : index
    %249 = vector.load %arg6[%c0_183, %c1_184, %c0_185, %c0_186] : memref<3x3x4x4xf32, #tpu.memory_space<vmem>>, vector<1x1x4x4xf32>
    %250 = vector.shape_cast %249 : vector<1x1x4x4xf32> to vector<4x4xf32>
    %cst_187 = arith.constant dense<0.000000e+00> : vector<256x4xf32>
    %251 = tpu.matmul %248, %250, %cst_187 {dimension_numbers = #tpu.dot_dimension_numbers<[1], [0], [0], [1], [0, 0, 1, 1], [], []>} : vector<256x4xf32>, vector<4x4xf32>, vector<256x4xf32> -> vector<256x4xf32>
    %252 = arith.addf %246, %251 : vector<256x4xf32>
    %c0_188 = arith.constant 0 : index
    %c2_189 = arith.constant 2 : index
    %c0_190 = arith.constant 0 : index
    %253 = vector.load %arg9[%c0_188, %c2_189, %c0_190] : memref<18x18x4xf32, #tpu.memory_space<vmem>>, vector<16x16x4xf32>
    %254 = vector.shape_cast %253 : vector<16x16x4xf32> to vector<256x4xf32>
    %c0_191 = arith.constant 0 : index
    %c2_192 = arith.constant 2 : index
    %c0_193 = arith.constant 0 : index
    %c0_194 = arith.constant 0 : index
    %255 = vector.load %arg6[%c0_191, %c2_192, %c0_193, %c0_194] : memref<3x3x4x4xf32, #tpu.memory_space<vmem>>, vector<1x1x4x4xf32>
    %256 = vector.shape_cast %255 : vector<1x1x4x4xf32> to vector<4x4xf32>
    %cst_195 = arith.constant dense<0.000000e+00> : vector<256x4xf32>
    %257 = tpu.matmul %254, %256, %cst_195 {dimension_numbers = #tpu.dot_dimension_numbers<[1], [0], [0], [1], [0, 0, 1, 1], [], []>} : vector<256x4xf32>, vector<4x4xf32>, vector<256x4xf32> -> vector<256x4xf32>
    %258 = arith.addf %252, %257 : vector<256x4xf32>
    %c1_196 = arith.constant 1 : index
    %c0_197 = arith.constant 0 : index
    %c0_198 = arith.constant 0 : index
    %259 = vector.load %arg9[%c1_196, %c0_197, %c0_198] : memref<18x18x4xf32, #tpu.memory_space<vmem>>, vector<16x16x4xf32>
    %260 = vector.shape_cast %259 : vector<16x16x4xf32> to vector<256x4xf32>
    %c1_199 = arith.constant 1 : index
    %c0_200 = arith.constant 0 : index
    %c0_201 = arith.constant 0 : index
    %c0_202 = arith.constant 0 : index
    %261 = vector.load %arg6[%c1_199, %c0_200, %c0_201, %c0_202] : memref<3x3x4x4xf32, #tpu.memory_space<vmem>>, vector<1x1x4x4xf32>
    %262 = vector.shape_cast %261 : vector<1x1x4x4xf32> to vector<4x4xf32>
    %cst_203 = arith.constant dense<0.000000e+00> : vector<256x4xf32>
    %263 = tpu.matmul %260, %262, %cst_203 {dimension_numbers = #tpu.dot_dimension_numbers<[1], [0], [0], [1], [0, 0, 1, 1], [], []>} : vector<256x4xf32>, vector<4x4xf32>, vector<256x4xf32> -> vector<256x4xf32>
    %264 = arith.addf %258, %263 : vector<256x4xf32>
    %c1_204 = arith.constant 1 : index
    %c1_205 = arith.constant 1 : index
    %c0_206 = arith.constant 0 : index
    %265 = vector.load %arg9[%c1_204, %c1_205, %c0_206] : memref<18x18x4xf32, #tpu.memory_space<vmem>>, vector<16x16x4xf32>
    %266 = vector.shape_cast %265 : vector<16x16x4xf32> to vector<256x4xf32>
    %c1_207 = arith.constant 1 : index
    %c1_208 = arith.constant 1 : index
    %c0_209 = arith.constant 0 : index
    %c0_210 = arith.constant 0 : index
    %267 = vector.load %arg6[%c1_207, %c1_208, %c0_209, %c0_210] : memref<3x3x4x4xf32, #tpu.memory_space<vmem>>, vector<1x1x4x4xf32>
    %268 = vector.shape_cast %267 : vector<1x1x4x4xf32> to vector<4x4xf32>
    %cst_211 = arith.constant dense<0.000000e+00> : vector<256x4xf32>
    %269 = tpu.matmul %266, %268, %cst_211 {dimension_numbers = #tpu.dot_dimension_numbers<[1], [0], [0], [1], [0, 0, 1, 1], [], []>} : vector<256x4xf32>, vector<4x4xf32>, vector<256x4xf32> -> vector<256x4xf32>
    %270 = arith.addf %264, %269 : vector<256x4xf32>
    %c1_212 = arith.constant 1 : index
    %c2_213 = arith.constant 2 : index
    %c0_214 = arith.constant 0 : index
    %271 = vector.load %arg9[%c1_212, %c2_213, %c0_214] : memref<18x18x4xf32, #tpu.memory_space<vmem>>, vector<16x16x4xf32>
    %272 = vector.shape_cast %271 : vector<16x16x4xf32> to vector<256x4xf32>
    %c1_215 = arith.constant 1 : index
    %c2_216 = arith.constant 2 : index
    %c0_217 = arith.constant 0 : index
    %c0_218 = arith.constant 0 : index
    %273 = vector.load %arg6[%c1_215, %c2_216, %c0_217, %c0_218] : memref<3x3x4x4xf32, #tpu.memory_space<vmem>>, vector<1x1x4x4xf32>
    %274 = vector.shape_cast %273 : vector<1x1x4x4xf32> to vector<4x4xf32>
    %cst_219 = arith.constant dense<0.000000e+00> : vector<256x4xf32>
    %275 = tpu.matmul %272, %274, %cst_219 {dimension_numbers = #tpu.dot_dimension_numbers<[1], [0], [0], [1], [0, 0, 1, 1], [], []>} : vector<256x4xf32>, vector<4x4xf32>, vector<256x4xf32> -> vector<256x4xf32>
    %276 = arith.addf %270, %275 : vector<256x4xf32>
    %c2_220 = arith.constant 2 : index
    %c0_221 = arith.constant 0 : index
    %c0_222 = arith.constant 0 : index
    %277 = vector.load %arg9[%c2_220, %c0_221, %c0_222] : memref<18x18x4xf32, #tpu.memory_space<vmem>>, vector<16x16x4xf32>
    %278 = vector.shape_cast %277 : vector<16x16x4xf32> to vector<256x4xf32>
    %c2_223 = arith.constant 2 : index
    %c0_224 = arith.constant 0 : index
    %c0_225 = arith.constant 0 : index
    %c0_226 = arith.constant 0 : index
    %279 = vector.load %arg6[%c2_223, %c0_224, %c0_225, %c0_226] : memref<3x3x4x4xf32, #tpu.memory_space<vmem>>, vector<1x1x4x4xf32>
    %280 = vector.shape_cast %279 : vector<1x1x4x4xf32> to vector<4x4xf32>
    %cst_227 = arith.constant dense<0.000000e+00> : vector<256x4xf32>
    %281 = tpu.matmul %278, %280, %cst_227 {dimension_numbers = #tpu.dot_dimension_numbers<[1], [0], [0], [1], [0, 0, 1, 1], [], []>} : vector<256x4xf32>, vector<4x4xf32>, vector<256x4xf32> -> vector<256x4xf32>
    %282 = arith.addf %276, %281 : vector<256x4xf32>
    %c2_228 = arith.constant 2 : index
    %c1_229 = arith.constant 1 : index
    %c0_230 = arith.constant 0 : index
    %283 = vector.load %arg9[%c2_228, %c1_229, %c0_230] : memref<18x18x4xf32, #tpu.memory_space<vmem>>, vector<16x16x4xf32>
    %284 = vector.shape_cast %283 : vector<16x16x4xf32> to vector<256x4xf32>
    %c2_231 = arith.constant 2 : index
    %c1_232 = arith.constant 1 : index
    %c0_233 = arith.constant 0 : index
    %c0_234 = arith.constant 0 : index
    %285 = vector.load %arg6[%c2_231, %c1_232, %c0_233, %c0_234] : memref<3x3x4x4xf32, #tpu.memory_space<vmem>>, vector<1x1x4x4xf32>
    %286 = vector.shape_cast %285 : vector<1x1x4x4xf32> to vector<4x4xf32>
    %cst_235 = arith.constant dense<0.000000e+00> : vector<256x4xf32>
    %287 = tpu.matmul %284, %286, %cst_235 {dimension_numbers = #tpu.dot_dimension_numbers<[1], [0], [0], [1], [0, 0, 1, 1], [], []>} : vector<256x4xf32>, vector<4x4xf32>, vector<256x4xf32> -> vector<256x4xf32>
    %288 = arith.addf %282, %287 : vector<256x4xf32>
    %c2_236 = arith.constant 2 : index
    %c2_237 = arith.constant 2 : index
    %c0_238 = arith.constant 0 : index
    %289 = vector.load %arg9[%c2_236, %c2_237, %c0_238] : memref<18x18x4xf32, #tpu.memory_space<vmem>>, vector<16x16x4xf32>
    %290 = vector.shape_cast %289 : vector<16x16x4xf32> to vector<256x4xf32>
    %c2_239 = arith.constant 2 : index
    %c2_240 = arith.constant 2 : index
    %c0_241 = arith.constant 0 : index
    %c0_242 = arith.constant 0 : index
    %291 = vector.load %arg6[%c2_239, %c2_240, %c0_241, %c0_242] : memref<3x3x4x4xf32, #tpu.memory_space<vmem>>, vector<1x1x4x4xf32>
    %292 = vector.shape_cast %291 : vector<1x1x4x4xf32> to vector<4x4xf32>
    %cst_243 = arith.constant dense<0.000000e+00> : vector<256x4xf32>
    %293 = tpu.matmul %290, %292, %cst_243 {dimension_numbers = #tpu.dot_dimension_numbers<[1], [0], [0], [1], [0, 0, 1, 1], [], []>} : vector<256x4xf32>, vector<4x4xf32>, vector<256x4xf32> -> vector<256x4xf32>
    %294 = arith.addf %288, %293 : vector<256x4xf32>
    %cst_244 = arith.constant 0.000000e+00 : f32
    %295 = vector.broadcast %cst_244 : f32 to vector<256x4xf32>
    %296 = arith.maximumf %294, %295 : vector<256x4xf32>
    %297 = vector.shape_cast %296 : vector<256x4xf32> to vector<16x16x4xf32>
    %c0_245 = arith.constant 0 : index
    %c0_246 = arith.constant 0 : index
    %c0_247 = arith.constant 0 : index
    %c0_248 = arith.constant 0 : index
    %298 = vector.load %arg8[%c0_245, %c0_246, %c0_247, %c0_248] : memref<1x16x16x4xf32, #tpu.memory_space<vmem>>, vector<1x16x16x4xf32>
    %299 = vector.shape_cast %298 : vector<1x16x16x4xf32> to vector<16x16x4xf32>
    %300 = vector.shape_cast %297 : vector<16x16x4xf32> to vector<1x16x16x4xf32>
    tpu.vector_store %arg8[%c0_245, %c0_246, %c0_247, %c0_248], %300 {strides = array<i32>} : memref<1x16x16x4xf32, #tpu.memory_space<vmem>>, vector<1x16x16x4xf32>,
    return
  }
  func.func @transform_0(%arg0: i32) -> (i32, i32) {
    %c0_i32 = arith.constant 0 : i32
    %c0_i32_0 = arith.constant 0 : i32
    %c0_i32_1 = arith.constant 0 : i32
    return %c0_i32, %c0_i32_0 : i32, i32
  }
  func.func @transform_1(%arg0: i32) -> (i32, i32, i32) {
    %c0_i32 = arith.constant 0 : i32
    %c0_i32_0 = arith.constant 0 : i32
    %c0_i32_1 = arith.constant 0 : i32
    return %arg0, %c0_i32, %c0_i32_0 : i32, i32, i32
  }
  func.func @transform_2(%arg0: i32) -> (i32, i32, i32, i32) {
    %c0_i32 = arith.constant 0 : i32
    %c0_i32_0 = arith.constant 0 : i32
    %c0_i32_1 = arith.constant 0 : i32
    %c0_i32_2 = arith.constant 0 : i32
    return %arg0, %c0_i32, %c0_i32_0, %c0_i32_1 : i32, i32, i32, i32
  }
  func.func @transform_3(%arg0: i32) -> (i32, i32, i32, i32) {
    %c0_i32 = arith.constant 0 : i32
    %c0_i32_0 = arith.constant 0 : i32
    %c0_i32_1 = arith.constant 0 : i32
    %c0_i32_2 = arith.constant 0 : i32
    %c0_i32_3 = arith.constant 0 : i32
    return %c0_i32, %c0_i32_0, %c0_i32_1, %c0_i32_2 : i32, i32, i32, i32
  }
  func.func @transform_4(%arg0: i32) -> (i32, i32) {
    %c0_i32 = arith.constant 0 : i32
    %c0_i32_0 = arith.constant 0 : i32
    %c0_i32_1 = arith.constant 0 : i32
    return %c0_i32, %c0_i32_0 : i32, i32
  }
  func.func @transform_5(%arg0: i32) -> (i32, i32, i32, i32) {
    %c0_i32 = arith.constant 0 : i32
    %c0_i32_0 = arith.constant 0 : i32
    %c0_i32_1 = arith.constant 0 : i32
    %c0_i32_2 = arith.constant 0 : i32
    %c0_i32_3 = arith.constant 0 : i32
    return %c0_i32, %c0_i32_0, %c0_i32_1, %c0_i32_2 : i32, i32, i32, i32
  }
  func.func @transform_6(%arg0: i32) -> (i32, i32) {
    %c0_i32 = arith.constant 0 : i32
    %c0_i32_0 = arith.constant 0 : i32
    %c0_i32_1 = arith.constant 0 : i32
    return %c0_i32, %c0_i32_0 : i32, i32
  }
  func.func @transform_7(%arg0: i32) -> (i32, i32, i32, i32) {
    %c0_i32 = arith.constant 0 : i32
    %c0_i32_0 = arith.constant 0 : i32
    %c0_i32_1 = arith.constant 0 : i32
    %c0_i32_2 = arith.constant 0 : i32
    return %arg0, %c0_i32, %c0_i32_0, %c0_i32_1 : i32, i32, i32, i32
  }
}

</mosaic_0001>

<bundles_post_ra>
// kernel: tpu_custom_call.1
= control target key start
LH: loop header
LB: loop body
LE: loop exit
PB: predicated region body
PF: predicated region fallthrough
CT: control target
= control target key end

     0   :  { %s14143_s24 = smov 0   ;;  %s18093_s0 = inlined_call_operand.vmem [shape: f32[16,8], index: 0, kind: input, shape index: {}]   ;;  %s18094_s1 = inlined_call_operand.vmem [shape: f32[2,8,16], index: 1, kind: input, shape index: {}]   ;;  %s18095_s2 = inlined_call_operand.vmem [shape: f32[2,16,16,2], index: 2, kind: input, shape index: {}]   ;;  %s18096_s3 = inlined_call_operand.vmem [shape: f32[3,3,4,4], index: 3, kind: input, shape index: {}]   ;;  %s18097_s4 = inlined_call_operand.vmem [shape: f32[1,4], index: 4, kind: input, shape index: {}]   ;;  %s18098_s5 = inlined_call_operand.vmem [shape: f32[3,3,4,4], index: 5, kind: input, shape index: {}]   ;;  %s18099_s6 = inlined_call_operand.vmem [shape: f32[1,4], index: 6, kind: input, shape index: {}]   ;;  %s18100_s7 = inlined_call_operand.vmem [shape: f32[2,16,16,4], index: 7, kind: output, shape index: {}]  }
   0x1 LB: > { %s11363_s25 = sadd.s32 4294967295, %s14092_s24   ;;  %p11367_p0 = scmp.ge.s32.totalorder %s14092_s24, 1  ;;  %s14092_s24 = sphi %s14143_s24, %s17_s24  }
   0x2   : > { %p246_p1 = scmp.lt.s32.totalorder %s14092_s24, 3 }
   0x4   : > { %p247_p2 = pnand %p11367_p0, %p246_p1 }
   0x6   : > { %250 = sbr.rel (%p247_p2) target bundleno = 2345 (0x929), region = 48 }
   0xd   : > { %p282_p3 = scmp.lt.s32.totalorder %s11363_s25, 1  ;;  %v408_v0 = vld [vmem:[%s18093_s0] sm:$0xff]  ;;  %vm411_vm0 = vcmask 64512   ;;  %v409_v2 = vld [vmem:[%s18093_s0 + $0x8] sm:$0xff]  ;;  %s14094_s11 = smov 126   ;;  %vm375_vm1 = vcmask 15360   ;;  %v511_v55 = vlaneseq }
   0xe   : > { %12590 = vmatprep.mubr.msk.f32.mxu0 %vm411_vm0, %v408_v0  ;;  %v14095_v53 = vmov 1966171168   ;;  %s14096_s16 = smov 2   ;;  %s14097_s17 = smov 124   ;;  %vm717_vm2 = vcmask 24592   ;;  %vm4269_vm3 = vcmask 1043456  }
   0xf   : > { %s18477_s25 = smov (!%p282_p3, %s11363_s25), 1  ;;  %v509_v54 = vunpack.c.l.s4 %v14095_v53  ;;  %v512_v57 = vshrl.u32 %v511_v55, 7  ;;  %s14098_s18 = smov 122   ;;  %vm296_vm4 = vcmask 31744   ;;  %vm305_vm5 = vcmask 24576  }
  0x10   : > { %s11368_s28 = sshll.u32 %s18477_s25, 3  ;;  %s11989_s12 = sshll.u32 %s18477_s25, 8  ;;  %vm299_vm6 = vcmask 25600  }
  0x11   : > { %s285_s8 = scalar_lea.vmem %s18094_s1, %s11368_s28  ;;  %s14217_s15 = scalar_lea.vmem %s18095_s2, %s11989_s12  ;;  %v510_v56 = vunpack.c.0.s8 %v509_v54 }
  0x12   : > { %v410_v1 = vld [vmem:[%s285_s8] sm:$0xff]  ;;  %v360_v19 = vld [vmem:[%s14217_s15 + $0x90] sm:$0xff]  ;;  %s14099_s19 = smov 120   ;;  %s14100_s20 = smov 118  }
  0x13   : > { %12588 = vmatprep.subr.mxu0 %v410_v1  ;;  %v358_v18 = vld [vmem:[%s14217_s15 + $0x80] sm:$0xff]  ;;  %v364_v22 = vld [vmem:[%s14217_s15 + $0xb0] sm:$0xff]  ;;  %394 = vst.msk [vmem:[#allocation2 + $0xf1] sm:$0xff] %vm375_vm1, %v360_v19  ;;  %v14354_v60 = vsub.s32 %v510_v56, %v512_v57  ;;  %v14383_v19 = vsub.s32 0, %v512_v57  ;;  %s14102_s29 = smov 116   ;;  %s17993_s26 = scalar_lea.vmem %s18100_s7, %s11989_s12 }
  0x14   : > { %12589 = vmatpush3.msra.mxu0 %v410_v1  ;;  %v362_v21 = vld [vmem:[%s14217_s15 + $0xa0] sm:$0xff]  ;;  %392 = vst.msk [vmem:[#allocation2 + $0xd9] sm:$0xff] %vm375_vm1, %v358_v18  ;;  %v368_v25 = vld [vmem:[%s14217_s15 + $0xd0] sm:$0xff]  ;;  %398 = vst.msk [vmem:[#allocation2 + $0x121] sm:$0xff] %vm375_vm1, %v364_v22 }
  0x15   : > { %12591 = vmatmul.mubr.msk.f32.vlgmr.msra.gmra.mrb[0].mxu0 %vm411_vm0, %v409_v2  ;;  %v366_v23 = vld [vmem:[%s14217_s15 + $0xc0] sm:$0xff]  ;;  %v372_v27 = vld [vmem:[%s14217_s15 + $0xf0] sm:$0xff]  ;;  %396 = vst.msk [vmem:[#allocation2 + $0x109] sm:$0xff] %vm375_vm1, %v362_v21  ;;  %402 = vst.msk [vmem:[#allocation2 + $0x151] sm:$0xff] %vm375_vm1, %v368_v25 }
  0x16   : > { %v370_v26 = vld [vmem:[%s14217_s15 + $0xe0] sm:$0xff]  ;;  %400 = vst.msk [vmem:[#allocation2 + $0x139] sm:$0xff] %vm375_vm1, %v366_v23  ;;  %406 = vst.msk [vmem:[#allocation2 + $0x181] sm:$0xff] %vm375_vm1, %v372_v27  ;;  %v344_v46 = vld [vmem:[%s14217_s15 + $0x10] sm:$0xff] }
  0x17   : > { %404 = vst.msk [vmem:[#allocation2 + $0x169] sm:$0xff] %vm375_vm1, %v370_v26  ;;  %v342_v45 = vld [vmem:[%s14217_s15] sm:$0xff]  ;;  %v348_v48 = vld [vmem:[%s14217_s15 + $0x30] sm:$0xff]  ;;  %378 = vst.msk [vmem:[#allocation2 + $0x31] sm:$0xff] %vm375_vm1, %v344_v46 }
  0x18   : > { %v346_v47 = vld [vmem:[%s14217_s15 + $0x20] sm:$0xff]  ;;  %v352_v50 = vld [vmem:[%s14217_s15 + $0x50] sm:$0xff]  ;;  %376 = vst.msk [vmem:[#allocation2 + $0x19] sm:$0xff] %vm375_vm1, %v342_v45  ;;  %382 = vst.msk [vmem:[#allocation2 + $0x61] sm:$0xff] %vm375_vm1, %v348_v48 }
  0x19   : > { %v350_v49 = vld [vmem:[%s14217_s15 + $0x40] sm:$0xff]  ;;  %380 = vst.msk [vmem:[#allocation2 + $0x49] sm:$0xff] %vm375_vm1, %v346_v47  ;;  %v356_v52 = vld [vmem:[%s14217_s15 + $0x70] sm:$0xff]  ;;  %386 = vst.msk [vmem:[#allocation2 + $0x91] sm:$0xff] %vm375_vm1, %v352_v50 }
  0x1a   : > { %v354_v51 = vld [vmem:[%s14217_s15 + $0x60] sm:$0xff]  ;;  %384 = vst.msk [vmem:[#allocation2 + $0x79] sm:$0xff] %vm375_vm1, %v350_v49  ;;  %390 = vst.msk [vmem:[#allocation2 + $0xc1] sm:$0xff] %vm375_vm1, %v356_v52 }
  0x1b   : > { %388 = vst.msk [vmem:[#allocation2 + $0xa9] sm:$0xff] %vm375_vm1, %v354_v51 }
  0xe8   : > { %v14163_v3 = vpop.f32.mrb[0].mxu0 }
  0xe9   : > { %v14165_v4 = vpop.f32.mrb[1].mxu0  ;;  %v14168_v5 = vmul.f32 0.46666667, %v14163_v3  ;;  %v494_v6 = vmul.f32 0.0, %v14163_v3  ;;  %v14178_v8 = vmul.f32 0.33333334, %v14163_v3 }
  0xea   : > { %v14181_v9 = vmul.f32 0.93333334, %v14163_v3  ;;  %v493_v10 = vmul.f32 0.0, %v14165_v4  ;;  %v14192_v12 = vmul.f32 0.26666668, %v14163_v3 }
  0xeb   : > { %742 = vrot.lane.b32.xlu0 %v14168_v5, %s14094_s11  ;;  %499 = vrot.lane.b32.xlu1 %v494_v6, %s14094_s11  ;;  %v14175_v7 = vadd.f32 %v14163_v3, %v494_v6  ;;  %v14195_v13 = vmul.f32 0.8, %v14163_v3  ;;  %v14203_v14 = vmul.f32 0.2, %v14163_v3  ;;  %v14206_v15 = vmul.f32 0.73333335, %v14163_v3 }
  0xec   : > { %v14189_v11 = vadd.f32 %v493_v10, %v14165_v4  ;;  %v14220_v16 = vmul.f32 0.13333334, %v14163_v3  ;;  %v14223_v17 = vmul.f32 0.6666667, %v14163_v3  ;;  %v14232_v20 = vmul.f32 0.06666667, %v14163_v3 }
  0xed   : > { %18247 = vst [vmem:[#allocation3_spill] sm:$0xff] %v14175_v7  ;;  %v14240_v24 = vmul.f32 0.6, %v14163_v3  ;;  %v14256_v28 = vmul.f32 0.8666667, %v14163_v3 }
  0xee   : > { %18248 = vst [vmem:[#allocation4_spill] sm:$0xff] %v14189_v11  ;;  %v735_v29 = vmul.f32 0.53333336, %v14163_v3  ;;  %v14263_v30 = vmul.f32 0.4, %v14163_v3 }
  0xef   : > { %1518 = vrot.lane.b32.xlu0 %v14178_v8, %s14094_s11  ;;  %984 = vrot.lane.b32.xlu1 %v14181_v9, %s14094_s11  ;;  %v14269_v31 = vmul.f32 0.93333334, %v14165_v4  ;;  %v14272_v32 = vmul.f32 0.46666667, %v14165_v4  ;;  %v14279_v33 = vmul.f32 0.33333334, %v14165_v4 }
  0xf0   : > { %v14282_v34 = vmul.f32 0.8, %v14165_v4  ;;  %v14289_v35 = vmul.f32 0.26666668, %v14165_v4  ;;  %v14292_v36 = vmul.f32 0.73333335, %v14165_v4 }
  0xf1   : > { %v14299_v37 = vmul.f32 0.2, %v14165_v4  ;;  %v14302_v38 = vmul.f32 0.6666667, %v14165_v4  ;;  %v14309_v39 = vmul.f32 0.13333334, %v14165_v4 }
  0xf2   : > { %v14312_v40 = vmul.f32 0.6, %v14165_v4  ;;  %v14319_v41 = vmul.f32 0.06666667, %v14165_v4  ;;  %v14322_v42 = vmul.f32 0.53333336, %v14165_v4 }
  0xf3   : > { %2002 = vrot.lane.b32.xlu0 %v14192_v12, %s14094_s11  ;;  %1760 = vrot.lane.b32.xlu1 %v14195_v13, %s14094_s11  ;;  %v14329_v43 = vmul.f32 0.8666667, %v14165_v4  ;;  %v14332_v44 = vmul.f32 0.4, %v14165_v4 }
  0xf7   : > { %2478 = vrot.lane.b32.xlu0 %v14203_v14, %s14094_s11  ;;  %2240 = vrot.lane.b32.xlu1 %v14206_v15, %s14094_s11 }
  0xfb   : > { %2954 = vrot.lane.b32.xlu0 %v14220_v16, %s14094_s11  ;;  %2716 = vrot.lane.b32.xlu1 %v14223_v17, %s14094_s11 }
  0xff   : > { %3430 = vrot.lane.b32.xlu0 %v14232_v20, %s14094_s11  ;;  %3192 = vrot.lane.b32.xlu1 %v14240_v24, %s14094_s11 }
 0x103   : > { %1372 = vrot.lane.b32.xlu0 %v14256_v28, %s14094_s11  ;;  %3668 = vrot.lane.b32.xlu1 %v735_v29, %s14094_s11 }
 0x107   : > { %1226 = vrot.lane.b32.xlu1 %v14263_v30, %s14094_s11  ;;  %497 = vrot.lane.b32.xlu0 %v493_v10, %s14094_s11 }
 0x10b   : > { %982 = vrot.lane.b32.xlu1 %v14269_v31, %s14094_s11  ;;  %740 = vrot.lane.b32.xlu0 %v14272_v32, %s14094_s11 }
 0x10f   : > { %1516 = vrot.lane.b32.xlu1 %v14279_v33, %s14094_s11  ;;  %1758 = vrot.lane.b32.xlu0 %v14282_v34, %s14094_s11 }
 0x113   : > { %2000 = vrot.lane.b32.xlu1 %v14289_v35, %s14094_s11  ;;  %2238 = vrot.lane.b32.xlu0 %v14292_v36, %s14094_s11 }
 0x117   : > { %2476 = vrot.lane.b32.xlu1 %v14299_v37, %s14094_s11  ;;  %2714 = vrot.lane.b32.xlu0 %v14302_v38, %s14094_s11 }
 0x11b   : > { %2952 = vrot.lane.b32.xlu1 %v14309_v39, %s14094_s11  ;;  %3190 = vrot.lane.b32.xlu0 %v14312_v40, %s14094_s11 }
 0x11f   : > { %3428 = vrot.lane.b32.xlu1 %v14319_v41, %s14094_s11  ;;  %3666 = vrot.lane.b32.xlu0 %v14322_v42, %s14094_s11 }
 0x123   : > { %1370 = vrot.lane.b32.xlu1 %v14329_v43, %s14094_s11  ;;  %1224 = vrot.lane.b32.xlu0 %v14332_v44, %s14094_s11 }
 0x15d   : > { %v743_v58 = vpop.permute.xlu0 %742  ;;  %v500_v59 = vpop.permute.xlu1 %499 }
 0x15e   : > { %v14356_v61 = vadd.f32 %v743_v58, %v735_v29  ;;  %v14359_v62 = vadd.f32 %v14163_v3, %v500_v59 }
 0x160   : > { %18249 = vst [vmem:[#allocation5_spill] sm:$0xff] %v14356_v61  ;;  %18250 = vst [vmem:[#allocation6_spill] sm:$0xff] %v14359_v62  ;;  %v14363_v63 = vrot.slane %v14356_v61, %v14354_v60  ;;  %v14367_v0 = vrot.slane %v14359_v62, %v14354_v60 }
 0x161   : > { %v1519_v1 = vpop.permute.xlu0 %1518  ;;  %v985_v2 = vpop.permute.xlu1 %984 }
 0x162   : > { %v14371_v6 = vrot.slane %v14363_v63, %v14354_v60  ;;  %v14375_v10 = vrot.slane %v14367_v0, %v14354_v60  ;;  %v14378_v3 = vadd.f32 %v1519_v1, %v14223_v17  ;;  %v14381_v18 = vadd.f32 %v985_v2, %v14232_v20 }
 0x164   : > { %18251 = vst [vmem:[#allocation7_spill] sm:$0xff] %v14378_v3  ;;  %18252 = vst [vmem:[#allocation8_spill] sm:$0xff] %v14381_v18  ;;  %v14387_v21 = vrot.slane %v14378_v3, %v14354_v60  ;;  %v14391_v22 = vrot.slane %v14381_v18, %v14354_v60  ;;  %v883_v26 = vrot.slane %v14371_v6, %v14383_v19 }
 0x165   : > { %v2003_v23 = vpop.permute.xlu0 %2002  ;;  %v1761_v25 = vpop.permute.xlu1 %1760  ;;  %v640_v17 = vrot.slane %v14375_v10, %v14383_v19 }
 0x166   : > { %v14399_v20 = vrot.slane %v14387_v21, %v14354_v60  ;;  %v14402_v27 = vadd.f32 %v2003_v23, %v14206_v15  ;;  %v14406_v29 = vrot.slane %v14391_v22, %v14354_v60  ;;  %v14409_v45 = vadd.f32 %v1761_v25, %v14203_v14  ;;  %928 = vrot.lane.b32.xlu1 %v883_v26, %s14096_s16 }
 0x167   : > { %685 = vrot.lane.b32.xlu0 %v640_v17, %s14096_s16 }
 0x168   : > { %18253 = vst [vmem:[#allocation9_spill] sm:$0xff] %v14402_v27  ;;  %18254 = vst [vmem:[#allocation10_spill] sm:$0xff] %v14409_v45  ;;  %v14415_v48 = vrot.slane %v14402_v27, %v14354_v60  ;;  %v1659_v14 = vrot.slane %v14399_v20, %v14383_v19  ;;  %v14427_v50 = vrot.slane %v14409_v45, %v14354_v60 }
 0x169   : > { %v2479_v46 = vpop.permute.xlu0 %2478  ;;  %v2241_v47 = vpop.permute.xlu1 %2240  ;;  %v1125_v51 = vrot.slane %v14406_v29, %v14383_v19 }
 0x16a   : > { %v14418_v15 = vadd.f32 %v2479_v46, %v14195_v13  ;;  %v14421_v49 = vadd.f32 %v2241_v47, %v14192_v12  ;;  %1704 = vrot.lane.b32.xlu1 %v1659_v14, %s14094_s11  ;;  %v14443_v54 = vrot.slane %v14415_v48, %v14354_v60  ;;  %v14450_v56 = vrot.slane %v14427_v50, %v14354_v60 }
 0x16b   : > { %1170 = vrot.lane.b32.xlu0 %v1125_v51, %s14096_s16 }
 0x16c   : > { %18255 = vst [vmem:[#allocation11_spill] sm:$0xff] %v14418_v15  ;;  %18256 = vst [vmem:[#allocation12_spill] sm:$0xff] %v14421_v49  ;;  %v14434_v13 = vrot.slane %v14418_v15, %v14354_v60  ;;  %v14438_v12 = vrot.slane %v14421_v49, %v14354_v60  ;;  %v1901_v25 = vrot.slane %v14450_v56, %v14383_v19 }
 0x16d   : > { %v2955_v52 = vpop.permute.xlu0 %2954  ;;  %v2717_v53 = vpop.permute.xlu1 %2716 }
 0x16e   : > { %v14446_v55 = vadd.f32 %v2955_v52, %v14256_v28  ;;  %v14453_v57 = vadd.f32 %v2717_v53, %v14178_v8  ;;  %v14461_v2 = vrot.slane %v14434_v13, %v14354_v60  ;;  %v14465_v28 = vrot.slane %v14438_v12, %v14354_v60 }
 0x16f   : > { %v2143_v8 = vrot.slane %v14443_v54, %v14383_v19  ;;  %1946 = vrot.lane.b32.xlu0 %v1901_v25, %s14094_s11 }
 0x170   : > { %18257 = vst [vmem:[#allocation13_spill] sm:$0xff] %v14446_v55  ;;  %18258 = vst [vmem:[#allocation14_spill] sm:$0xff] %v14453_v57  ;;  %v14457_v58 = vrot.slane %v14446_v55, %v14354_v60  ;;  %v14469_v23 = vrot.slane %v14453_v57, %v14354_v60  ;;  %v2619_v51 = vrot.slane %v14461_v2, %v14383_v19 }
 0x171   : > { %v3431_v59 = vpop.permute.xlu0 %3430  ;;  %v3193_v1 = vpop.permute.xlu1 %3192  ;;  %2188 = vrot.lane.b32.xlu1 %v2143_v8, %s14097_s17  ;;  %v2381_v52 = vrot.slane %v14465_v28, %v14383_v19  ;;  %v359_v8 = vld [vmem:[%s14217_s15 + $0x88] sm:$0xff] }
 0x172   : > { %v14477_v26 = vrot.slane %v14457_v58, %v14354_v60  ;;  %v14481_v17 = vadd.f32 %v3431_v59, %v14181_v9  ;;  %v14485_v14 = vrot.slane %v14469_v23, %v14354_v60  ;;  %v14497_v9 = vadd.f32 %v3193_v1, %v14263_v30  ;;  %393 = vst.msk [vmem:[#allocation2 + $0xe1] sm:$0xff] %vm375_vm1, %v359_v8 }
 0x173   : > { %2426 = vrot.lane.b32.xlu0 %v2381_v52, %s14097_s17 }
 0x174   : > { %18259 = vst [vmem:[#allocation15_spill] sm:$0xff] %v14481_v17  ;;  %v14494_v53 = vrot.slane %v14481_v17, %v14354_v60  ;;  %18260 = vst [vmem:[#allocation16_spill] sm:$0xff] %v14497_v9  ;;  %v3095_v11 = vrot.slane %v14477_v26, %v14383_v19  ;;  %v2857_v1 = vrot.slane %v14485_v14, %v14383_v19 }
 0x175   : > { %v1373_v46 = vpop.permute.xlu0 %1372  ;;  %v3669_v47 = vpop.permute.xlu1 %3668  ;;  %2664 = vrot.lane.b32.xlu1 %v2619_v51, %s14098_s18 }
 0x176   : > { %v1377_v59 = vadd.f32 %v1373_v46, %v14220_v16  ;;  %v14503_v7 = vrot.slane %v14494_v53, %v14354_v60  ;;  %v14507_v25 = vadd.f32 %v3669_v47, %v14168_v5  ;;  %v14518_v46 = vrot.slane %v14497_v9, %v14354_v60 }
 0x177   : > { %2902 = vrot.lane.b32.xlu0 %v2857_v1, %s14098_s18 }
 0x178   : > { %18261 = vst [vmem:[#allocation17_spill] sm:$0xff] %v14507_v25  ;;  %v1429_v16 = vcombine.high %v1377_v59, %v1377_v59  ;;  %v1436_v30 = vrot.slane %v1377_v59, %v14354_v60  ;;  %v14524_v8 = vrot.slane %v14507_v25, %v14354_v60  ;;  %v3571_v9 = vrot.slane %v14503_v7, %v14383_v19 }
 0x179   : > { %v1227_v17 = vpop.permute.xlu1 %1226  ;;  %v498_v55 = vpop.permute.xlu0 %497  ;;  %3140 = vrot.lane.b32.xlu1 %v3095_v11, %s14099_s19  ;;  %v14539_v11 = vrot.slane %v14518_v46, %v14354_v60 }
 0x17a   : > { %v1443_v5 = vrot.slane %v1429_v16, %v14354_v60  ;;  %v1444_v47 = vcombine.high %v1436_v30, %v1436_v30  ;;  %v1452_v51 = vrot.slane %v1436_v30, %v14354_v60  ;;  %v1231_v52 = vadd.f32 %v1227_v17, %v14240_v24 }
 0x17b   : > { %v14529_v59 = vadd.f32 %v498_v55, %v14165_v4  ;;  %v14548_v1 = vrot.slane %v14524_v8, %v14354_v60 }
 0x17c   : > { %v1445_v57 = vcombine.high %v1443_v5, %v1443_v5  ;;  %v1459_v30 = vrot.slane %v1443_v5, %v14354_v60  ;;  %v1466_v27 = vrot.slane %v1444_v47, %v14354_v60  ;;  %v1474_v25 = vcombine.high %v1452_v51, %v1452_v51  ;;  %1502 = vst.msk [vmem:[#allocation2 + $0xdd] sm:$0x1] %vm717_vm2, %v1452_v51 }
 0x17d   : > { %18262 = vst [vmem:[#allocation18_spill] sm:$0xff] %v14529_v59  ;;  %v983_v15 = vpop.permute.xlu1 %982  ;;  %v741_v16 = vpop.permute.xlu0 %740  ;;  %v1283_v4 = vcombine.high %v1231_v52, %v1231_v52  ;;  %v1290_v5 = vrot.slane %v1231_v52, %v14354_v60  ;;  %3616 = vrot.lane.b32.xlu1 %v3571_v9, %s14100_s20  ;;  %v14558_v52 = vrot.slane %v14529_v59, %v14354_v60 }
 0x17e   : > { %v1473_v24 = vrot.slane %v1445_v57, %v14354_v60  ;;  %v1475_v55 = vcombine.high %v1459_v30, %v1459_v30  ;;  %v1476_v17 = vcombine.high %v1466_v27, %v1466_v27  ;;  %1503 = vst.msk [vmem:[#allocation2 + $0xf5] sm:$0x1] %vm717_vm2, %v1466_v27  ;;  %1504 = vst.msk [vmem:[#allocation2 + $0x10d] sm:$0x1] %vm717_vm2, %v1474_v25 }
 0x17f   : > { %1506 = vst.msk [vmem:[#allocation2 + $0x13d] sm:$0x1] %vm717_vm2, %v1459_v30  ;;  %v1297_v47 = vrot.slane %v1283_v4, %v14354_v60  ;;  %v1298_v27 = vcombine.high %v1290_v5, %v1290_v5  ;;  %v1306_v25 = vrot.slane %v1290_v5, %v14354_v60  ;;  %v3333_v9 = vrot.slane %v14539_v11, %v14383_v19 }
 0x180   : > { %v1477_v49 = vcombine.high %v1473_v24, %v1473_v24  ;;  %1505 = vst.msk [vmem:[#allocation2 + $0x125] sm:$0x1] %vm717_vm2, %v1476_v17  ;;  %1507 = vst.msk [vmem:[#allocation2 + $0x155] sm:$0x1] %vm717_vm2, %v1473_v24  ;;  %v14570_v3 = vrot.slane %v14558_v52, %v14354_v60 }
 0x181   : > { %v1517_v57 = vpop.permute.xlu1 %1516  ;;  %v1759_v51 = vpop.permute.xlu0 %1758  ;;  %1508 = vst.msk [vmem:[#allocation2 + $0x16d] sm:$0x1] %vm717_vm2, %v1475_v55  ;;  %v1299_v30 = vcombine.high %v1297_v47, %v1297_v47  ;;  %v1313_v4 = vrot.slane %v1297_v47, %v14354_v60  ;;  %v1320_v17 = vrot.slane %v1298_v27, %v14354_v60  ;;  %v1328_v24 = vcombine.high %v1306_v25, %v1306_v25 }
 0x182   : > { %1509 = vst.msk [vmem:[#allocation2 + $0x185] sm:$0x1] %vm717_vm2, %v1477_v49  ;;  %1356 = vst.msk [vmem:[#allocation2 + $0xdc] sm:$0x1] %vm717_vm2, %v1306_v25  ;;  %3378 = vrot.lane.b32.xlu0 %v3333_v9, %s14099_s19  ;;  %v14576_v49 = vadd.f32 %v983_v15, %v14319_v41  ;;  %v14579_v27 = vadd.f32 %v741_v16, %v14322_v42  ;;  %v3809_v25 = vrot.slane %v14548_v1, %v14383_v19 }
 0x183   : > { %v1327_v55 = vrot.slane %v1299_v30, %v14354_v60  ;;  %v1329_v5 = vcombine.high %v1313_v4, %v1313_v4  ;;  %1360 = vst.msk [vmem:[#allocation2 + $0x13c] sm:$0x1] %vm717_vm2, %v1313_v4  ;;  %v1330_v45 = vcombine.high %v1320_v17, %v1320_v17  ;;  %1357 = vst.msk [vmem:[#allocation2 + $0xf4] sm:$0x1] %vm717_vm2, %v1320_v17 }
 0x184   : > { %1358 = vst.msk [vmem:[#allocation2 + $0x10c] sm:$0x1] %vm717_vm2, %v1328_v24  ;;  %18263 = vst [vmem:[#allocation19_spill] sm:$0xff] %v14576_v49  ;;  %v14588_v9 = vrot.slane %v14576_v49, %v14354_v60  ;;  %v14592_v41 = vrot.slane %v14579_v27, %v14354_v60  ;;  %v608_v42 = vrot.slane %v14570_v3, %v14383_v19 }
 0x185   : > { %v2001_v47 = vpop.permute.xlu1 %2000  ;;  %18264 = vst [vmem:[#allocation20_spill] sm:$0xff] %v14579_v27  ;;  %v2239_v30 = vpop.permute.xlu0 %2238  ;;  %v1331_v4 = vcombine.high %v1327_v55, %v1327_v55  ;;  %1361 = vst.msk [vmem:[#allocation2 + $0x154] sm:$0x1] %vm717_vm2, %v1327_v55  ;;  %v14599_v15 = vadd.f32 %v1517_v57, %v14302_v38  ;;  %v14610_v17 = vadd.f32 %v1759_v51, %v14299_v37 }
 0x186   : > { %1362 = vst.msk [vmem:[#allocation2 + $0x16c] sm:$0x1] %vm717_vm2, %v1329_v5  ;;  %1359 = vst.msk [vmem:[#allocation2 + $0x124] sm:$0x1] %vm717_vm2, %v1330_v45  ;;  %3854 = vrot.lane.b32.xlu0 %v3809_v25, %s14100_s20  ;;  %v14603_v45 = vrot.slane %v14588_v9, %v14354_v60  ;;  %v14607_v16 = vrot.slane %v14592_v41, %v14354_v60  ;;  %v14618_v38 = vadd.f32 %v2001_v47, %v14292_v36 }
 0x187   : > { %1363 = vst.msk [vmem:[#allocation2 + $0x184] sm:$0x1] %vm717_vm2, %v1331_v4  ;;  %18265 = vst [vmem:[#allocation21_spill] sm:$0xff] %v14599_v15  ;;  %v14615_v5 = vrot.slane %v14599_v15, %v14354_v60  ;;  %v14622_v57 = vrot.slane %v14610_v17, %v14354_v60  ;;  %v14625_v25 = vadd.f32 %v2239_v30, %v14289_v35 }
 0x188   : > { %18266 = vst [vmem:[#allocation22_spill] sm:$0xff] %v14610_v17  ;;  %18267 = vst [vmem:[#allocation23_spill] sm:$0xff] %v14618_v38  ;;  %v1093_v37 = vrot.slane %v14603_v45, %v14383_v19  ;;  %v851_v51 = vrot.slane %v14607_v16, %v14383_v19  ;;  %v14633_v4 = vrot.slane %v14618_v38, %v14354_v60 }
 0x189   : > { %v2477_v24 = vpop.permute.xlu1 %2476  ;;  %v2715_v55 = vpop.permute.xlu0 %2714  ;;  %18268 = vst [vmem:[#allocation24_spill] sm:$0xff] %v14625_v25  ;;  %v14639_v35 = vrot.slane %v14615_v5, %v14354_v60  ;;  %v14643_v30 = vrot.slane %v14622_v57, %v14354_v60 }
 0x18a   : > { %669 = vrot.lane.b32.xlu0 %v608_v42, %s14096_s16  ;;  %912 = vrot.lane.b32.xlu1 %v851_v51, %s14096_s16  ;;  %v14647_v42 = vrot.slane %v14625_v25, %v14354_v60  ;;  %v14650_v61 = vadd.f32 %v2477_v24, %v14282_v34  ;;  %v343_v51 = vld [vmem:[%s14217_s15 + $0x8] sm:$0xff]  ;;  %v14658_v18 = vrot.slane %v14633_v4, %v14354_v60 }
 0x18b   : > { %18269 = vst [vmem:[#allocation25_spill] sm:$0xff] %v14639_v35  ;;  %18270 = vst [vmem:[#allocation26_spill] sm:$0xff] %v14643_v30  ;;  %v1627_v25 = vrot.slane %v14639_v35, %v14383_v19  ;;  %v1869_v34 = vrot.slane %v14643_v30, %v14383_v19 }
 0x18c   : > { %18271 = vst [vmem:[#allocation27_spill] sm:$0xff] %v14650_v61  ;;  %18273 = vst [vmem:[#allocation29_spill] sm:$0xff] %v14658_v18  ;;  %v14663_v62 = vrot.slane %v14647_v42, %v14354_v60  ;;  %v2111_v38 = vrot.slane %v14658_v18, %v14383_v19 }
 0x18d   : > { %v2953_v36 = vpop.permute.xlu1 %2952  ;;  %v3191_v47 = vpop.permute.xlu0 %3190  ;;  %377 = vst.msk [vmem:[#allocation2 + $0x21] sm:$0xff] %vm375_vm1, %v343_v51 }
 0x18e   : > { %1154 = vrot.lane.b32.xlu0 %v1093_v37, %s14096_s16  ;;  %v14653_v37 = vadd.f32 %v2715_v55, %v14279_v33  ;;  %18274 = vst [vmem:[#allocation30_spill] sm:$0xff] %v14663_v62  ;;  %v4172_v33 = vld [vmem:[%s18096_s3] sm:$0xf]  ;;  %v14674_v55 = vrot.slane %v14650_v61, %v14354_v60  ;;  %1688 = vrot.lane.b32.xlu1 %v1627_v25, %s14094_s11 }
 0x18f   : > { %12593 = vmatprep.subr.msk.mxu1 %vm4269_vm3, %v4172_v33  ;;  %v14686_v49 = vadd.f32 %v2953_v36, %v14329_v43  ;;  %v2349_v61 = vrot.slane %v14663_v62, %v14383_v19 }
 0x190   : > { %18272 = vst [vmem:[#allocation28_spill] sm:$0xff] %v14653_v37  ;;  %v14678_v51 = vrot.slane %v14653_v37, %v14354_v60  ;;  %12594 = vmatpush3.msk.msra.mxu1 %vm4269_vm3, %v4172_v33  ;;  %v14693_v37 = vrot.slane %v14674_v55, %v14354_v60 }
 0x191   : > { %v3429_v24 = vpop.permute.xlu1 %3428  ;;  %v3667_v17 = vpop.permute.xlu0 %3666  ;;  %18275 = vst [vmem:[#allocation31_spill] sm:$0xff] %v14686_v49  ;;  %v14709_v15 = vrot.slane %v14686_v49, %v14354_v60 }
 0x192   : > { %1930 = vrot.lane.b32.xlu0 %v1869_v34, %s14094_s11  ;;  %18276 = vst [vmem:[#allocation32_spill] sm:$0xff] %v14693_v37  ;;  %v14697_v25 = vrot.slane %v14678_v51, %v14354_v60  ;;  %v14700_v34 = vadd.f32 %v3191_v47, %v14332_v44  ;;  %2172 = vrot.lane.b32.xlu1 %v2111_v38, %s14097_s17 }
 0x193   : > { %v14705_v36 = vadd.f32 %v3429_v24, %v14269_v31  ;;  %v14712_v59 = vadd.f32 %v3667_v17, %v14272_v32  ;;  %v2587_v44 = vrot.slane %v14693_v37, %v14383_v19 }
 0x194   : > { %18277 = vst [vmem:[#allocation33_spill] sm:$0xff] %v14697_v25  ;;  %18278 = vst [vmem:[#allocation34_spill] sm:$0xff] %v14700_v34  ;;  %v2825_v38 = vrot.slane %v14697_v25, %v14383_v19  ;;  %v14721_v31 = vrot.slane %v14700_v34, %v14354_v60 }
 0x195   : > { %v1371_v43 = vpop.permute.xlu1 %1370  ;;  %18279 = vst [vmem:[#allocation35_spill] sm:$0xff] %v14705_v36  ;;  %v1225_v33 = vpop.permute.xlu0 %1224  ;;  %18280 = vst [vmem:[#allocation36_spill] sm:$0xff] %v14712_v59  ;;  %v14726_v24 = vrot.slane %v14705_v36, %v14354_v60  ;;  %v14730_v32 = vrot.slane %v14712_v59, %v14354_v60 }
 0x196   : > { %2410 = vrot.lane.b32.xlu0 %v2349_v61, %s14097_s17  ;;  %v1376_v61 = vadd.f32 %v1371_v43, %v14309_v39  ;;  %v1230_v47 = vadd.f32 %v1225_v33, %v14312_v40  ;;  %2648 = vrot.lane.b32.xlu1 %v2587_v44, %s14098_s18  ;;  %v18127_v43 = vmov 0.0   ;;  %v814_v40 = vcombine.high %v14363_v63, %v14363_v63 }
 0x197   : > { %297 = vst.msk [vmem:[#allocation2] sm:$0xff] %vm296_vm4, %v18127_v43  ;;  %298 = vst.msk [vmem:[#allocation2 + $0x8] sm:$0xff] %vm296_vm4, %v18127_v43  ;;  %v571_v33 = vcombine.high %v14367_v0, %v14367_v0  ;;  %v14749_v44 = vrot.slane %v14709_v15, %v14354_v60  ;;  %v14760_v63 = vrot.slane %v14726_v24, %v14354_v60 }
 0x198   : > { %v1380_v17 = vcombine.high %v1376_v61, %v1376_v61  ;;  %v1387_v39 = vrot.slane %v1376_v61, %v14354_v60  ;;  %302 = vst.msk [vmem:[#allocation2 + $0x198] sm:$0xff] %vm296_vm4, %v18127_v43  ;;  %303 = vst.msk [vmem:[#allocation2 + $0x1a0] sm:$0xff] %vm296_vm4, %v18127_v43  ;;  %v1234_v34 = vcombine.high %v1230_v47, %v1230_v47 }
 0x199   : > { %v1241_v36 = vrot.slane %v1230_v47, %v14354_v60  ;;  %v14756_v43 = vrot.slane %v14721_v31, %v14354_v60  ;;  %v14764_v0 = vrot.slane %v14730_v32, %v14354_v60  ;;  %v3063_v18 = vrot.slane %v14749_v44, %v14383_v19 }
 0x19a   : > { %2886 = vrot.lane.b32.xlu0 %v2825_v38, %s14098_s18  ;;  %v1394_v38 = vrot.slane %v1380_v17, %v14354_v60  ;;  %v1395_v61 = vcombine.high %v1387_v39, %v1387_v39  ;;  %v1403_v59 = vrot.slane %v1387_v39, %v14354_v60  ;;  %v1248_v47 = vrot.slane %v1234_v34, %v14354_v60 }
 0x19b   : > { %v1249_v37 = vcombine.high %v1241_v36, %v1241_v36  ;;  %v1257_v62 = vrot.slane %v1241_v36, %v14354_v60  ;;  %3124 = vrot.lane.b32.xlu1 %v3063_v18, %s14099_s19 }
 0x19c   : > { %v1396_v49 = vcombine.high %v1394_v38, %v1394_v38  ;;  %v1410_v17 = vrot.slane %v1394_v38, %v14354_v60  ;;  %v1417_v39 = vrot.slane %v1395_v61, %v14354_v60  ;;  %v1425_v27 = vcombine.high %v1403_v59, %v1403_v59  ;;  %1494 = vst.msk [vmem:[#allocation2 + $0x1d] sm:$0x1] %vm717_vm2, %v1403_v59 }
 0x19d   : > { %v1250_v38 = vcombine.high %v1248_v47, %v1248_v47  ;;  %v1264_v59 = vrot.slane %v1248_v47, %v14354_v60  ;;  %v1279_v36 = vcombine.high %v1257_v62, %v1257_v62  ;;  %1348 = vst.msk [vmem:[#allocation2 + $0x1c] sm:$0x1] %vm717_vm2, %v1257_v62  ;;  %v3301_v61 = vrot.slane %v14756_v43, %v14383_v19 }
 0x19e   : > { %v1424_v25 = vrot.slane %v1396_v49, %v14354_v60  ;;  %v1426_v30 = vcombine.high %v1410_v17, %v1410_v17  ;;  %v1427_v35 = vcombine.high %v1417_v39, %v1417_v39  ;;  %1495 = vst.msk [vmem:[#allocation2 + $0x35] sm:$0x1] %vm717_vm2, %v1417_v39  ;;  %1496 = vst.msk [vmem:[#allocation2 + $0x4d] sm:$0x1] %vm717_vm2, %v1425_v27 }
 0x19f   : > { %1498 = vst.msk [vmem:[#allocation2 + $0x7d] sm:$0x1] %vm717_vm2, %v1410_v17  ;;  %v1271_v49 = vrot.slane %v1249_v37, %v14354_v60  ;;  %v1278_v27 = vrot.slane %v1250_v38, %v14354_v60  ;;  %v1280_v17 = vcombine.high %v1264_v59, %v1264_v59  ;;  %1352 = vst.msk [vmem:[#allocation2 + $0x7c] sm:$0x1] %vm717_vm2, %v1264_v59  ;;  %3362 = vrot.lane.b32.xlu0 %v3301_v61, %s14099_s19 }
 0x1a0   : > { %v1428_v34 = vcombine.high %v1424_v25, %v1424_v25  ;;  %1499 = vst.msk [vmem:[#allocation2 + $0x95] sm:$0x1] %vm717_vm2, %v1424_v25  ;;  %1497 = vst.msk [vmem:[#allocation2 + $0x65] sm:$0x1] %vm717_vm2, %v1427_v35  ;;  %v3539_v37 = vrot.slane %v14760_v63, %v14383_v19  ;;  %v1056_v62 = vcombine.high %v14391_v22, %v14391_v22 }
 0x1a1   : > { %1500 = vst.msk [vmem:[#allocation2 + $0xad] sm:$0x1] %vm717_vm2, %v1426_v30  ;;  %v1281_v18 = vcombine.high %v1271_v49, %v1271_v49  ;;  %1349 = vst.msk [vmem:[#allocation2 + $0x34] sm:$0x1] %vm717_vm2, %v1271_v49  ;;  %v3777_v35 = vrot.slane %v14764_v0, %v14383_v19  ;;  %v14799_v30 = vrot.slane %v571_v33, %v14354_v60 }
 0x1a2   : > { %1501 = vst.msk [vmem:[#allocation2 + $0xc5] sm:$0x1] %vm717_vm2, %v1428_v34  ;;  %1350 = vst.msk [vmem:[#allocation2 + $0x4c] sm:$0x1] %vm717_vm2, %v1279_v36  ;;  %v1282_v25 = vcombine.high %v1278_v27, %v1278_v27  ;;  %v1590_v22 = vcombine.high %v14387_v21, %v14387_v21  ;;  %3600 = vrot.lane.b32.xlu1 %v3539_v37, %s14100_s20  ;;  %v14808_v39 = vrot.slane %v814_v40, %v14354_v60  ;;  %v361_v21 = vld [vmem:[%s14217_s15 + $0x98] sm:$0xff] }
 0x1a3   : > { %1353 = vst.msk [vmem:[#allocation2 + $0x94] sm:$0x1] %vm717_vm2, %v1278_v27  ;;  %1354 = vst.msk [vmem:[#allocation2 + $0xac] sm:$0x1] %vm717_vm2, %v1280_v17  ;;  %v1832_v33 = vcombine.high %v14427_v50, %v14427_v50  ;;  %3838 = vrot.lane.b32.xlu0 %v3777_v35, %s14100_s20  ;;  %v644_v47 = vrot.slane %v14799_v30, %v14383_v19  ;;  %v14817_v38 = vrot.slane %v1056_v62, %v14354_v60 }
 0x1a4   : > { %1351 = vst.msk [vmem:[#allocation2 + $0x64] sm:$0x1] %vm717_vm2, %v1281_v18  ;;  %1355 = vst.msk [vmem:[#allocation2 + $0xc4] sm:$0x1] %vm717_vm2, %v1282_v25  ;;  %v2074_v40 = vcombine.high %v14415_v48, %v14415_v48  ;;  %v887_v59 = vrot.slane %v14808_v39, %v14383_v19  ;;  %v14827_v50 = vrot.slane %v1590_v22, %v14354_v60 }
 0x1a5   : > { %395 = vst.msk [vmem:[#allocation2 + $0xf9] sm:$0xff] %vm375_vm1, %v361_v21  ;;  %v2312_v34 = vcombine.high %v14438_v12, %v14438_v12  ;;  %v1129_v49 = vrot.slane %v14817_v38, %v14383_v19  ;;  %v14835_v36 = vrot.slane %v1832_v33, %v14354_v60  ;;  %v2550_v48 = vcombine.high %v14434_v13, %v14434_v13 }
 0x1a6   : > { %687 = vrot.lane.b32.xlu1 %v644_v47, %s14096_s16  ;;  %v1663_v61 = vrot.slane %v14827_v50, %v14383_v19  ;;  %v14843_v27 = vrot.slane %v2074_v40, %v14354_v60  ;;  %v2788_v12 = vcombine.high %v14469_v23, %v14469_v23  ;;  %v3026_v13 = vcombine.high %v14457_v58, %v14457_v58 }
 0x1a7   : > { %930 = vrot.lane.b32.xlu0 %v887_v59, %s14096_s16  ;;  %v1905_v17 = vrot.slane %v14835_v36, %v14383_v19  ;;  %v14851_v37 = vrot.slane %v2312_v34, %v14354_v60  ;;  %v14859_v18 = vrot.slane %v2550_v48, %v14354_v60  ;;  %v3264_v23 = vcombine.high %v14518_v46, %v14518_v46 }
 0x1a8   : > { %v2147_v62 = vrot.slane %v14843_v27, %v14383_v19  ;;  %v14867_v25 = vrot.slane %v2788_v12, %v14354_v60  ;;  %v3502_v58 = vcombine.high %v14494_v53, %v14494_v53  ;;  %v14875_v33 = vrot.slane %v3026_v13, %v14354_v60  ;;  %v363_v12 = vld [vmem:[%s14217_s15 + $0xa8] sm:$0xff] }
 0x1a9   : > { %v2385_v35 = vrot.slane %v14851_v37, %v14383_v19  ;;  %v2623_v22 = vrot.slane %v14859_v18, %v14383_v19  ;;  %v3740_v46 = vcombine.high %v14524_v8, %v14524_v8  ;;  %v14883_v21 = vrot.slane %v3264_v23, %v14354_v60  ;;  %397 = vst.msk [vmem:[#allocation2 + $0x111] sm:$0xff] %vm375_vm1, %v363_v12 }
 0x1aa   : > { %1172 = vrot.lane.b32.xlu1 %v1129_v49, %s14096_s16  ;;  %v2861_v47 = vrot.slane %v14867_v25, %v14383_v19  ;;  %v3099_v53 = vrot.slane %v14875_v33, %v14383_v19  ;;  %v14889_v40 = vrot.slane %v3502_v58, %v14354_v60  ;;  %v601_v49 = vcombine.high %v14375_v10, %v14375_v10 }
 0x1ab   : > { %1706 = vrot.lane.b32.xlu0 %v1663_v61, %s14094_s11  ;;  %v3337_v8 = vrot.slane %v14883_v21, %v14383_v19  ;;  %v14895_v59 = vrot.slane %v3740_v46, %v14354_v60  ;;  %v844_v61 = vcombine.high %v14371_v6, %v14371_v6  ;;  %v1086_v13 = vcombine.high %v14406_v29, %v14406_v29 }
 0x1ac   : > { %v3575_v34 = vrot.slane %v14889_v40, %v14383_v19  ;;  %v18281_v10 = vmov 0.0   ;;  %v1620_v29 = vcombine.high %v14399_v20, %v14399_v20  ;;  %v1862_v23 = vcombine.high %v14450_v56, %v14450_v56 }
 0x1ad   : > { %v3813_v48 = vrot.slane %v14895_v59, %v14383_v19  ;;  %306 = vst.msk [vmem:[#allocation2] sm:$0x1] %vm305_vm5, %v18281_v10  ;;  %307 = vst.msk [vmem:[#allocation2 + $0x18] sm:$0x1] %vm305_vm5, %v18281_v10  ;;  %v891_v6 = vrot.slane %v844_v61, %v14383_v19  ;;  %v2104_v58 = vcombine.high %v14443_v54, %v14443_v54 }
 0x1ae   : > { %1948 = vrot.lane.b32.xlu1 %v1905_v17, %s14094_s11  ;;  %v648_v17 = vrot.slane %v601_v49, %v14383_v19  ;;  %308 = vst.msk [vmem:[#allocation2 + $0x30] sm:$0x1] %vm305_vm5, %v18281_v10  ;;  %309 = vst.msk [vmem:[#allocation2 + $0x48] sm:$0x1] %vm305_vm5, %v18281_v10  ;;  %v1909_v46 = vrot.slane %v1862_v23, %v14383_v19  ;;  %v2342_v20 = vcombine.high %v14465_v28, %v14465_v28 }
 0x1af   : > { %2190 = vrot.lane.b32.xlu0 %v2147_v62, %s14097_s17  ;;  %310 = vst.msk [vmem:[#allocation2 + $0x60] sm:$0x1] %vm305_vm5, %v18281_v10  ;;  %311 = vst.msk [vmem:[#allocation2 + $0x78] sm:$0x1] %vm305_vm5, %v18281_v10  ;;  %v1133_v62 = vrot.slane %v1086_v13, %v14383_v19  ;;  %v2151_v56 = vrot.slane %v2104_v58, %v14383_v19  ;;  %v3294_v49 = vcombine.high %v14539_v11, %v14539_v11 }
 0x1b0   : > { %312 = vst.msk [vmem:[#allocation2 + $0x90] sm:$0x1] %vm305_vm5, %v18281_v10  ;;  %313 = vst.msk [vmem:[#allocation2 + $0xa8] sm:$0x1] %vm305_vm5, %v18281_v10  ;;  %v2389_v54 = vrot.slane %v2342_v20, %v14383_v19  ;;  %v3770_v13 = vcombine.high %v14548_v1, %v14548_v1  ;;  %v1541_v1 = vcombine.high %v14615_v5, %v14615_v5 }
 0x1b1   : > { %314 = vst.msk [vmem:[#allocation2 + $0xc0] sm:$0x1] %vm305_vm5, %v18281_v10  ;;  %315 = vst.msk [vmem:[#allocation2 + $0xd8] sm:$0x1] %vm305_vm5, %v18281_v10  ;;  %v3341_v11 = vrot.slane %v3294_v49, %v14383_v19  ;;  %v1783_v23 = vcombine.high %v14622_v57, %v14622_v57  ;;  %v2025_v5 = vcombine.high %v14633_v4, %v14633_v4 }
 0x1b2   : > { %2428 = vrot.lane.b32.xlu1 %v2385_v35, %s14097_s17  ;;  %316 = vst.msk [vmem:[#allocation2 + $0xf0] sm:$0x1] %vm305_vm5, %v18281_v10  ;;  %317 = vst.msk [vmem:[#allocation2 + $0x108] sm:$0x1] %vm305_vm5, %v18281_v10  ;;  %v1667_v35 = vrot.slane %v1620_v29, %v14383_v19  ;;  %v15061_v57 = vrot.slane %v1541_v1, %v14354_v60 }
 0x1b3   : > { %2666 = vrot.lane.b32.xlu0 %v2623_v22, %s14098_s18  ;;  %318 = vst.msk [vmem:[#allocation2 + $0x120] sm:$0x1] %vm305_vm5, %v18281_v10  ;;  %319 = vst.msk [vmem:[#allocation2 + $0x138] sm:$0x1] %vm305_vm5, %v18281_v10  ;;  %v4141_v22 = vld [vmem:[#allocation2 + $0x8] sm:$0xff] }
 0x1b4   : > { %320 = vst.msk [vmem:[#allocation2 + $0x150] sm:$0x1] %vm305_vm5, %v18281_v10  ;;  %321 = vst.msk [vmem:[#allocation2 + $0x168] sm:$0x1] %vm305_vm5, %v18281_v10 }
 0x1b5   : > { %322 = vst.msk [vmem:[#allocation2 + $0x180] sm:$0x1] %vm305_vm5, %v18281_v10  ;;  %325 = vst.msk [vmem:[#allocation2 + $0x29] sm:$0x1] %vm305_vm5, %v18281_v10 }
 0x1b6   : > { %2904 = vrot.lane.b32.xlu1 %v2861_v47, %s14098_s18  ;;  %326 = vst.msk [vmem:[#allocation2 + $0x41] sm:$0x1] %vm305_vm5, %v18281_v10  ;;  %327 = vst.msk [vmem:[#allocation2 + $0x59] sm:$0x1] %vm305_vm5, %v18281_v10  ;;  %v4140_v47 = vld [vmem:[#allocation2] sm:$0xff] }
 0x1b7   : > { %3142 = vrot.lane.b32.xlu0 %v3099_v53, %s14099_s19  ;;  %328 = vst.msk [vmem:[#allocation2 + $0x71] sm:$0x1] %vm305_vm5, %v18281_v10  ;;  %329 = vst.msk [vmem:[#allocation2 + $0x89] sm:$0x1] %vm305_vm5, %v18281_v10  ;;  %12595 = vmatprep.mubr.msk.f32.mxu1 %vm296_vm4, %v4140_v47  ;;  %v2580_v53 = vcombine.high %v14461_v2, %v14461_v2  ;;  %v2263_v47 = vcombine.high %v14647_v42, %v14647_v42 }
 0x1b8   : > { %330 = vst.msk [vmem:[#allocation2 + $0xa1] sm:$0x1] %vm305_vm5, %v18281_v10  ;;  %331 = vst.msk [vmem:[#allocation2 + $0xb9] sm:$0x1] %vm305_vm5, %v18281_v10  ;;  %12596 = vmatmul.mubr.msk.f32.vlgmr.msra.gmra.mrb[0].mxu1 %vm296_vm4, %v4141_v22  ;;  %v345_v22 = vld [vmem:[%s14217_s15 + $0x18] sm:$0xff]  ;;  %v1631_v42 = vrot.slane %v15061_v57, %v14383_v19 }
 0x1b9   : > { %332 = vst.msk [vmem:[#allocation2 + $0xd1] sm:$0x1] %vm305_vm5, %v18281_v10  ;;  %333 = vst.msk [vmem:[#allocation2 + $0xe9] sm:$0x1] %vm305_vm5, %v18281_v10  ;;  %v2627_v28 = vrot.slane %v2580_v53, %v14383_v19  ;;  %v15069_v53 = vrot.slane %v1783_v23, %v14354_v60  ;;  %v15087_v49 = vrot.slane %v2263_v47, %v14354_v60  ;;  %v347_v47 = vld [vmem:[%s14217_s15 + $0x28] sm:$0xff] }
 0x1ba   : > { %3380 = vrot.lane.b32.xlu1 %v3337_v8, %s14099_s19  ;;  %334 = vst.msk [vmem:[#allocation2 + $0x101] sm:$0x1] %vm305_vm5, %v18281_v10  ;;  %335 = vst.msk [vmem:[#allocation2 + $0x119] sm:$0x1] %vm305_vm5, %v18281_v10  ;;  %v2818_v8 = vcombine.high %v14485_v14, %v14485_v14  ;;  %v522_v14 = vcombine.high %v14558_v52, %v14558_v52 }
 0x1bb   : > { %3618 = vrot.lane.b32.xlu0 %v3575_v34, %s14100_s20  ;;  %336 = vst.msk [vmem:[#allocation2 + $0x131] sm:$0x1] %vm305_vm5, %v18281_v10  ;;  %337 = vst.msk [vmem:[#allocation2 + $0x149] sm:$0x1] %vm305_vm5, %v18281_v10  ;;  %v3056_v34 = vcombine.high %v14477_v26, %v14477_v26  ;;  %v3532_v26 = vcombine.high %v14503_v7, %v14503_v7 }
 0x1bc   : > { %338 = vst.msk [vmem:[#allocation2 + $0x161] sm:$0x1] %vm305_vm5, %v18281_v10  ;;  %339 = vst.msk [vmem:[#allocation2 + $0x179] sm:$0x1] %vm305_vm5, %v18281_v10  ;;  %v2865_v2 = vrot.slane %v2818_v8, %v14383_v19  ;;  %v15034_v29 = vrot.slane %v522_v14, %v14354_v60  ;;  %v15079_v8 = vrot.slane %v2025_v5, %v14354_v60 }
 0x1bd   : > { %340 = vst.msk [vmem:[#allocation2 + $0x191] sm:$0x1] %vm305_vm5, %v18281_v10  ;;  %323 = vst.msk [vmem:[#allocation2 + $0x198] sm:$0x1] %vm305_vm5, %v18281_v10  ;;  %v3103_v12 = vrot.slane %v3056_v34, %v14383_v19  ;;  %v3579_v7 = vrot.slane %v3532_v26, %v14383_v19  ;;  %v2739_v34 = vcombine.high %v14678_v51, %v14678_v51 }
 0x1be   : > { %3856 = vrot.lane.b32.xlu1 %v3813_v48, %s14100_s20  ;;  %379 = vst.msk [vmem:[#allocation2 + $0x39] sm:$0xff] %vm375_vm1, %v345_v22  ;;  %v2115_v51 = vrot.slane %v15079_v8, %v14383_v19  ;;  %v2353_v26 = vrot.slane %v15087_v49, %v14383_v19  ;;  %v552_v22 = vcombine.high %v14570_v3, %v14570_v3  ;;  %381 = vst.msk [vmem:[#allocation2 + $0x51] sm:$0xff] %vm375_vm1, %v347_v47 }
 0x1bf   : > { %689 = vrot.lane.b32.xlu0 %v648_v17, %s14096_s16  ;;  %v765_v17 = vcombine.high %v14592_v41, %v14592_v41  ;;  %300 = vst.msk [vmem:[#allocation2 + $0x10] sm:$0x3] %vm299_vm6, %v18281_v10  ;;  %304 = vst.msk [vmem:[#allocation2 + $0x1a8] sm:$0x3] %vm299_vm6, %v18281_v10 }
 0x1c0   : > { %324 = vst.msk [vmem:[#allocation2 + $0x11] sm:$0x1] %vm305_vm5, %v18281_v10  ;;  %341 = vst.msk [vmem:[#allocation2 + $0x1a9] sm:$0x1] %vm305_vm5, %v18281_v10 }
 0x1c2   : > { %932 = vrot.lane.b32.xlu1 %v891_v6, %s14096_s16  ;;  %v1007_v6 = vcombine.high %v14588_v9, %v14588_v9  ;;  %v15043_v9 = vrot.slane %v765_v17, %v14354_v60  ;;  %v15105_v17 = vrot.slane %v2739_v34, %v14354_v60 }
 0x1c3   : > { %1174 = vrot.lane.b32.xlu0 %v1133_v62, %s14096_s16  ;;  %v3817_v62 = vrot.slane %v3770_v13, %v14383_v19 }
 0x1c4   : > { %v15051_v58 = vrot.slane %v1007_v6, %v14354_v60  ;;  %v3691_v6 = vcombine.high %v14730_v32, %v14730_v32 }
 0x1c6   : > { %1708 = vrot.lane.b32.xlu1 %v1667_v35, %s14094_s11  ;;  %v612_v35 = vrot.slane %v15034_v29, %v14383_v19  ;;  %v15136_v23 = vrot.slane %v3691_v6, %v14354_v60  ;;  %v18287_v6 = vld [vmem:[#allocation33_spill] sm:$0xff] }
 0x1c7   : > { %1950 = vrot.lane.b32.xlu0 %v1909_v46, %s14094_s11  ;;  %v855_v46 = vrot.slane %v15043_v9, %v14383_v19 }
 0x1ca   : > { %2192 = vrot.lane.b32.xlu1 %v2151_v56, %s14097_s17  ;;  %v1097_v56 = vrot.slane %v15051_v58, %v14383_v19 }
 0x1cb   : > { %2430 = vrot.lane.b32.xlu0 %v2389_v54, %s14097_s17  ;;  %v2501_v54 = vcombine.high %v14674_v55, %v14674_v55 }
 0x1ce   : > { %2668 = vrot.lane.b32.xlu1 %v2627_v28, %s14098_s18 }
 0x1cf   : > { %2906 = vrot.lane.b32.xlu0 %v2865_v2, %s14098_s18  ;;  %v1873_v2 = vrot.slane %v15069_v53, %v14383_v19 }
 0x1d2   : > { %3144 = vrot.lane.b32.xlu1 %v3103_v12, %s14099_s19  ;;  %v3215_v12 = vcombine.high %v14721_v31, %v14721_v31 }
 0x1d3   : > { %3382 = vrot.lane.b32.xlu0 %v3341_v11, %s14099_s19  ;;  %v3453_v11 = vcombine.high %v14726_v24, %v14726_v24 }
 0x1d5   : > { %v15130_v1 = vrot.slane %v3453_v11, %v14354_v60  ;;  %v18286_v11 = vld [vmem:[#allocation32_spill] sm:$0xff] }
 0x1d6   : > { %3620 = vrot.lane.b32.xlu1 %v3579_v7, %s14100_s20  ;;  %v2829_v7 = vrot.slane %v15105_v17, %v14383_v19 }
 0x1d7   : > { %3858 = vrot.lane.b32.xlu0 %v3817_v62, %s14100_s20 }
 0x1d8   : > { %v929_v48 = vpop.permute.xlu1 %928 }
 0x1d9   : > { %968 = vst.msk [vmem:[#allocation2 + $0xda] sm:$0x1] %vm717_vm2, %v929_v48  ;;  %v686_v61 = vpop.permute.xlu0 %685  ;;  %v2977_v48 = vcombine.high %v14709_v15, %v14709_v15 }
 0x1da   : > { %726 = vst.msk [vmem:[#allocation2 + $0xd9] sm:$0x1] %vm717_vm2, %v686_v61  ;;  %671 = vrot.lane.b32.xlu1 %v612_v35, %s14096_s16  ;;  %v15097_v61 = vrot.slane %v2501_v54, %v14354_v60  ;;  %v3543_v35 = vrot.slane %v15130_v1, %v14383_v19 }
 0x1db   : > { %914 = vrot.lane.b32.xlu0 %v855_v46, %s14096_s16  ;;  %v15115_v13 = vrot.slane %v2977_v48, %v14354_v60  ;;  %v3781_v46 = vrot.slane %v15136_v23, %v14383_v19  ;;  %v18284_v48 = vld [vmem:[#allocation29_spill] sm:$0xff] }
 0x1dc   : > { %v1705_v52 = vpop.permute.xlu1 %1704  ;;  %v2591_v31 = vrot.slane %v15097_v61, %v14383_v19 }
 0x1dd   : > { %1744 = vst.msk [vmem:[#allocation2 + $0xde] sm:$0x1] %vm717_vm2, %v1705_v52  ;;  %v1171_v41 = vpop.permute.xlu0 %1170  ;;  %v3067_v24 = vrot.slane %v15115_v13, %v14383_v19 }
 0x1de   : > { %1210 = vst.msk [vmem:[#allocation2 + $0xdb] sm:$0x1] %vm717_vm2, %v1171_v41  ;;  %1156 = vrot.lane.b32.xlu1 %v1097_v56, %s14096_s16  ;;  %v15123_v41 = vrot.slane %v3215_v12, %v14354_v60  ;;  %v1037_v56 = vcombine.high %v14603_v45, %v14603_v45  ;;  %v18285_v12 = vld [vmem:[#allocation30_spill] sm:$0xff] }
 0x1df   : > { %1690 = vrot.lane.b32.xlu0 %v1631_v42, %s14094_s11  ;;  %v18282_v42 = vld [vmem:[#allocation25_spill] sm:$0xff] }
 0x1e0   : > { %v3305_v62 = vrot.slane %v15123_v41, %v14383_v19  ;;  %v1101_v45 = vrot.slane %v1037_v56, %v14383_v19  ;;  %v3245_v56 = vcombine.high %v14756_v43, %v14756_v43 }
 0x1e1   : > { %v1947_v4 = vpop.permute.xlu0 %1946 }
 0x1e2   : > { %1986 = vst.msk [vmem:[#allocation2 + $0xdf] sm:$0x1] %vm717_vm2, %v1947_v4  ;;  %1932 = vrot.lane.b32.xlu1 %v1873_v2, %s14094_s11  ;;  %v616_v4 = vrot.slane %v552_v22, %v14383_v19 }
 0x1e3   : > { %v2189_v20 = vpop.permute.xlu1 %2188  ;;  %2174 = vrot.lane.b32.xlu0 %v2115_v51, %s14097_s17  ;;  %v2055_v51 = vcombine.high %v18284_v48, %v18284_v48  ;;  %v3309_v48 = vrot.slane %v3245_v56, %v14383_v19  ;;  %v18295_v56 = vld [vmem:[#allocation24_spill] sm:$0xff] }
 0x1e4   : > { %2228 = vst.msk [vmem:[#allocation2 + $0xe0] sm:$0x1] %vm717_vm2, %v2189_v20  ;;  %v795_v20 = vcombine.high %v14607_v16, %v14607_v16  ;;  %v1571_v16 = vcombine.high %v18282_v42, %v18282_v42 }
 0x1e5   : > { %v2427_v55 = vpop.permute.xlu0 %2426 }
 0x1e6   : > { %2466 = vst.msk [vmem:[#allocation2 + $0xe1] sm:$0x1] %vm717_vm2, %v2427_v55  ;;  %2412 = vrot.lane.b32.xlu1 %v2353_v26, %s14097_s17  ;;  %v859_v54 = vrot.slane %v795_v20, %v14383_v19  ;;  %v2293_v26 = vcombine.high %v18285_v12, %v18285_v12  ;;  %v18289_v20 = vld [vmem:[#allocation18_spill] sm:$0xff]  ;;  %v18292_v12 = vld [vmem:[#allocation23_spill] sm:$0xff] }
 0x1e7   : > { %v2665_v28 = vpop.permute.xlu1 %2664  ;;  %2650 = vrot.lane.b32.xlu0 %v2591_v31, %s14098_s18  ;;  %v2531_v31 = vcombine.high %v18286_v11, %v18286_v11  ;;  %v507_v47 = vcombine.high %v18289_v20, %v18289_v20 }
 0x1e8   : > { %2704 = vst.msk [vmem:[#allocation2 + $0xe2] sm:$0x1] %vm717_vm2, %v2665_v28  ;;  %v18283_v28 = vld [vmem:[#allocation26_spill] sm:$0xff] }
 0x1e9   : > { %v2903_v15 = vpop.permute.xlu0 %2902  ;;  %v1813_v34 = vcombine.high %v18283_v28, %v18283_v28  ;;  %v3483_v28 = vcombine.high %v14760_v63, %v14760_v63  ;;  %v15209_v43 = vrot.slane %v507_v47, %v14354_v60 }
 0x1ea   : > { %2942 = vst.msk [vmem:[#allocation2 + $0xe3] sm:$0x1] %vm717_vm2, %v2903_v15  ;;  %2888 = vrot.lane.b32.xlu1 %v2829_v7, %s14098_s18  ;;  %v2769_v7 = vcombine.high %v18287_v6, %v18287_v6  ;;  %v18293_v6 = vld [vmem:[#allocation22_spill] sm:$0xff] }
 0x1eb   : > { %v3141_v14 = vpop.permute.xlu1 %3140  ;;  %3126 = vrot.lane.b32.xlu0 %v3067_v24, %s14099_s19  ;;  %v1877_v15 = vrot.slane %v1813_v34, %v14383_v19  ;;  %v2357_v24 = vrot.slane %v2293_v26, %v14383_v19  ;;  %v2010_v26 = vcombine.high %v18292_v12, %v18292_v12 }
 0x1ec   : > { %3180 = vst.msk [vmem:[#allocation2 + $0xe4] sm:$0x1] %vm717_vm2, %v3141_v14  ;;  %v1635_v14 = vrot.slane %v1571_v16, %v14383_v19 }
 0x1ee   : > { %3364 = vrot.lane.b32.xlu1 %v3305_v62, %s14099_s19 }
 0x1ef   : > { %v3617_v52 = vpop.permute.xlu1 %3616  ;;  %3602 = vrot.lane.b32.xlu0 %v3543_v35, %s14100_s20  ;;  %v18288_v35 = vld [vmem:[#allocation20_spill] sm:$0xff] }
 0x1f0   : > { %3656 = vst.msk [vmem:[#allocation2 + $0xe6] sm:$0x1] %vm717_vm2, %v3617_v52  ;;  %v2119_v52 = vrot.slane %v2055_v51, %v14383_v19  ;;  %v750_v22 = vcombine.high %v18288_v35, %v18288_v35  ;;  %v18294_v35 = vld [vmem:[#allocation27_spill] sm:$0xff] }
 0x1f2   : > { %3840 = vrot.lane.b32.xlu1 %v3781_v46, %s14100_s20  ;;  %v2595_v46 = vrot.slane %v2531_v31, %v14383_v19  ;;  %v15200_v16 = vrot.slane %v750_v22, %v14354_v60  ;;  %v15233_v31 = vrot.slane %v15209_v43, %v14354_v60  ;;  %v2486_v22 = vcombine.high %v18294_v35, %v18294_v35 }
 0x1f3   : > { %673 = vrot.lane.b32.xlu0 %v616_v4, %s14096_s16  ;;  %v2833_v4 = vrot.slane %v2769_v7, %v14383_v19  ;;  %v1768_v7 = vcombine.high %v18293_v6, %v18293_v6 }
 0x1f4   : > { %v3379_v32 = vpop.permute.xlu0 %3378 }
 0x1f5   : > { %3418 = vst.msk [vmem:[#allocation2 + $0xe5] sm:$0x1] %vm717_vm2, %v3379_v32  ;;  %v15261_v47 = vrot.slane %v1768_v7, %v14354_v60 }
 0x1f6   : > { %916 = vrot.lane.b32.xlu1 %v859_v54, %s14096_s16 }
 0x1f7   : > { %1158 = vrot.lane.b32.xlu0 %v1101_v45, %s14096_s16  ;;  %v18291_v45 = vld [vmem:[#allocation19_spill] sm:$0xff] }
 0x1f8   : > { %v3855_v5 = vpop.permute.xlu0 %3854 }
 0x1f9   : > { %3894 = vst.msk [vmem:[#allocation2 + $0xe7] sm:$0x1] %vm717_vm2, %v3855_v5  ;;  %v3007_v5 = vcombine.high %v14749_v44, %v14749_v44 }
 0x1fa   : > { %1692 = vrot.lane.b32.xlu1 %v1635_v14, %s14094_s11  ;;  %v15222_v14 = vrot.slane %v15200_v16, %v14354_v60 }
 0x1fb   : > { %1934 = vrot.lane.b32.xlu0 %v1877_v15, %s14094_s11  ;;  %v3071_v34 = vrot.slane %v3007_v5, %v14383_v19  ;;  %v3547_v15 = vrot.slane %v3483_v28, %v14383_v19 }
 0x1fc   : > { %v670_v3 = vpop.permute.xlu0 %669  ;;  %v913_v2 = vpop.permute.xlu1 %912  ;;  %v867_v5 = vrot.slane %v15222_v14, %v14383_v19 }
 0x1fd   : > { %718 = vst.msk [vmem:[#allocation2 + $0x19] sm:$0x1] %vm717_vm2, %v670_v3  ;;  %960 = vst.msk [vmem:[#allocation2 + $0x1a] sm:$0x1] %vm717_vm2, %v913_v2  ;;  %v18290_v3 = vld [vmem:[#allocation21_spill] sm:$0xff]  ;;  %v992_v2 = vcombine.high %v18291_v45, %v18291_v45 }
 0x1fe   : > { %2176 = vrot.lane.b32.xlu1 %v2119_v52, %s14097_s17  ;;  %v1526_v44 = vcombine.high %v18290_v3, %v18290_v3  ;;  %v624_v3 = vrot.slane %v15233_v31, %v14383_v19 }
 0x1ff   : > { %2414 = vrot.lane.b32.xlu0 %v2357_v24, %s14097_s17  ;;  %v15236_v52 = vrot.slane %v992_v2, %v14354_v60  ;;  %v15283_v2 = vrot.slane %v15261_v47, %v14354_v60 }
 0x200   : > { %v1155_v55 = vpop.permute.xlu0 %1154  ;;  %v1689_v32 = vpop.permute.xlu1 %1688  ;;  %v15218_v63 = vrot.slane %v1526_v44, %v14354_v60 }
 0x201   : > { %1202 = vst.msk [vmem:[#allocation2 + $0x1b] sm:$0x1] %vm717_vm2, %v1155_v55  ;;  %1736 = vst.msk [vmem:[#allocation2 + $0x1e] sm:$0x1] %vm717_vm2, %v1689_v32  ;;  %v3721_v55 = vcombine.high %v14764_v0, %v14764_v0  ;;  %v15258_v20 = vrot.slane %v15236_v52, %v14354_v60 }
 0x202   : > { %2652 = vrot.lane.b32.xlu1 %v2595_v46, %s14098_s18  ;;  %v15244_v32 = vrot.slane %v15218_v63, %v14354_v60  ;;  %v351_v46 = vld [vmem:[%s14217_s15 + $0x48] sm:$0xff] }
 0x203   : > { %2890 = vrot.lane.b32.xlu0 %v2833_v4, %s14098_s18  ;;  %v3785_v24 = vrot.slane %v3721_v55, %v14383_v19  ;;  %385 = vst.msk [vmem:[#allocation2 + $0x81] sm:$0xff] %vm375_vm1, %v351_v46  ;;  %v2248_v4 = vcombine.high %v18295_v56, %v18295_v56 }
 0x204   : > { %v1931_v62 = vpop.permute.xlu0 %1930  ;;  %v2173_v54 = vpop.permute.xlu1 %2172  ;;  %v1643_v45 = vrot.slane %v15244_v32, %v14383_v19 }
 0x205   : > { %1978 = vst.msk [vmem:[#allocation2 + $0x1f] sm:$0x1] %vm717_vm2, %v1931_v62  ;;  %2220 = vst.msk [vmem:[#allocation2 + $0x20] sm:$0x1] %vm717_vm2, %v2173_v54  ;;  %v15247_v62 = vrot.slane %v2010_v26, %v14354_v60  ;;  %v15273_v54 = vrot.slane %v2486_v22, %v14354_v60  ;;  %v15286_v55 = vrot.slane %v2248_v4, %v14354_v60 }
 0x206   : > { %3128 = vrot.lane.b32.xlu1 %v3071_v34, %s14099_s19  ;;  %v1109_v26 = vrot.slane %v15258_v20, %v14383_v19  ;;  %v1885_v4 = vrot.slane %v15283_v2, %v14383_v19 }
 0x207   : > { %3366 = vrot.lane.b32.xlu0 %v3309_v48, %s14099_s19  ;;  %v15270_v44 = vrot.slane %v15247_v62, %v14354_v60  ;;  %v18297_v48 = vld [vmem:[#allocation28_spill] sm:$0xff]  ;;  %v15309_v35 = vrot.slane %v15286_v55, %v14354_v60 }
 0x208   : > { %v2411_v42 = vpop.permute.xlu0 %2410  ;;  %v2649_v0 = vpop.permute.xlu1 %2648 }
 0x209   : > { %2458 = vst.msk [vmem:[#allocation2 + $0x21] sm:$0x1] %vm717_vm2, %v2411_v42  ;;  %2696 = vst.msk [vmem:[#allocation2 + $0x22] sm:$0x1] %vm717_vm2, %v2649_v0  ;;  %v18296_v42 = vld [vmem:[#allocation31_spill] sm:$0xff] }
 0x20a   : > { %3604 = vrot.lane.b32.xlu1 %v3547_v15, %s14100_s20  ;;  %v2962_v28 = vcombine.high %v18296_v42, %v18296_v42  ;;  %v15296_v15 = vrot.slane %v15273_v54, %v14354_v60 }
 0x20b   : > { %3842 = vrot.lane.b32.xlu0 %v3785_v24, %s14100_s20  ;;  %v2127_v24 = vrot.slane %v15270_v44, %v14383_v19 }
 0x20c   : > { %v4142_v51 = vld [vmem:[#allocation2 + $0x18] sm:$0xff]  ;;  %v2887_v11 = vpop.permute.xlu0 %2886  ;;  %v15299_v0 = vrot.slane %v2962_v28, %v14354_v60 }
 0x20d   : > { %12598 = vmatprep.mubr.msk.f32.mxu1 %vm296_vm4, %v4142_v51  ;;  %2934 = vst.msk [vmem:[#allocation2 + $0x23] sm:$0x1] %vm717_vm2, %v2887_v11  ;;  %v3125_v34 = vpop.permute.xlu1 %3124  ;;  %v2724_v51 = vcombine.high %v18297_v48, %v18297_v48  ;;  %v18298_v11 = vld [vmem:[#allocation35_spill] sm:$0xff] }
 0x20e   : > { %920 = vrot.lane.b32.xlu1 %v867_v5, %s14096_s16  ;;  %3172 = vst.msk [vmem:[#allocation2 + $0x24] sm:$0x1] %vm717_vm2, %v3125_v34  ;;  %v3438_v6 = vcombine.high %v18298_v11, %v18298_v11  ;;  %v18299_v5 = vld [vmem:[#allocation34_spill] sm:$0xff]  ;;  %v2603_v34 = vrot.slane %v15296_v15, %v14383_v19  ;;  %v2365_v11 = vrot.slane %v15309_v35, %v14383_v19 }
 0x20f   : > { %677 = vrot.lane.b32.xlu0 %v624_v3, %s14096_s16  ;;  %v15312_v22 = vrot.slane %v2724_v51, %v14354_v60  ;;  %v3200_v46 = vcombine.high %v18299_v5, %v18299_v5  ;;  %v15322_v3 = vrot.slane %v15299_v0, %v14354_v60  ;;  %v18300_v51 = vld [vmem:[#allocation36_spill] sm:$0xff] }
 0x210   : > { %v15325_v42 = vrot.slane %v3438_v6, %v14354_v60 }
 0x211   : > { %v3363_v12 = vpop.permute.xlu0 %3362  ;;  %v15336_v48 = vrot.slane %v3200_v46, %v14354_v60 }
 0x212   : > { %1696 = vrot.lane.b32.xlu1 %v1643_v45, %s14094_s11  ;;  %3410 = vst.msk [vmem:[#allocation2 + $0x25] sm:$0x1] %vm717_vm2, %v3363_v12  ;;  %v15333_v45 = vrot.slane %v15312_v22, %v14354_v60  ;;  %v3676_v12 = vcombine.high %v18300_v51, %v18300_v51  ;;  %v15346_v6 = vrot.slane %v15325_v42, %v14354_v60 }
 0x213   : > { %1162 = vrot.lane.b32.xlu0 %v1109_v26, %s14096_s16  ;;  %v15354_v5 = vrot.slane %v15336_v48, %v14354_v60 }
 0x214   : > { %v3601_v7 = vpop.permute.xlu1 %3600  ;;  %v15357_v46 = vrot.slane %v3676_v12, %v14354_v60  ;;  %v3555_v12 = vrot.slane %v15346_v6, %v14383_v19 }
 0x215   : > { %3648 = vst.msk [vmem:[#allocation2 + $0x26] sm:$0x1] %vm717_vm2, %v3601_v7  ;;  %v3839_v56 = vpop.permute.xlu0 %3838 }
 0x216   : > { %2180 = vrot.lane.b32.xlu1 %v2127_v24, %s14097_s17  ;;  %3886 = vst.msk [vmem:[#allocation2 + $0x27] sm:$0x1] %vm717_vm2, %v3839_v56  ;;  %v3079_v24 = vrot.slane %v15322_v3, %v14383_v19 }
 0x217   : > { %1938 = vrot.lane.b32.xlu0 %v1885_v4, %s14094_s11 }
 0x218   : > { %v688_v28 = vpop.permute.xlu1 %687 }
 0x219   : > { %727 = vst.msk [vmem:[#allocation2 + $0xf1] sm:$0x1] %vm717_vm2, %v688_v28  ;;  %v931_v26 = vpop.permute.xlu0 %930  ;;  %v2841_v28 = vrot.slane %v15333_v45, %v14383_v19 }
 0x21a   : > { %2656 = vrot.lane.b32.xlu1 %v2603_v34, %s14098_s18  ;;  %969 = vst.msk [vmem:[#allocation2 + $0xf2] sm:$0x1] %vm717_vm2, %v931_v26  ;;  %v603_v34 = vcombine.high %v14799_v30, %v14799_v30  ;;  %v15372_v26 = vrot.slane %v15357_v46, %v14354_v60  ;;  %v1088_v30 = vcombine.high %v14817_v38, %v14817_v38 }
 0x21b   : > { %2418 = vrot.lane.b32.xlu0 %v2365_v11, %s14097_s17  ;;  %v1864_v38 = vcombine.high %v14835_v36, %v14835_v36  ;;  %v554_v36 = vcombine.high %v15034_v29, %v15034_v29  ;;  %v1039_v29 = vcombine.high %v15051_v58, %v15051_v58  ;;  %v1815_v58 = vcombine.high %v15069_v53, %v15069_v53 }
 0x21c   : > { %v1173_v7 = vpop.permute.xlu1 %1172  ;;  %v2295_v53 = vcombine.high %v15087_v49, %v15087_v49  ;;  %v2771_v49 = vcombine.high %v15105_v17, %v15105_v17  ;;  %v3247_v17 = vcombine.high %v15123_v41, %v15123_v41  ;;  %v523_v41 = vcombine.high %v15209_v43, %v15209_v43 }
 0x21d   : > { %1211 = vst.msk [vmem:[#allocation2 + $0xf3] sm:$0x1] %vm717_vm2, %v1173_v7  ;;  %v1707_v56 = vpop.permute.xlu0 %1706  ;;  %v4143_v4 = vld [vmem:[#allocation2 + $0x20] sm:$0xff]  ;;  %v3317_v7 = vrot.slane %v15354_v5, %v14383_v19 }
 0x21e   : > { %3132 = vrot.lane.b32.xlu1 %v3079_v24, %s14099_s19  ;;  %1745 = vst.msk [vmem:[#allocation2 + $0xf6] sm:$0x1] %vm717_vm2, %v1707_v56  ;;  %12599 = vmatmul.mubr.msk.f32.gmra.mrb[2].mxu1 %vm296_vm4, %v4143_v4  ;;  %v652_v56 = vrot.slane %v603_v34, %v14383_v19  ;;  %v846_v4 = vcombine.high %v14808_v39, %v14808_v39 }
 0x21f   : > { %2894 = vrot.lane.b32.xlu0 %v2841_v28, %s14098_s18  ;;  %v1137_v34 = vrot.slane %v1088_v30, %v14383_v19  ;;  %v1622_v39 = vcombine.high %v14827_v50, %v14827_v50  ;;  %v1913_v30 = vrot.slane %v1864_v38, %v14383_v19  ;;  %v797_v50 = vcombine.high %v15043_v9, %v15043_v9  ;;  %v349_v38 = vld [vmem:[%s14217_s15 + $0x38] sm:$0xff] }
 0x220   : > { %v1949_v51 = vpop.permute.xlu1 %1948  ;;  %383 = vst.msk [vmem:[#allocation2 + $0x69] sm:$0xff] %vm375_vm1, %v349_v38  ;;  %v1573_v9 = vcombine.high %v15061_v57, %v15061_v57  ;;  %v2057_v57 = vcombine.high %v15079_v8, %v15079_v8  ;;  %v2533_v8 = vcombine.high %v15097_v61, %v15097_v61  ;;  %v3009_v61 = vcombine.high %v15115_v13, %v15115_v13 }
 0x221   : > { %1987 = vst.msk [vmem:[#allocation2 + $0xf7] sm:$0x1] %vm717_vm2, %v1949_v51  ;;  %v2191_v11 = vpop.permute.xlu0 %2190  ;;  %v3793_v51 = vrot.slane %v15372_v26, %v14383_v19  ;;  %v766_v13 = vcombine.high %v15200_v16, %v15200_v16 }
 0x222   : > { %3608 = vrot.lane.b32.xlu1 %v3555_v12, %s14100_s20  ;;  %2229 = vst.msk [vmem:[#allocation2 + $0xf8] sm:$0x1] %vm717_vm2, %v2191_v11 }
 0x223   : > { %3370 = vrot.lane.b32.xlu0 %v3317_v7, %s14099_s19  ;;  %v895_v7 = vrot.slane %v846_v4, %v14383_v19  ;;  %v1671_v4 = vrot.slane %v1622_v39, %v14383_v19  ;;  %v15475_v43 = vrot.slane %v766_v13, %v14354_v60 }
 0x224   : > { %v2429_v24 = vpop.permute.xlu1 %2428 }
 0x225   : > { %2467 = vst.msk [vmem:[#allocation2 + $0xf9] sm:$0x1] %vm717_vm2, %v2429_v24  ;;  %v2667_v28 = vpop.permute.xlu0 %2666 }
 0x226   : > { %691 = vrot.lane.b32.xlu1 %v652_v56, %s14096_s16  ;;  %2705 = vst.msk [vmem:[#allocation2 + $0xfa] sm:$0x1] %vm717_vm2, %v2667_v28 }
 0x227   : > { %3846 = vrot.lane.b32.xlu0 %v3793_v51, %s14100_s20  ;;  %v620_v51 = vrot.slane %v554_v36, %v14383_v19  ;;  %v1639_v36 = vrot.slane %v1573_v9, %v14383_v19  ;;  %v2837_v9 = vrot.slane %v2771_v49, %v14383_v19 }
 0x228   : > { %v2905_v12 = vpop.permute.xlu1 %2904 }
 0x229   : > { %2943 = vst.msk [vmem:[#allocation2 + $0xfb] sm:$0x1] %vm717_vm2, %v2905_v12  ;;  %v3143_v11 = vpop.permute.xlu0 %3142 }
 0x22a   : > { %1176 = vrot.lane.b32.xlu1 %v1137_v34, %s14096_s16  ;;  %3181 = vst.msk [vmem:[#allocation2 + $0xfc] sm:$0x1] %vm717_vm2, %v3143_v11  ;;  %v863_v34 = vrot.slane %v797_v50, %v14383_v19  ;;  %v1105_v11 = vrot.slane %v1039_v29, %v14383_v19  ;;  %v2361_v29 = vrot.slane %v2295_v53, %v14383_v19 }
 0x22b   : > { %934 = vrot.lane.b32.xlu0 %v895_v7, %s14096_s16 }
 0x22c   : > { %v3381_v24 = vpop.permute.xlu1 %3380 }
 0x22d   : > { %3419 = vst.msk [vmem:[#allocation2 + $0xfd] sm:$0x1] %vm717_vm2, %v3381_v24  ;;  %v3619_v56 = vpop.permute.xlu0 %3618 }
 0x22e   : > { %1952 = vrot.lane.b32.xlu1 %v1913_v30, %s14094_s11  ;;  %3657 = vst.msk [vmem:[#allocation2 + $0xfe] sm:$0x1] %vm717_vm2, %v3619_v56  ;;  %v1881_v30 = vrot.slane %v1815_v58, %v14383_v19  ;;  %v2123_v56 = vrot.slane %v2057_v57, %v14383_v19  ;;  %v3075_v58 = vrot.slane %v3009_v61, %v14383_v19 }
 0x22f   : > { %1710 = vrot.lane.b32.xlu0 %v1671_v4, %s14094_s11 }
 0x230   : > { %v3857_v28 = vpop.permute.xlu1 %3856 }
 0x231   : > { %3895 = vst.msk [vmem:[#allocation2 + $0xff] sm:$0x1] %vm717_vm2, %v3857_v28  ;;  %v690_v12 = vpop.permute.xlu0 %689 }
 0x232   : > { %675 = vrot.lane.b32.xlu1 %v620_v51, %s14096_s16  ;;  %728 = vst.msk [vmem:[#allocation2 + $0x109] sm:$0x1] %vm717_vm2, %v690_v12  ;;  %v2599_v51 = vrot.slane %v2533_v8, %v14383_v19  ;;  %v3485_v12 = vcombine.high %v15130_v1, %v15130_v1  ;;  %v1542_v1 = vcombine.high %v15218_v63, %v15218_v63 }
 0x233   : > { %918 = vrot.lane.b32.xlu0 %v863_v34, %s14096_s16  ;;  %v15483_v63 = vrot.slane %v523_v41, %v14354_v60 }
 0x234   : > { %v933_v39 = vpop.permute.xlu1 %932 }
 0x235   : > { %970 = vst.msk [vmem:[#allocation2 + $0x10a] sm:$0x1] %vm717_vm2, %v933_v39  ;;  %v1175_v7 = vpop.permute.xlu0 %1174  ;;  %v3723_v39 = vcombine.high %v15136_v23, %v15136_v23  ;;  %v1008_v23 = vcombine.high %v15236_v52, %v15236_v52  ;;  %v871_v52 = vrot.slane %v15475_v43, %v14383_v19 }
 0x236   : > { %1160 = vrot.lane.b32.xlu1 %v1105_v11, %s14096_s16  ;;  %1212 = vst.msk [vmem:[#allocation2 + $0x10b] sm:$0x1] %vm717_vm2, %v1175_v7  ;;  %v3313_v11 = vrot.slane %v3247_v17, %v14383_v19  ;;  %v3551_v7 = vrot.slane %v3485_v12, %v14383_v19 }
 0x237   : > { %1694 = vrot.lane.b32.xlu0 %v1639_v36, %s14094_s11  ;;  %v3789_v53 = vrot.slane %v3723_v39, %v14383_v19  ;;  %v3454_v39 = vcombine.high %v15325_v42, %v15325_v42 }
 0x238   : > { %v1709_v24 = vpop.permute.xlu1 %1708 }
 0x239   : > { %1746 = vst.msk [vmem:[#allocation2 + $0x10e] sm:$0x1] %vm717_vm2, %v1709_v24  ;;  %v1951_v50 = vpop.permute.xlu0 %1950  ;;  %v353_v24 = vld [vmem:[%s14217_s15 + $0x58] sm:$0xff] }
 0x23a   : > { %1936 = vrot.lane.b32.xlu1 %v1881_v30, %s14094_s11  ;;  %1988 = vst.msk [vmem:[#allocation2 + $0x10f] sm:$0x1] %vm717_vm2, %v1951_v50  ;;  %v2026_v30 = vcombine.high %v15247_v62, %v15247_v62  ;;  %v15493_v50 = vrot.slane %v1542_v1, %v14354_v60  ;;  %v628_v62 = vrot.slane %v15483_v63, %v14383_v19 }
 0x23b   : > { %2178 = vrot.lane.b32.xlu0 %v2123_v56, %s14097_s17  ;;  %387 = vst.msk [vmem:[#allocation2 + $0x99] sm:$0xff] %vm375_vm1, %v353_v24  ;;  %v1784_v56 = vcombine.high %v15261_v47, %v15261_v47  ;;  %v3216_v1 = vcombine.high %v15336_v48, %v15336_v48  ;;  %v3692_v48 = vcombine.high %v15357_v46, %v15357_v46 }
 0x23c   : > { %v2193_v4 = vpop.permute.xlu1 %2192  ;;  %v1647_v47 = vrot.slane %v15493_v50, %v14383_v19 }
 0x23d   : > { %2230 = vst.msk [vmem:[#allocation2 + $0x110] sm:$0x1] %vm717_vm2, %v2193_v4  ;;  %v2431_v28 = vpop.permute.xlu0 %2430  ;;  %v15503_v4 = vrot.slane %v1008_v23, %v14354_v60 }
 0x23e   : > { %2416 = vrot.lane.b32.xlu1 %v2361_v29, %s14097_s17  ;;  %2468 = vst.msk [vmem:[#allocation2 + $0x111] sm:$0x1] %vm717_vm2, %v2431_v28  ;;  %v2502_v29 = vcombine.high %v15273_v54, %v15273_v54  ;;  %v15512_v28 = vrot.slane %v2026_v30, %v14354_v60 }
 0x23f   : > { %2654 = vrot.lane.b32.xlu0 %v2599_v51, %s14098_s18  ;;  %v2264_v51 = vcombine.high %v15286_v55, %v15286_v55  ;;  %v1113_v54 = vrot.slane %v15503_v4, %v14383_v19 }
 0x240   : > { %v2669_v38 = vpop.permute.xlu1 %2668  ;;  %v2131_v55 = vrot.slane %v15512_v28, %v14383_v19  ;;  %v15530_v12 = vrot.slane %v2502_v29, %v14354_v60 }
 0x241   : > { %2706 = vst.msk [vmem:[#allocation2 + $0x112] sm:$0x1] %vm717_vm2, %v2669_v38  ;;  %v2907_v34 = vpop.permute.xlu0 %2906  ;;  %v15521_v38 = vrot.slane %v1784_v56, %v14354_v60  ;;  %v15539_v41 = vrot.slane %v2264_v51, %v14354_v60 }
 0x242   : > { %2892 = vrot.lane.b32.xlu1 %v2837_v9, %s14098_s18  ;;  %2944 = vst.msk [vmem:[#allocation2 + $0x113] sm:$0x1] %vm717_vm2, %v2907_v34  ;;  %v2978_v9 = vcombine.high %v15299_v0, %v15299_v0  ;;  %v2740_v34 = vcombine.high %v15312_v22, %v15312_v22  ;;  %v2607_v22 = vrot.slane %v15530_v12, %v14383_v19 }
 0x243   : > { %3130 = vrot.lane.b32.xlu0 %v3075_v58, %s14099_s19  ;;  %v1889_v0 = vrot.slane %v15521_v38, %v14383_v19  ;;  %v2369_v42 = vrot.slane %v15539_v41, %v14383_v19 }
 0x244   : > { %v3145_v16 = vpop.permute.xlu1 %3144 }
 0x245   : > { %3182 = vst.msk [vmem:[#allocation2 + $0x114] sm:$0x1] %vm717_vm2, %v3145_v16  ;;  %v3383_v57 = vpop.permute.xlu0 %3382 }
 0x246   : > { %3368 = vrot.lane.b32.xlu1 %v3313_v11, %s14099_s19  ;;  %3420 = vst.msk [vmem:[#allocation2 + $0x115] sm:$0x1] %vm717_vm2, %v3383_v57  ;;  %v15548_v11 = vrot.slane %v2978_v9, %v14354_v60 }
 0x247   : > { %3606 = vrot.lane.b32.xlu0 %v3551_v7, %s14100_s20  ;;  %v15557_v7 = vrot.slane %v2740_v34, %v14354_v60  ;;  %v1814_v34 = vcombine.high %v15283_v2, %v15283_v2  ;;  %v2294_v2 = vcombine.high %v15309_v35, %v15309_v35 }
 0x248   : > { %v3621_v36 = vpop.permute.xlu1 %3620 }
 0x249   : > { %3658 = vst.msk [vmem:[#allocation2 + $0x116] sm:$0x1] %vm717_vm2, %v3621_v36  ;;  %v3859_v8 = vpop.permute.xlu0 %3858  ;;  %v3083_v36 = vrot.slane %v15548_v11, %v14383_v19  ;;  %v2373_v35 = vrot.slane %v2294_v2, %v14383_v19 }
 0x24a   : > { %3844 = vrot.lane.b32.xlu1 %v3789_v53, %s14100_s20  ;;  %3896 = vst.msk [vmem:[#allocation2 + $0x117] sm:$0x1] %vm717_vm2, %v3859_v8  ;;  %v15564_v53 = vrot.slane %v3454_v39, %v14354_v60  ;;  %v2845_v8 = vrot.slane %v15557_v7, %v14383_v19 }
 0x24b   : > { %922 = vrot.lane.b32.xlu0 %v871_v52, %s14096_s16  ;;  %v15573_v52 = vrot.slane %v3216_v1, %v14354_v60 }
 0x24c   : > { %v672_v49 = vpop.permute.xlu1 %671  ;;  %v3559_v46 = vrot.slane %v15564_v53, %v14383_v19 }
 0x24d   : > { %719 = vst.msk [vmem:[#allocation2 + $0x31] sm:$0x1] %vm717_vm2, %v672_v49  ;;  %v915_v61 = vpop.permute.xlu0 %914  ;;  %v553_v49 = vcombine.high %v15233_v31, %v15233_v31  ;;  %v3321_v29 = vrot.slane %v15573_v52, %v14383_v19  ;;  %v1038_v31 = vcombine.high %v15258_v20, %v15258_v20 }
 0x24e   : > { %679 = vrot.lane.b32.xlu1 %v628_v62, %s14096_s16  ;;  %961 = vst.msk [vmem:[#allocation2 + $0x32] sm:$0x1] %vm717_vm2, %v915_v61  ;;  %v15587_v61 = vrot.slane %v3692_v48, %v14354_v60 }
 0x24f   : > { %1698 = vrot.lane.b32.xlu0 %v1647_v47, %s14094_s11  ;;  %v355_v47 = vld [vmem:[%s14217_s15 + $0x68] sm:$0xff]  ;;  %v1117_v20 = vrot.slane %v1038_v31, %v14383_v19 }
 0x250   : > { %v1157_v17 = vpop.permute.xlu1 %1156  ;;  %389 = vst.msk [vmem:[#allocation2 + $0xb1] sm:$0xff] %vm375_vm1, %v355_v47  ;;  %v3797_v9 = vrot.slane %v15587_v61, %v14383_v19  ;;  %v3484_v47 = vcombine.high %v15346_v6, %v15346_v6  ;;  %v555_v6 = vcombine.high %v15483_v63, %v15483_v63 }
 0x251   : > { %1203 = vst.msk [vmem:[#allocation2 + $0x33] sm:$0x1] %vm717_vm2, %v1157_v17  ;;  %v1691_v13 = vpop.permute.xlu0 %1690  ;;  %v632_v17 = vrot.slane %v553_v49, %v14383_v19 }
 0x252   : > { %1164 = vrot.lane.b32.xlu1 %v1113_v54, %s14096_s16  ;;  %1737 = vst.msk [vmem:[#allocation2 + $0x36] sm:$0x1] %vm717_vm2, %v1691_v13  ;;  %v796_v13 = vcombine.high %v15222_v14, %v15222_v14  ;;  %v1572_v14 = vcombine.high %v15244_v32, %v15244_v32  ;;  %v2056_v32 = vcombine.high %v15270_v44, %v15270_v44 }
 0x253   : > { %2182 = vrot.lane.b32.xlu0 %v2131_v55, %s14097_s17  ;;  %v2532_v44 = vcombine.high %v15296_v15, %v15296_v15  ;;  %v3008_v15 = vcombine.high %v15322_v3, %v15322_v3  ;;  %v636_v63 = vrot.slane %v555_v6, %v14383_v19  ;;  %v3534_v6 = vcombine.high %v14889_v40, %v14889_v40 }
 0x254   : > { %v1933_v58 = vpop.permute.xlu1 %1932  ;;  %v2135_v48 = vrot.slane %v2056_v32, %v14383_v19 }
 0x255   : > { %1979 = vst.msk [vmem:[#allocation2 + $0x37] sm:$0x1] %vm717_vm2, %v1933_v58  ;;  %v2175_v16 = vpop.permute.xlu0 %2174  ;;  %v3087_v3 = vrot.slane %v3008_v15, %v14383_v19 }
 0x256   : > { %1940 = vrot.lane.b32.xlu1 %v1889_v0, %s14094_s11  ;;  %2221 = vst.msk [vmem:[#allocation2 + $0x38] sm:$0x1] %vm717_vm2, %v2175_v16  ;;  %v875_v0 = vrot.slane %v796_v13, %v14383_v19  ;;  %v1893_v16 = vrot.slane %v1814_v34, %v14383_v19  ;;  %v1040_v34 = vcombine.high %v15503_v4, %v15503_v4 }
 0x257   : > { %2658 = vrot.lane.b32.xlu0 %v2607_v22, %s14098_s18  ;;  %v1816_v4 = vcombine.high %v15521_v38, %v15521_v38 }
 0x258   : > { %v2413_v57 = vpop.permute.xlu1 %2412 }
 0x259   : > { %2459 = vst.msk [vmem:[#allocation2 + $0x39] sm:$0x1] %vm717_vm2, %v2413_v57  ;;  %v2651_v23 = vpop.permute.xlu0 %2650  ;;  %v1651_v57 = vrot.slane %v1572_v14, %v14383_v19  ;;  %v1897_v38 = vrot.slane %v1816_v4, %v14383_v19 }
 0x25a   : > { %2420 = vrot.lane.b32.xlu1 %v2369_v42, %s14097_s17  ;;  %2697 = vst.msk [vmem:[#allocation2 + $0x3a] sm:$0x1] %vm717_vm2, %v2651_v23  ;;  %v2770_v23 = vcombine.high %v15333_v45, %v15333_v45  ;;  %v3246_v45 = vcombine.high %v15354_v5, %v15354_v5  ;;  %v3722_v5 = vcombine.high %v15372_v26, %v15372_v26 }
 0x25b   : > { %3134 = vrot.lane.b32.xlu0 %v3083_v36, %s14099_s19 }
 0x25c   : > { %v2889_v24 = vpop.permute.xlu1 %2888  ;;  %v4144_v30 = vld [vmem:[#allocation2 + $0x30] sm:$0xff]  ;;  %v3801_v26 = vrot.slane %v3722_v5, %v14383_v19 }
 0x25d   : > { %2935 = vst.msk [vmem:[#allocation2 + $0x3b] sm:$0x1] %vm717_vm2, %v2889_v24  ;;  %12601 = vmatprep.mubr.msk.f32.mxu1 %vm296_vm4, %v4144_v30  ;;  %v3127_v56 = vpop.permute.xlu0 %3126  ;;  %v2849_v30 = vrot.slane %v2770_v23, %v14383_v19 }
 0x25e   : > { %2896 = vrot.lane.b32.xlu1 %v2845_v8, %s14098_s18  ;;  %3173 = vst.msk [vmem:[#allocation2 + $0x3c] sm:$0x1] %vm717_vm2, %v3127_v56  ;;  %v2611_v56 = vrot.slane %v2532_v44, %v14383_v19 }
 0x25f   : > { %3610 = vrot.lane.b32.xlu0 %v3559_v46, %s14100_s20 }
 0x260   : > { %v3365_v62 = vpop.permute.xlu1 %3364 }
 0x261   : > { %3411 = vst.msk [vmem:[#allocation2 + $0x3d] sm:$0x1] %vm717_vm2, %v3365_v62  ;;  %v3603_v51 = vpop.permute.xlu0 %3602  ;;  %v3325_v62 = vrot.slane %v3246_v45, %v14383_v19  ;;  %v2106_v45 = vcombine.high %v14843_v27, %v14843_v27  ;;  %v2582_v27 = vcombine.high %v14859_v18, %v14859_v18 }
 0x262   : > { %3372 = vrot.lane.b32.xlu1 %v3321_v29, %s14099_s19  ;;  %3649 = vst.msk [vmem:[#allocation2 + $0x3e] sm:$0x1] %vm717_vm2, %v3603_v51 }
 0x263   : > { %681 = vrot.lane.b32.xlu0 %v632_v17, %s14096_s16  ;;  %v798_v17 = vcombine.high %v15475_v43, %v15475_v43  ;;  %v1574_v43 = vcombine.high %v15493_v50, %v15493_v50  ;;  %v2058_v50 = vcombine.high %v15512_v28, %v15512_v28  ;;  %v2534_v28 = vcombine.high %v15530_v12, %v15530_v12 }
 0x264   : > { %v3841_v54 = vpop.permute.xlu1 %3840 }
 0x265   : > { %3887 = vst.msk [vmem:[#allocation2 + $0x3f] sm:$0x1] %vm717_vm2, %v3841_v54  ;;  %v674_v55 = vpop.permute.xlu0 %673  ;;  %v3563_v54 = vrot.slane %v3484_v47, %v14383_v19  ;;  %v2615_v12 = vrot.slane %v2534_v28, %v14383_v19  ;;  %v367_v28 = vld [vmem:[%s14217_s15 + $0xc8] sm:$0xff] }
 0x266   : > { %3848 = vrot.lane.b32.xlu1 %v3797_v9, %s14100_s20  ;;  %720 = vst.msk [vmem:[#allocation2 + $0x49] sm:$0x1] %vm717_vm2, %v674_v55  ;;  %v357_v9 = vld [vmem:[%s14217_s15 + $0x78] sm:$0xff]  ;;  %v879_v55 = vrot.slane %v798_v17, %v14383_v19 }
 0x267   : > { %1166 = vrot.lane.b32.xlu0 %v1117_v20, %s14096_s16  ;;  %391 = vst.msk [vmem:[#allocation2 + $0xc9] sm:$0xff] %vm375_vm1, %v357_v9  ;;  %401 = vst.msk [vmem:[#allocation2 + $0x141] sm:$0xff] %vm375_vm1, %v367_v28 }
 0x268   : > { %v917_v58 = vpop.permute.xlu1 %916 }
 0x269   : > { %962 = vst.msk [vmem:[#allocation2 + $0x4a] sm:$0x1] %vm717_vm2, %v917_v58  ;;  %v1159_v39 = vpop.permute.xlu0 %1158 }
 0x26a   : > { %924 = vrot.lane.b32.xlu1 %v875_v0, %s14096_s16  ;;  %1204 = vst.msk [vmem:[#allocation2 + $0x4b] sm:$0x1] %vm717_vm2, %v1159_v39  ;;  %v1655_v0 = vrot.slane %v1574_v43, %v14383_v19  ;;  %v1121_v39 = vrot.slane %v1040_v34, %v14383_v19  ;;  %v3296_v43 = vcombine.high %v14883_v21, %v14883_v21 }
 0x26b   : > { %1942 = vrot.lane.b32.xlu0 %v1893_v16, %s14094_s11  ;;  %v3583_v21 = vrot.slane %v3534_v6, %v14383_v19 }
 0x26c   : > { %v1693_v22 = vpop.permute.xlu1 %1692  ;;  %v4145_v1 = vld [vmem:[#allocation2 + $0x38] sm:$0xff] }
 0x26d   : > { %1738 = vst.msk [vmem:[#allocation2 + $0x4e] sm:$0x1] %vm717_vm2, %v1693_v22  ;;  %12602 = vmatmul.mubr.msk.f32.gmra.mrb[4].mxu1 %vm296_vm4, %v4145_v1  ;;  %v1935_v42 = vpop.permute.xlu0 %1934  ;;  %v2139_v22 = vrot.slane %v2058_v50, %v14383_v19 }
 0x26e   : > { %1700 = vrot.lane.b32.xlu1 %v1651_v57, %s14094_s11  ;;  %1980 = vst.msk [vmem:[#allocation2 + $0x4f] sm:$0x1] %vm717_vm2, %v1935_v42  ;;  %v2296_v57 = vcombine.high %v15539_v41, %v15539_v41  ;;  %v3010_v42 = vcombine.high %v15548_v11, %v15548_v11  ;;  %v2772_v41 = vcombine.high %v15557_v7, %v15557_v7 }
 0x26f   : > { %2422 = vrot.lane.b32.xlu0 %v2373_v35, %s14097_s17  ;;  %v3486_v11 = vcombine.high %v15564_v53, %v15564_v53 }
 0x270   : > { %v2177_v36 = vpop.permute.xlu1 %2176  ;;  %v2377_v23 = vrot.slane %v2296_v57, %v14383_v19  ;;  %v3091_v44 = vrot.slane %v3010_v42, %v14383_v19  ;;  %v2853_v7 = vrot.slane %v2772_v41, %v14383_v19  ;;  %v18306_v57 = vld [vmem:[#allocation12_spill] sm:$0xff] }
 0x271   : > { %2222 = vst.msk [vmem:[#allocation2 + $0x50] sm:$0x1] %vm717_vm2, %v2177_v36  ;;  %v2415_v24 = vpop.permute.xlu0 %2414  ;;  %v365_v36 = vld [vmem:[%s14217_s15 + $0xb8] sm:$0xff]  ;;  %v3567_v53 = vrot.slane %v3486_v11, %v14383_v19 }
 0x272   : > { %2184 = vrot.lane.b32.xlu1 %v2135_v48, %s14097_s17  ;;  %2460 = vst.msk [vmem:[#allocation2 + $0x51] sm:$0x1] %vm717_vm2, %v2415_v24 }
 0x273   : > { %2898 = vrot.lane.b32.xlu0 %v2849_v30, %s14098_s18  ;;  %399 = vst.msk [vmem:[#allocation2 + $0x129] sm:$0xff] %vm375_vm1, %v365_v36  ;;  %v3248_v30 = vcombine.high %v15573_v52, %v15573_v52  ;;  %v3724_v52 = vcombine.high %v15587_v61, %v15587_v61 }
 0x274   : > { %v2653_v8 = vpop.permute.xlu1 %2652 }
 0x275   : > { %2698 = vst.msk [vmem:[#allocation2 + $0x52] sm:$0x1] %vm717_vm2, %v2653_v8  ;;  %v2891_v46 = vpop.permute.xlu0 %2890  ;;  %v4146_v49 = vld [vmem:[#allocation2 + $0x48] sm:$0xff]  ;;  %v3329_v15 = vrot.slane %v3248_v30, %v14383_v19  ;;  %v3805_v61 = vrot.slane %v3724_v52, %v14383_v19 }
 0x276   : > { %2660 = vrot.lane.b32.xlu1 %v2611_v56, %s14098_s18  ;;  %2936 = vst.msk [vmem:[#allocation2 + $0x53] sm:$0x1] %vm717_vm2, %v2891_v46  ;;  %12604 = vmatprep.mubr.msk.f32.mxu1 %vm296_vm4, %v4146_v49  ;;  %v2155_v49 = vrot.slane %v2106_v45, %v14383_v19 }
 0x277   : > { %3374 = vrot.lane.b32.xlu0 %v3325_v62, %s14099_s19  ;;  %v2344_v62 = vcombine.high %v14851_v37, %v14851_v37  ;;  %v2820_v37 = vcombine.high %v14867_v25, %v14867_v25 }
 0x278   : > { %v3129_v29 = vpop.permute.xlu1 %3128 }
 0x279   : > { %3174 = vst.msk [vmem:[#allocation2 + $0x54] sm:$0x1] %vm717_vm2, %v3129_v29  ;;  %v3367_v51 = vpop.permute.xlu0 %3366  ;;  %v18301_v29 = vld [vmem:[#allocation6_spill] sm:$0xff]  ;;  %v2393_v17 = vrot.slane %v2344_v62, %v14383_v19  ;;  %v18310_v62 = vld [vmem:[#allocation16_spill] sm:$0xff] }
 0x27a   : > { %3136 = vrot.lane.b32.xlu1 %v3087_v3, %s14099_s19  ;;  %3412 = vst.msk [vmem:[#allocation2 + $0x55] sm:$0x1] %vm717_vm2, %v3367_v51  ;;  %v556_v18 = vcombine.high %v18301_v29, %v18301_v29  ;;  %v3058_v3 = vcombine.high %v14875_v33, %v14875_v33  ;;  %v2631_v51 = vrot.slane %v2582_v27, %v14383_v19  ;;  %v18302_v33 = vld [vmem:[#allocation8_spill] sm:$0xff] }
 0x27b   : > { %3850 = vrot.lane.b32.xlu0 %v3801_v26, %s14100_s20 }
 0x27c   : > { %v3605_v31 = vpop.permute.xlu1 %3604  ;;  %v3107_v25 = vrot.slane %v3058_v3, %v14383_v19 }
 0x27d   : > { %3650 = vst.msk [vmem:[#allocation2 + $0x56] sm:$0x1] %vm717_vm2, %v3605_v31  ;;  %v3843_v13 = vpop.permute.xlu0 %3842  ;;  %v15753_v31 = vrot.slane %v556_v18, %v14354_v60 }
 0x27e   : > { %3612 = vrot.lane.b32.xlu1 %v3563_v54, %s14100_s20  ;;  %3888 = vst.msk [vmem:[#allocation2 + $0x57] sm:$0x1] %vm717_vm2, %v3843_v13  ;;  %v1041_v54 = vcombine.high %v18302_v33, %v18302_v33  ;;  %v18303_v13 = vld [vmem:[#allocation5_spill] sm:$0xff] }
 0x27f   : > { %926 = vrot.lane.b32.xlu0 %v879_v55, %s14096_s16  ;;  %v799_v55 = vcombine.high %v18303_v13, %v18303_v13  ;;  %v15771_v40 = vrot.slane %v15753_v31, %v14354_v60 }
 0x280   : > { %v921_v20 = vpop.permute.xlu1 %920  ;;  %v15774_v34 = vrot.slane %v1041_v54, %v14354_v60  ;;  %v18312_v54 = vld [vmem:[#allocation17_spill] sm:$0xff] }
 0x281   : > { %964 = vst.msk [vmem:[#allocation2 + $0x7a] sm:$0x1] %vm717_vm2, %v921_v20  ;;  %v678_v58 = vpop.permute.xlu0 %677  ;;  %v3725_v6 = vcombine.high %v18312_v54, %v18312_v54 }
 0x282   : > { %683 = vrot.lane.b32.xlu1 %v636_v63, %s14096_s16  ;;  %722 = vst.msk [vmem:[#allocation2 + $0x79] sm:$0x1] %vm717_vm2, %v678_v58  ;;  %v2869_v63 = vrot.slane %v2820_v37, %v14383_v19  ;;  %v18304_v58 = vld [vmem:[#allocation10_spill] sm:$0xff] }
 0x283   : > { %1702 = vrot.lane.b32.xlu0 %v1655_v0, %s14094_s11  ;;  %v1817_v0 = vcombine.high %v18304_v58, %v18304_v58 }
 0x284   : > { %v1697_v14 = vpop.permute.xlu1 %1696 }
 0x285   : > { %1740 = vst.msk [vmem:[#allocation2 + $0x7e] sm:$0x1] %vm717_vm2, %v1697_v14  ;;  %v1163_v16 = vpop.permute.xlu0 %1162  ;;  %v4147_v2 = vld [vmem:[#allocation2 + $0x50] sm:$0xff]  ;;  %v15782_v14 = vrot.slane %v799_v55, %v14354_v60  ;;  %v11409_v55 = vld [vmem:[%s18096_s3 + $0x4] sm:$0xf] }
 0x286   : > { %1168 = vrot.lane.b32.xlu1 %v1121_v39, %s14096_s16  ;;  %1206 = vst.msk [vmem:[#allocation2 + $0x7b] sm:$0x1] %vm717_vm2, %v1163_v16  ;;  %12605 = vmatmul.mubr.msk.f32.gmra.mrb[6].mxu1 %vm296_vm4, %v4147_v2  ;;  %v18305_v39 = vld [vmem:[#allocation7_spill] sm:$0xff]  ;;  %v3772_v16 = vcombine.high %v14895_v59, %v14895_v59  ;;  %v656_v59 = vrot.slane %v15771_v40, %v14383_v19 }
 0x287   : > { %2186 = vrot.lane.b32.xlu0 %v2139_v22, %s14097_s17  ;;  %v1575_v4 = vcombine.high %v18305_v39, %v18305_v39  ;;  %v3345_v22 = vrot.slane %v3296_v43, %v14383_v19  ;;  %v15808_v42 = vrot.slane %v15782_v14, %v14354_v60  ;;  %12643 = vmatprep.subr.msk.mxu1 %vm4269_vm3, %v11409_v55 }
 0x288   : > { %v2181_v1 = vpop.permute.xlu1 %2180  ;;  %12644 = vmatpush3.msk.msra.mxu1 %vm4269_vm3, %v11409_v55  ;;  %v15907_v39 = vrot.slane %v3725_v6, %v14354_v60 }
 0x289   : > { %2224 = vst.msk [vmem:[#allocation2 + $0x80] sm:$0x1] %vm717_vm2, %v2181_v1  ;;  %v1939_v32 = vpop.permute.xlu0 %1938  ;;  %v15794_v1 = vrot.slane %v15774_v34, %v14354_v60  ;;  %v899_v27 = vrot.slane %v15808_v42, %v14383_v19 }
 0x28a   : > { %1944 = vrot.lane.b32.xlu1 %v1897_v38, %s14094_s11  ;;  %1982 = vst.msk [vmem:[#allocation2 + $0x7f] sm:$0x1] %vm717_vm2, %v1939_v32  ;;  %v15797_v38 = vrot.slane %v1817_v0, %v14354_v60  ;;  %v2297_v32 = vcombine.high %v18306_v57, %v18306_v57 }
 0x28b   : > { %2662 = vrot.lane.b32.xlu0 %v2615_v12, %s14098_s18  ;;  %v1141_v45 = vrot.slane %v15794_v1, %v14383_v19 }
 0x28c   : > { %v2657_v35 = vpop.permute.xlu1 %2656  ;;  %v15823_v11 = vrot.slane %v2297_v32, %v14354_v60  ;;  %v815_v32 = vcombine.high %v15782_v14, %v15782_v14 }
 0x28d   : > { %2700 = vst.msk [vmem:[#allocation2 + $0x82] sm:$0x1] %vm717_vm2, %v2657_v35  ;;  %v2419_v48 = vpop.permute.xlu0 %2418  ;;  %v15811_v35 = vrot.slane %v1575_v4, %v14354_v60 }
 0x28e   : > { %2424 = vrot.lane.b32.xlu1 %v2377_v23, %s14097_s17  ;;  %2462 = vst.msk [vmem:[#allocation2 + $0x81] sm:$0x1] %vm717_vm2, %v2419_v48  ;;  %v18307_v23 = vld [vmem:[#allocation9_spill] sm:$0xff]  ;;  %v3821_v48 = vrot.slane %v3772_v16, %v14383_v19 }
 0x28f   : > { %3138 = vrot.lane.b32.xlu0 %v3091_v44, %s14099_s19  ;;  %v2059_v41 = vcombine.high %v18307_v23, %v18307_v23  ;;  %v15820_v44 = vrot.slane %v15797_v38, %v14354_v60 }
 0x290   : > { %v3133_v24 = vpop.permute.xlu1 %3132 }
 0x291   : > { %3176 = vst.msk [vmem:[#allocation2 + $0x84] sm:$0x1] %vm717_vm2, %v3133_v24  ;;  %v2895_v8 = vpop.permute.xlu0 %2894  ;;  %v18308_v24 = vld [vmem:[#allocation14_spill] sm:$0xff]  ;;  %v1917_v29 = vrot.slane %v15820_v44, %v14383_v19 }
 0x292   : > { %2900 = vrot.lane.b32.xlu1 %v2853_v7, %s14098_s18  ;;  %2938 = vst.msk [vmem:[#allocation2 + $0x83] sm:$0x1] %vm717_vm2, %v2895_v8  ;;  %v2773_v7 = vcombine.high %v18308_v24, %v18308_v24  ;;  %v18309_v8 = vld [vmem:[#allocation11_spill] sm:$0xff]  ;;  %v1591_v24 = vcombine.high %v15811_v35, %v15811_v35 }
 0x293   : > { %3614 = vrot.lane.b32.xlu0 %v3567_v53, %s14100_s20  ;;  %v2535_v53 = vcombine.high %v18309_v8, %v18309_v8 }
 0x294   : > { %v3609_v56 = vpop.permute.xlu1 %3608 }
 0x295   : > { %3652 = vst.msk [vmem:[#allocation2 + $0x86] sm:$0x1] %vm717_vm2, %v3609_v56  ;;  %v3371_v46 = vpop.permute.xlu0 %3370  ;;  %v15835_v56 = vrot.slane %v15811_v35, %v14354_v60  ;;  %v15857_v18 = vrot.slane %v2535_v53, %v14354_v60 }
 0x296   : > { %3376 = vrot.lane.b32.xlu1 %v3329_v15, %s14099_s19  ;;  %3414 = vst.msk [vmem:[#allocation2 + $0x85] sm:$0x1] %vm717_vm2, %v3371_v46  ;;  %v15838_v15 = vrot.slane %v2059_v41, %v14354_v60  ;;  %v15846_v46 = vrot.slane %v15823_v11, %v14354_v60  ;;  %v572_v41 = vcombine.high %v15753_v31, %v15753_v31 }
 0x297   : > { %2194 = vrot.lane.b32.xlu0 %v2155_v49, %s14097_s17  ;;  %v15849_v49 = vrot.slane %v2773_v7, %v14354_v60  ;;  %v15884_v13 = vrot.slane %v15857_v18, %v14354_v60 }
 0x298   : > { %v692_v5 = vpop.permute.xlu1 %691  ;;  %v15862_v3 = vrot.slane %v15838_v15, %v14354_v60  ;;  %v15959_v53 = vrot.slane %v572_v41, %v14354_v60 }
 0x299   : > { %729 = vst.msk [vmem:[#allocation2 + $0x121] sm:$0x1] %vm717_vm2, %v692_v5  ;;  %v3847_v47 = vpop.permute.xlu0 %3846  ;;  %v3249_v5 = vcombine.high %v18310_v62, %v18310_v62  ;;  %v2635_v57 = vrot.slane %v15884_v13, %v14383_v19 }
 0x29a   : > { %3852 = vrot.lane.b32.xlu1 %v3805_v61, %s14100_s20  ;;  %3890 = vst.msk [vmem:[#allocation2 + $0x87] sm:$0x1] %vm717_vm2, %v3847_v47  ;;  %v18311_v47 = vld [vmem:[#allocation13_spill] sm:$0xff] }
 0x29b   : > { %2670 = vrot.lane.b32.xlu0 %v2631_v51, %s14098_s18  ;;  %v3011_v51 = vcombine.high %v18311_v47, %v18311_v47  ;;  %v15875_v33 = vrot.slane %v3249_v5, %v14354_v60  ;;  %v15969_v5 = vrot.slane %v1591_v24, %v14354_v60  ;;  %v660_v47 = vrot.slane %v15959_v53, %v14383_v19 }
 0x29c   : > { %v1177_v26 = vpop.permute.xlu1 %1176 }
 0x29d   : > { %1213 = vst.msk [vmem:[#allocation2 + $0x123] sm:$0x1] %vm717_vm2, %v1177_v26  ;;  %v935_v9 = vpop.permute.xlu0 %934  ;;  %v1675_v26 = vrot.slane %v15835_v56, %v14383_v19  ;;  %v15891_v43 = vrot.slane %v3011_v51, %v14354_v60 }
 0x29e   : > { %2432 = vrot.lane.b32.xlu1 %v2393_v17, %s14097_s17  ;;  %971 = vst.msk [vmem:[#allocation2 + $0x122] sm:$0x1] %vm717_vm2, %v935_v9  ;;  %v15872_v17 = vrot.slane %v15849_v49, %v14354_v60 }
 0x29f   : > { %3146 = vrot.lane.b32.xlu0 %v3107_v25, %s14099_s19  ;;  %v2397_v25 = vrot.slane %v15846_v46, %v14383_v19 }
 0x2a0   : > { %v1953_v20 = vpop.permute.xlu1 %1952  ;;  %v2873_v16 = vrot.slane %v15872_v17, %v14383_v19 }
 0x2a1   : > { %1989 = vst.msk [vmem:[#allocation2 + $0x127] sm:$0x1] %vm717_vm2, %v1953_v20  ;;  %v1711_v50 = vpop.permute.xlu0 %1710  ;;  %v18313_v20 = vld [vmem:[#allocation15_spill] sm:$0xff] }
 0x2a2   : > { %2908 = vrot.lane.b32.xlu1 %v2869_v63, %s14098_s18  ;;  %1747 = vst.msk [vmem:[#allocation2 + $0x126] sm:$0x1] %vm717_vm2, %v1711_v50  ;;  %v3487_v63 = vcombine.high %v18313_v20, %v18313_v20  ;;  %v2159_v50 = vrot.slane %v15862_v3, %v14383_v19 }
 0x2a3   : > { %3622 = vrot.lane.b32.xlu0 %v3583_v21, %s14100_s20  ;;  %v15904_v21 = vrot.slane %v15875_v33, %v14354_v60 }
 0x2a4   : > { %v676_v2 = vpop.permute.xlu1 %675 }
 0x2a5   : > { %721 = vst.msk [vmem:[#allocation2 + $0x61] sm:$0x1] %vm717_vm2, %v676_v2  ;;  %v919_v12 = vpop.permute.xlu0 %918  ;;  %v15915_v2 = vrot.slane %v15891_v43, %v14354_v60  ;;  %v3349_v23 = vrot.slane %v15904_v21, %v14383_v19 }
 0x2a6   : > { %3384 = vrot.lane.b32.xlu1 %v3345_v22, %s14099_s19  ;;  %963 = vst.msk [vmem:[#allocation2 + $0x62] sm:$0x1] %vm717_vm2, %v919_v12  ;;  %v15918_v22 = vrot.slane %v3487_v63, %v14354_v60  ;;  %v15928_v12 = vrot.slane %v15907_v39, %v14354_v60  ;;  %v3027_v63 = vcombine.high %v15891_v43, %v15891_v43 }
 0x2a7   : > { %693 = vrot.lane.b32.xlu0 %v656_v59, %s14096_s16 }
 0x2a8   : > { %v1161_v36 = vpop.permute.xlu1 %1160  ;;  %v3825_v31 = vrot.slane %v15928_v12, %v14383_v19 }
 0x2a9   : > { %1205 = vst.msk [vmem:[#allocation2 + $0x63] sm:$0x1] %vm717_vm2, %v1161_v36  ;;  %v1695_v30 = vpop.permute.xlu0 %1694  ;;  %v15938_v36 = vrot.slane %v15918_v22, %v14354_v60 }
 0x2aa   : > { %3860 = vrot.lane.b32.xlu1 %v3821_v48, %s14100_s20  ;;  %1739 = vst.msk [vmem:[#allocation2 + $0x66] sm:$0x1] %vm717_vm2, %v1695_v30  ;;  %v3111_v48 = vrot.slane %v15915_v2, %v14383_v19  ;;  %v15950_v30 = vrot.slane %v815_v32, %v14354_v60  ;;  %v16027_v32 = vrot.slane %v3027_v63, %v14354_v60 }
 0x2ab   : > { %1178 = vrot.lane.b32.xlu0 %v1141_v45, %s14096_s16  ;;  %v1057_v45 = vcombine.high %v15774_v34, %v15774_v34  ;;  %v3587_v35 = vrot.slane %v15938_v36, %v14383_v19  ;;  %v2343_v63 = vcombine.high %v15846_v46, %v15846_v46  ;;  %v2819_v46 = vcombine.high %v15872_v17, %v15872_v17 }
 0x2ac   : > { %v1937_v52 = vpop.permute.xlu1 %1936  ;;  %v903_v34 = vrot.slane %v15950_v30, %v14383_v19 }
 0x2ad   : > { %1981 = vst.msk [vmem:[#allocation2 + $0x67] sm:$0x1] %vm717_vm2, %v1937_v52  ;;  %v2179_v61 = vpop.permute.xlu0 %2178  ;;  %v369_v52 = vld [vmem:[%s14217_s15 + $0xd8] sm:$0xff]  ;;  %v15979_v51 = vrot.slane %v1057_v45, %v14354_v60 }
 0x2ae   : > { %936 = vrot.lane.b32.xlu1 %v899_v27, %s14096_s16  ;;  %2223 = vst.msk [vmem:[#allocation2 + $0x68] sm:$0x1] %vm717_vm2, %v2179_v61  ;;  %v2075_v27 = vcombine.high %v15838_v15, %v15838_v15  ;;  %v1833_v61 = vcombine.high %v15797_v38, %v15797_v38  ;;  %v1679_v38 = vrot.slane %v15969_v5, %v14383_v19 }
 0x2af   : > { %1954 = vrot.lane.b32.xlu0 %v1917_v29, %s14094_s11  ;;  %403 = vst.msk [vmem:[#allocation2 + $0x159] sm:$0xff] %vm375_vm1, %v369_v52  ;;  %v1145_v55 = vrot.slane %v15979_v51, %v14383_v19 }
 0x2b0   : > { %v2417_v37 = vpop.permute.xlu1 %2416  ;;  %v15990_v6 = vrot.slane %v2075_v27, %v14354_v60  ;;  %v15999_v20 = vrot.slane %v1833_v61, %v14354_v60  ;;  %v371_v61 = vld [vmem:[%s14217_s15 + $0xe8] sm:$0xff] }
 0x2b1   : > { %2461 = vst.msk [vmem:[#allocation2 + $0x69] sm:$0x1] %vm717_vm2, %v2417_v37  ;;  %v2655_v9 = vpop.permute.xlu0 %2654  ;;  %v4150_v37 = vld [vmem:[#allocation2 + $0x78] sm:$0xff] }
 0x2b2   : > { %1712 = vrot.lane.b32.xlu1 %v1675_v26, %s14094_s11  ;;  %2699 = vst.msk [vmem:[#allocation2 + $0x6a] sm:$0x1] %vm717_vm2, %v2655_v9  ;;  %v2551_v26 = vcombine.high %v15857_v18, %v15857_v18  ;;  %v2313_v9 = vcombine.high %v15823_v11, %v15823_v11  ;;  %v4151_v18 = vld [vmem:[#allocation2 + $0x80] sm:$0xff]  ;;  %v2163_v11 = vrot.slane %v15990_v6, %v14383_v19 }
 0x2b3   : > { %2434 = vrot.lane.b32.xlu0 %v2397_v25, %s14097_s17  ;;  %v1921_v43 = vrot.slane %v15999_v20, %v14383_v19  ;;  %405 = vst.msk [vmem:[#allocation2 + $0x171] sm:$0xff] %vm375_vm1, %v371_v61  ;;  %v16149_v61 = vld [vmem:[%s18096_s3 + $0x8] sm:$0xf] }
 0x2b4   : > { %v2893_v58 = vpop.permute.xlu1 %2892  ;;  %v4148_v0 = vld [vmem:[#allocation2 + $0x60] sm:$0xff]  ;;  %12693 = vmatprep.subr.msk.mxu1 %vm4269_vm3, %v16149_v61 }
 0x2b5   : > { %2937 = vst.msk [vmem:[#allocation2 + $0x6b] sm:$0x1] %vm717_vm2, %v2893_v58  ;;  %12607 = vmatprep.mubr.msk.f32.mxu1 %vm296_vm4, %v4148_v0  ;;  %v3131_v4 = vpop.permute.xlu0 %3130  ;;  %v16009_v0 = vrot.slane %v2551_v26, %v14354_v60  ;;  %v845_v26 = vcombine.high %v15808_v42, %v15808_v42  ;;  %v1621_v42 = vcombine.high %v15835_v56, %v15835_v56 }
 0x2b6   : > { %2196 = vrot.lane.b32.xlu1 %v2159_v50, %s14097_s17  ;;  %3175 = vst.msk [vmem:[#allocation2 + $0x6c] sm:$0x1] %vm717_vm2, %v3131_v4  ;;  %v2789_v50 = vcombine.high %v15849_v49, %v15849_v49  ;;  %v2105_v56 = vcombine.high %v15862_v3, %v15862_v3  ;;  %v2581_v3 = vcombine.high %v15884_v13, %v15884_v13 }
 0x2b7   : > { %2910 = vrot.lane.b32.xlu0 %v2873_v16, %s14098_s18  ;;  %v16018_v16 = vrot.slane %v2313_v9, %v14354_v60  ;;  %v2639_v49 = vrot.slane %v16009_v0, %v14383_v19 }
 0x2b8   : > { %v3369_v28 = vpop.permute.xlu1 %3368 }
 0x2b9   : > { %3413 = vst.msk [vmem:[#allocation2 + $0x6d] sm:$0x1] %vm717_vm2, %v3369_v28  ;;  %v3607_v59 = vpop.permute.xlu0 %3606  ;;  %v3503_v28 = vcombine.high %v15918_v22, %v15918_v22  ;;  %v2401_v22 = vrot.slane %v16018_v16, %v14383_v19 }
 0x2ba   : > { %2672 = vrot.lane.b32.xlu1 %v2635_v57, %s14098_s18  ;;  %3651 = vst.msk [vmem:[#allocation2 + $0x6e] sm:$0x1] %vm717_vm2, %v3607_v59  ;;  %v3265_v59 = vcombine.high %v15875_v33, %v15875_v33  ;;  %v3115_v33 = vrot.slane %v16027_v32, %v14383_v19 }
 0x2bb   : > { %3386 = vrot.lane.b32.xlu0 %v3349_v23, %s14099_s19  ;;  %v16044_v24 = vrot.slane %v3503_v28, %v14354_v60 }
 0x2bc   : > { %v3845_v14 = vpop.permute.xlu1 %3844 }
 0x2bd   : > { %3889 = vst.msk [vmem:[#allocation2 + $0x6f] sm:$0x1] %vm717_vm2, %v3845_v14  ;;  %v923_v7 = vpop.permute.xlu0 %922  ;;  %v16036_v14 = vrot.slane %v2789_v50, %v14354_v60  ;;  %v3591_v52 = vrot.slane %v16044_v24, %v14383_v19 }
 0x2be   : > { %3148 = vrot.lane.b32.xlu1 %v3111_v48, %s14099_s19  ;;  %965 = vst.msk [vmem:[#allocation2 + $0x92] sm:$0x1] %vm717_vm2, %v923_v7  ;;  %v3741_v7 = vcombine.high %v15907_v39, %v15907_v39  ;;  %v602_v39 = vcombine.high %v15771_v40, %v15771_v40  ;;  %v1087_v40 = vcombine.high %v15794_v1, %v15794_v1 }
 0x2bf   : > { %3862 = vrot.lane.b32.xlu0 %v3825_v31, %s14100_s20  ;;  %v2877_v45 = vrot.slane %v16036_v14, %v14383_v19 }
 0x2c0   : > { %v680_v8 = vpop.permute.xlu1 %679  ;;  %v1149_v1 = vrot.slane %v1087_v40, %v14383_v19 }
 0x2c1   : > { %723 = vst.msk [vmem:[#allocation2 + $0x91] sm:$0x1] %vm717_vm2, %v680_v8  ;;  %v1699_v62 = vpop.permute.xlu0 %1698  ;;  %v16053_v8 = vrot.slane %v3265_v59, %v14354_v60 }
 0x2c2   : > { %3624 = vrot.lane.b32.xlu1 %v3587_v35, %s14100_s20  ;;  %1741 = vst.msk [vmem:[#allocation2 + $0x96] sm:$0x1] %vm717_vm2, %v1699_v62 }
 0x2c3   : > { %938 = vrot.lane.b32.xlu0 %v903_v34, %s14096_s16  ;;  %v3353_v62 = vrot.slane %v16053_v8, %v14383_v19  ;;  %v16066_v34 = vrot.slane %v3741_v7, %v14354_v60 }
 0x2c4   : > { %v1165_v29 = vpop.permute.xlu1 %1164  ;;  %v4149_v15 = vld [vmem:[#allocation2 + $0x68] sm:$0xff] }
 0x2c5   : > { %1207 = vst.msk [vmem:[#allocation2 + $0x93] sm:$0x1] %vm717_vm2, %v1165_v29  ;;  %12608 = vmatmul.mubr.msk.f32.gmra.mrb[8].mxu1 %vm296_vm4, %v4149_v15  ;;  %v2183_v54 = vpop.permute.xlu0 %2182  ;;  %v664_v15 = vrot.slane %v602_v39, %v14383_v19 }
 0x2c6   : > { %695 = vrot.lane.b32.xlu1 %v660_v47, %s14096_s16  ;;  %12610 = vmatprep.mubr.msk.f32.mxu1 %vm296_vm4, %v4150_v37  ;;  %2225 = vst.msk [vmem:[#allocation2 + $0x98] sm:$0x1] %vm717_vm2, %v2183_v54  ;;  %v3829_v37 = vrot.slane %v16066_v34, %v14383_v19 }
 0x2c7   : > { %1714 = vrot.lane.b32.xlu0 %v1679_v38, %s14094_s11  ;;  %v1863_v38 = vcombine.high %v15820_v44, %v15820_v44 }
 0x2c8   : > { %v1941_v25 = vpop.permute.xlu1 %1940 }
 0x2c9   : > { %1983 = vst.msk [vmem:[#allocation2 + $0x97] sm:$0x1] %vm717_vm2, %v1941_v25  ;;  %12611 = vmatmul.mubr.msk.f32.gmra.mrb[10].mxu1 %vm296_vm4, %v4151_v18  ;;  %v2659_v58 = vpop.permute.xlu0 %2658  ;;  %v907_v18 = vrot.slane %v845_v26, %v14383_v19  ;;  %v1925_v44 = vrot.slane %v1863_v38, %v14383_v19 }
 0x2ca   : > { %1180 = vrot.lane.b32.xlu1 %v1145_v55, %s14096_s16  ;;  %2701 = vst.msk [vmem:[#allocation2 + $0x9a] sm:$0x1] %vm717_vm2, %v2659_v58 }
 0x2cb   : > { %2198 = vrot.lane.b32.xlu0 %v2163_v11, %s14097_s17  ;;  %v1683_v11 = vrot.slane %v1621_v42, %v14383_v19 }
 0x2cc   : > { %v2421_v4 = vpop.permute.xlu1 %2420 }
 0x2cd   : > { %2463 = vst.msk [vmem:[#allocation2 + $0x99] sm:$0x1] %vm717_vm2, %v2421_v4  ;;  %v3135_v57 = vpop.permute.xlu0 %3134  ;;  %v2405_v4 = vrot.slane %v2343_v63, %v14383_v19 }
 0x2ce   : > { %1956 = vrot.lane.b32.xlu1 %v1921_v43, %s14094_s11  ;;  %3177 = vst.msk [vmem:[#allocation2 + $0x9c] sm:$0x1] %vm717_vm2, %v3135_v57  ;;  %v2167_v57 = vrot.slane %v2105_v56, %v14383_v19 }
 0x2cf   : > { %2674 = vrot.lane.b32.xlu0 %v2639_v49, %s14098_s18  ;;  %v18314_v49 = vld [vmem:[#allocation4_spill] sm:$0xff] }
 0x2d0   : > { %v2897_v23 = vpop.permute.xlu1 %2896  ;;  %v4152_v41 = vld [vmem:[#allocation2 + $0x90] sm:$0xff]  ;;  %v3913_v17 = vrot.slane %v18314_v49, %v14354_v60 }
 0x2d1   : > { %2939 = vst.msk [vmem:[#allocation2 + $0x9b] sm:$0x1] %vm717_vm2, %v2897_v23  ;;  %12613 = vmatprep.mubr.msk.f32.mxu1 %vm296_vm4, %v4152_v41  ;;  %v3611_v48 = vpop.permute.xlu0 %3610  ;;  %v2881_v23 = vrot.slane %v2819_v46, %v14383_v19  ;;  %v3295_v41 = vcombine.high %v15904_v21, %v15904_v21 }
 0x2d2   : > { %2436 = vrot.lane.b32.xlu1 %v2401_v22, %s14097_s17  ;;  %3653 = vst.msk [vmem:[#allocation2 + $0x9e] sm:$0x1] %vm717_vm2, %v3611_v48  ;;  %v2643_v22 = vrot.slane %v2581_v3, %v14383_v19  ;;  %v3057_v48 = vcombine.high %v15915_v2, %v15915_v2  ;;  %v3921_v7 = vcombine.high %v3913_v17, %v3913_v17 }
 0x2d3   : > { %3150 = vrot.lane.b32.xlu0 %v3115_v33, %s14099_s19  ;;  %v3906_v33 = vcombine.high %v18314_v49, %v18314_v49  ;;  %v3357_v21 = vrot.slane %v3295_v41, %v14383_v19 }
 0x2d4   : > { %v3373_v31 = vpop.permute.xlu1 %3372  ;;  %v3119_v2 = vrot.slane %v3057_v48, %v14383_v19 }
 0x2d5   : > { %3415 = vst.msk [vmem:[#allocation2 + $0x9d] sm:$0x1] %vm717_vm2, %v3373_v31  ;;  %v682_v35 = vpop.permute.xlu0 %681  ;;  %v3920_v39 = vrot.slane %v3906_v33, %v14354_v60 }
 0x2d6   : > { %2912 = vrot.lane.b32.xlu1 %v2877_v45, %s14098_s18  ;;  %724 = vst.msk [vmem:[#allocation2 + $0xa9] sm:$0x1] %vm717_vm2, %v682_v35  ;;  %v3771_v45 = vcombine.high %v15928_v12, %v15928_v12  ;;  %v3943_v12 = vrot.slane %v3921_v7, %v14354_v60 }
 0x2d7   : > { %3626 = vrot.lane.b32.xlu0 %v3591_v52, %s14100_s20  ;;  %v3533_v52 = vcombine.high %v15938_v36, %v15938_v36  ;;  %v3922_v26 = vcombine.high %v3920_v39, %v3920_v39 }
 0x2d8   : > { %v3849_v27 = vpop.permute.xlu1 %3848 }
 0x2d9   : > { %3891 = vst.msk [vmem:[#allocation2 + $0x9f] sm:$0x1] %vm717_vm2, %v3849_v27  ;;  %v1167_v29 = vpop.permute.xlu0 %1166 }
 0x2da   : > { %3388 = vrot.lane.b32.xlu1 %v3353_v62, %s14099_s19  ;;  %1208 = vst.msk [vmem:[#allocation2 + $0xab] sm:$0x1] %vm717_vm2, %v1167_v29  ;;  %v3833_v62 = vrot.slane %v3771_v45, %v14383_v19  ;;  %v3595_v29 = vrot.slane %v3533_v52, %v14383_v19 }
 0x2db   : > { %697 = vrot.lane.b32.xlu0 %v664_v15, %s14096_s16  ;;  %v3929_v15 = vrot.slane %v3913_v17, %v14354_v60 }
 0x2dc   : > { %v925_v47 = vpop.permute.xlu1 %924 }
 0x2dd   : > { %966 = vst.msk [vmem:[#allocation2 + $0xaa] sm:$0x1] %vm717_vm2, %v925_v47  ;;  %v1943_v54 = vpop.permute.xlu0 %1942  ;;  %v4011_v47 = vrot.slane %v3943_v12, %v14383_v19  ;;  %v4007_v38 = vrot.slane %v3929_v15, %v14383_v19 }
 0x2de   : > { %3864 = vrot.lane.b32.xlu1 %v3829_v37, %s14100_s20  ;;  %1984 = vst.msk [vmem:[#allocation2 + $0xaf] sm:$0x1] %vm717_vm2, %v1943_v54  ;;  %v3953_v37 = vcombine.high %v3943_v12, %v3943_v12 }
 0x2df   : > { %1182 = vrot.lane.b32.xlu0 %v1149_v1, %s14096_s16 }
 0x2e0   : > { %v1701_v9 = vpop.permute.xlu1 %1700  ;;  %v4153_v25 = vld [vmem:[#allocation2 + $0x98] sm:$0xff] }
 0x2e1   : > { %1742 = vst.msk [vmem:[#allocation2 + $0xae] sm:$0x1] %vm717_vm2, %v1701_v9  ;;  %12614 = vmatmul.mubr.msk.f32.gmra.mrb[12].mxu1 %vm296_vm4, %v4153_v25  ;;  %v2423_v55 = vpop.permute.xlu0 %2422  ;;  %v3951_v9 = vcombine.high %v3929_v15, %v3929_v15  ;;  %v18315_v25 = vld [vmem:[#allocation3_spill] sm:$0xff] }
 0x2e2   : > { %940 = vrot.lane.b32.xlu1 %v907_v18, %s14096_s16  ;;  %2464 = vst.msk [vmem:[#allocation2 + $0xb1] sm:$0x1] %vm717_vm2, %v2423_v55  ;;  %v3962_v18 = vrot.slane %v18315_v25, %v14354_v60  ;;  %v4019_v55 = vrot.slane %v3953_v37, %v14383_v19  ;;  %v3955_v10 = vcombine.high %v18315_v25, %v18315_v25 }
 0x2e3   : > { %1958 = vrot.lane.b32.xlu0 %v1925_v44, %s14094_s11  ;;  %v3950_v44 = vrot.slane %v3922_v26, %v14354_v60 }
 0x2e4   : > { %v2185_v58 = vpop.permute.xlu1 %2184  ;;  %v3970_v56 = vcombine.high %v3962_v18, %v3962_v18  ;;  %v3969_v49 = vrot.slane %v3955_v10, %v14354_v60  ;;  %v3978_v41 = vrot.slane %v3962_v18, %v14354_v60  ;;  %v1623_v10 = vcombine.high %v15969_v5, %v15969_v5 }
 0x2e5   : > { %2226 = vst.msk [vmem:[#allocation2 + $0xb0] sm:$0x1] %vm717_vm2, %v2185_v58  ;;  %v2899_v50 = vpop.permute.xlu0 %2898  ;;  %v4015_v58 = vrot.slane %v3951_v9, %v14383_v19  ;;  %v3954_v46 = vcombine.high %v3950_v44, %v3950_v44  ;;  %v1089_v9 = vcombine.high %v15979_v51, %v15979_v51  ;;  %v16245_v51 = vld [vmem:[#allocation2 + $0xd8] sm:$0xff] }
 0x2e6   : > { %1716 = vrot.lane.b32.xlu1 %v1683_v11, %s14094_s11  ;;  %2940 = vst.msk [vmem:[#allocation2 + $0xb3] sm:$0x1] %vm717_vm2, %v2899_v50  ;;  %v3936_v11 = vrot.slane %v3920_v39, %v14354_v60  ;;  %v3971_v33 = vcombine.high %v3969_v49, %v3969_v49 }
 0x2e7   : > { %2438 = vrot.lane.b32.xlu0 %v2405_v4, %s14097_s17  ;;  %v4027_v4 = vrot.slane %v3950_v44, %v14383_v19  ;;  %v1153_v44 = vrot.slane %v1089_v9, %v14383_v19 }
 0x2e8   : > { %v2661_v43 = vpop.permute.xlu1 %2660  ;;  %v16109_v28 = vld [vmem:[#allocation2 + $0xa8] sm:$0xff]  ;;  %v3952_v3 = vcombine.high %v3936_v11, %v3936_v11 }
 0x2e9   : > { %2702 = vst.msk [vmem:[#allocation2 + $0xb2] sm:$0x1] %vm717_vm2, %v2661_v43  ;;  %12616 = vmatprep.mubr.msk.f32.mxu1 %vm296_vm4, %v16109_v28  ;;  %v3375_v59 = vpop.permute.xlu0 %3374 }
 0x2ea   : > { %2200 = vrot.lane.b32.xlu1 %v2167_v57, %s14097_s17  ;;  %3416 = vst.msk [vmem:[#allocation2 + $0xb5] sm:$0x1] %vm717_vm2, %v3375_v59  ;;  %v4023_v57 = vrot.slane %v3936_v11, %v14383_v19  ;;  %v4035_v59 = vrot.slane %v3954_v46, %v14383_v19  ;;  %v4031_v48 = vrot.slane %v3952_v3, %v14383_v19  ;;  %v16273_v46 = vld [vmem:[#allocation2 + $0xf8] sm:$0xff]  ;;  %v16281_v3 = vld [vmem:[#allocation2 + $0x108] sm:$0xff] }
 0x2eb   : > { %2914 = vrot.lane.b32.xlu0 %v2881_v23, %s14098_s18  ;;  %v3992_v23 = vrot.slane %v3970_v56, %v14354_v60  ;;  %v16263_v56 = vld [vmem:[#allocation2 + $0xf0] sm:$0xff] }
 0x2ec   : > { %v3137_v13 = vpop.permute.xlu1 %3136 }
 0x2ed   : > { %3178 = vst.msk [vmem:[#allocation2 + $0xb4] sm:$0x1] %vm717_vm2, %v3137_v13  ;;  %v3851_v31 = vpop.permute.xlu0 %3850 }
 0x2ee   : > { %2676 = vrot.lane.b32.xlu1 %v2643_v22, %s14098_s18  ;;  %3892 = vst.msk [vmem:[#allocation2 + $0xb7] sm:$0x1] %vm717_vm2, %v3851_v31  ;;  %v4043_v31 = vrot.slane %v3992_v23, %v14383_v19 }
 0x2ef   : > { %3390 = vrot.lane.b32.xlu0 %v3357_v21, %s14099_s19  ;;  %v4002_v21 = vcombine.high %v3992_v23, %v3992_v23 }
 0x2f0   : > { %v3613_v35 = vpop.permute.xlu1 %3612 }
 0x2f1   : > { %3654 = vst.msk [vmem:[#allocation2 + $0xb6] sm:$0x1] %vm717_vm2, %v3613_v35  ;;  %v927_v27 = vpop.permute.xlu0 %926  ;;  %v4039_v35 = vrot.slane %v3978_v41, %v14383_v19  ;;  %v4051_v39 = vrot.slane %v4002_v21, %v14383_v19  ;;  %v3059_v21 = vcombine.high %v16027_v32, %v16027_v32 }
 0x2f2   : > { %3152 = vrot.lane.b32.xlu1 %v3119_v2, %s14099_s19  ;;  %967 = vst.msk [vmem:[#allocation2 + $0xc2] sm:$0x1] %vm717_vm2, %v927_v27  ;;  %v4000_v2 = vcombine.high %v3978_v41, %v3978_v41  ;;  %v16213_v27 = vrot.slane %v3971_v33, %v14354_v60  ;;  %v2583_v41 = vcombine.high %v16009_v0, %v16009_v0 }
 0x2f3   : > { %3866 = vrot.lane.b32.xlu0 %v3833_v62, %s14100_s20  ;;  %v3297_v33 = vcombine.high %v16053_v8, %v16053_v8  ;;  %v3123_v32 = vrot.slane %v3059_v21, %v14383_v19  ;;  %v4530_v21 = vld [vmem:[#allocation2 + $0x1] sm:$0xff] }
 0x2f4   : > { %v684_v36 = vpop.permute.xlu1 %683  ;;  %v4047_v12 = vrot.slane %v4000_v2, %v14383_v19  ;;  %v4059_v15 = vrot.slane %v16213_v27, %v14383_v19 }
 0x2f5   : > { %725 = vst.msk [vmem:[#allocation2 + $0xc1] sm:$0x1] %vm717_vm2, %v684_v36  ;;  %v1703_v40 = vpop.permute.xlu0 %1702  ;;  %v3985_v36 = vrot.slane %v3969_v49, %v14354_v60  ;;  %v373_v60 = vld [vmem:[%s14217_s15 + $0xf8] sm:$0xff]  ;;  %v3361_v8 = vrot.slane %v3297_v33, %v14383_v19 }
 0x2f6   : > { %3628 = vrot.lane.b32.xlu1 %v3595_v29, %s14100_s20  ;;  %1743 = vst.msk [vmem:[#allocation2 + $0xc6] sm:$0x1] %vm717_vm2, %v1703_v40  ;;  %v604_v40 = vcombine.high %v15959_v53, %v15959_v53 }
 0x2f7   : > { %4070 = vrot.lane.b32.xlu0 %v4011_v47, %s14102_s29  ;;  %v4055_v37 = vrot.slane %v3985_v36, %v14383_v19  ;;  %v4001_v26 = vcombine.high %v3985_v36, %v3985_v36  ;;  %407 = vst.msk [vmem:[#allocation2 + $0x189] sm:$0xff] %vm375_vm1, %v373_v60 }
 0x2f8   : > { %v1169_v54 = vpop.permute.xlu1 %1168  ;;  %v16161_v1 = vld [vmem:[#allocation2 + $0xb0] sm:$0xff] }
 0x2f9   : > { %1209 = vst.msk [vmem:[#allocation2 + $0xc3] sm:$0x1] %vm717_vm2, %v1169_v54  ;;  %12617 = vmatmul.mubr.msk.f32.gmra.mrb[14].mxu1 %vm296_vm4, %v16161_v1  ;;  %v2187_v42 = vpop.permute.xlu0 %2186  ;;  %v4063_v18 = vrot.slane %v4001_v26, %v14383_v19 }
 0x2fa   : > { %4068 = vrot.lane.b32.xlu1 %v4007_v38, %s14102_s29  ;;  %2227 = vst.msk [vmem:[#allocation2 + $0xc8] sm:$0x1] %vm717_vm2, %v2187_v42  ;;  %v668_v38 = vrot.slane %v604_v40, %v14383_v19  ;;  %v847_v42 = vcombine.high %v15950_v30, %v15950_v30 }
 0x2fb   : > { %4074 = vrot.lane.b32.xlu0 %v4019_v55, %s14102_s29 }
 0x2fc   : > { %v1945_v63 = vpop.permute.xlu1 %1944  ;;  %v911_v11 = vrot.slane %v847_v42, %v14383_v19 }
 0x2fd   : > { %1985 = vst.msk [vmem:[#allocation2 + $0xc7] sm:$0x1] %vm717_vm2, %v1945_v63  ;;  %v2663_v50 = vpop.permute.xlu0 %2662  ;;  %v1865_v63 = vcombine.high %v15999_v20, %v15999_v20 }
 0x2fe   : > { %4072 = vrot.lane.b32.xlu1 %v4015_v58, %s14102_s29  ;;  %2703 = vst.msk [vmem:[#allocation2 + $0xca] sm:$0x1] %vm717_vm2, %v2663_v50  ;;  %v16255_v58 = vld [vmem:[#allocation2 + $0xe0] sm:$0xff] }
 0x2ff   : > { %4078 = vrot.lane.b32.xlu0 %v4027_v4, %s14102_s29  ;;  %v1929_v50 = vrot.slane %v1865_v63, %v14383_v19  ;;  %v2345_v4 = vcombine.high %v16018_v16, %v16018_v16 }
 0x300   : > { %v2425_v43 = vpop.permute.xlu1 %2424 }
 0x301   : > { %2465 = vst.msk [vmem:[#allocation2 + $0xc9] sm:$0x1] %vm717_vm2, %v2425_v43  ;;  %v3139_v17 = vpop.permute.xlu0 %3138  ;;  %v1687_v43 = vrot.slane %v1623_v10, %v14383_v19  ;;  %v2409_v49 = vrot.slane %v2345_v4, %v14383_v19 }
 0x302   : > { %4076 = vrot.lane.b32.xlu1 %v4023_v57, %s14102_s29  ;;  %3179 = vst.msk [vmem:[#allocation2 + $0xcc] sm:$0x1] %vm717_vm2, %v3139_v17  ;;  %v2107_v57 = vcombine.high %v15990_v6, %v15990_v6  ;;  %v2821_v17 = vcombine.high %v16036_v14, %v16036_v14 }
 0x303   : > { %4082 = vrot.lane.b32.xlu0 %v4035_v59, %s14102_s29  ;;  %v16291_v59 = vld [vmem:[#allocation2 + $0x110] sm:$0xff] }
 0x304   : > { %v2901_v13 = vpop.permute.xlu1 %2900  ;;  %v16198_v22 = vld [vmem:[#allocation2 + $0xc0] sm:$0xff]  ;;  %v2171_v23 = vrot.slane %v2107_v57, %v14383_v19 }
 0x305   : > { %2941 = vst.msk [vmem:[#allocation2 + $0xcb] sm:$0x1] %vm717_vm2, %v2901_v13  ;;  %12619 = vmatprep.mubr.msk.f32.mxu1 %vm296_vm4, %v16198_v22  ;;  %v3615_v7 = vpop.permute.xlu0 %3614  ;;  %v16299_v13 = vld [vmem:[#allocation2 + $0x120] sm:$0xff] }
 0x306   : > { %4080 = vrot.lane.b32.xlu1 %v4031_v48, %s14102_s29  ;;  %3655 = vst.msk [vmem:[#allocation2 + $0xce] sm:$0x1] %vm717_vm2, %v3615_v7  ;;  %v2885_v48 = vrot.slane %v2821_v17, %v14383_v19 }
 0x307   : > { %4086 = vrot.lane.b32.xlu0 %v4043_v31, %s14102_s29  ;;  %v2647_v31 = vrot.slane %v2583_v41, %v14383_v19 }
 0x308   : > { %v3377_v45 = vpop.permute.xlu1 %3376 }
 0x309   : > { %3417 = vst.msk [vmem:[#allocation2 + $0xcd] sm:$0x1] %vm717_vm2, %v3377_v45  ;;  %v2195_v52 = vpop.permute.xlu0 %2194 }
 0x30a   : > { %4084 = vrot.lane.b32.xlu1 %v4039_v35, %s14102_s29  ;;  %2231 = vst.msk [vmem:[#allocation2 + $0x128] sm:$0x1] %vm717_vm2, %v2195_v52  ;;  %v3773_v35 = vcombine.high %v16066_v34, %v16066_v34  ;;  %v3535_v52 = vcombine.high %v16044_v24, %v16044_v24 }
 0x30b   : > { %4090 = vrot.lane.b32.xlu0 %v4051_v39, %s14102_s29 }
 0x30c   : > { %v3853_v62 = vpop.permute.xlu1 %3852  ;;  %v3599_v36 = vrot.slane %v3535_v52, %v14383_v19  ;;  %v16401_v52 = vld [vmem:[%s18096_s3 + $0xc] sm:$0xf] }
 0x30d   : > { %3893 = vst.msk [vmem:[#allocation2 + $0xcf] sm:$0x1] %vm717_vm2, %v3853_v62  ;;  %v2671_v29 = vpop.permute.xlu0 %2670  ;;  %v3837_v62 = vrot.slane %v3773_v35, %v14383_v19 }
 0x30e   : > { %4088 = vrot.lane.b32.xlu1 %v4047_v12, %s14102_s29  ;;  %2707 = vst.msk [vmem:[#allocation2 + $0x12a] sm:$0x1] %vm717_vm2, %v2671_v29  ;;  %v4003_v29 = vcombine.high %v16213_v27, %v16213_v27 }
 0x30f   : > { %4094 = vrot.lane.b32.xlu0 %v4059_v15, %s14102_s29 }
 0x310   : > { %v2433_v47 = vpop.permute.xlu1 %2432  ;;  %v4067_v40 = vrot.slane %v4003_v29, %v14383_v19  ;;  %v16419_v29 = vld [vmem:[#allocation2 + $0x31] sm:$0xff] }
 0x311   : > { %2469 = vst.msk [vmem:[#allocation2 + $0x129] sm:$0x1] %vm717_vm2, %v2433_v47  ;;  %v3147_v54 = vpop.permute.xlu0 %3146 }
 0x312   : > { %4092 = vrot.lane.b32.xlu1 %v4055_v37, %s14102_s29  ;;  %3183 = vst.msk [vmem:[#allocation2 + $0x12c] sm:$0x1] %vm717_vm2, %v3147_v54 }
 0x313   : > { %699 = vrot.lane.b32.xlu0 %v668_v38, %s14096_s16 }
 0x314   : > { %v2909_v53 = vpop.permute.xlu1 %2908  ;;  %v16237_v25 = vld [vmem:[#allocation2 + $0xc8] sm:$0xff] }
 0x315   : > { %2945 = vst.msk [vmem:[#allocation2 + $0x12b] sm:$0x1] %vm717_vm2, %v2909_v53  ;;  %12620 = vmatmul.mubr.msk.f32.gmra.mrb[16].mxu1 %vm296_vm4, %v16237_v25  ;;  %v3623_v55 = vpop.permute.xlu0 %3622 }
 0x316   : > { %12622 = vmatprep.mubr.msk.f32.mxu1 %vm296_vm4, %v16245_v51  ;;  %4096 = vrot.lane.b32.xlu1 %v4063_v18, %s14102_s29  ;;  %3659 = vst.msk [vmem:[#allocation2 + $0x12e] sm:$0x1] %vm717_vm2, %v3623_v55 }
 0x317   : > { %1184 = vrot.lane.b32.xlu0 %v1153_v44, %s14096_s16 }
 0x318   : > { %v3385_v30 = vpop.permute.xlu1 %3384 }
 0x319   : > { %3421 = vst.msk [vmem:[#allocation2 + $0x12d] sm:$0x1] %vm717_vm2, %v3385_v30  ;;  %12623 = vmatmul.mubr.msk.f32.gmra.mrb[18].mxu1 %vm296_vm4, %v16255_v58  ;;  %v694_v20 = vpop.permute.xlu0 %693 }
 0x31a   : > { %12625 = vmatprep.mubr.msk.f32.mxu1 %vm296_vm4, %v16263_v56  ;;  %942 = vrot.lane.b32.xlu1 %v911_v11, %s14096_s16  ;;  %730 = vst.msk [vmem:[#allocation2 + $0x139] sm:$0x1] %vm717_vm2, %v694_v20 }
 0x31b   : > { %1960 = vrot.lane.b32.xlu0 %v1929_v50, %s14094_s11 }
 0x31c   : > { %v3861_v5 = vpop.permute.xlu1 %3860 }
 0x31d   : > { %3897 = vst.msk [vmem:[#allocation2 + $0x12f] sm:$0x1] %vm717_vm2, %v3861_v5  ;;  %12626 = vmatmul.mubr.msk.f32.gmra.mrb[20].mxu1 %vm296_vm4, %v16273_v46  ;;  %v1179_v16 = vpop.permute.xlu0 %1178 }
 0x31e   : > { %12628 = vmatprep.mubr.msk.f32.mxu1 %vm296_vm4, %v16281_v3  ;;  %1718 = vrot.lane.b32.xlu1 %v1687_v43, %s14094_s11  ;;  %1214 = vst.msk [vmem:[#allocation2 + $0x13b] sm:$0x1] %vm717_vm2, %v1179_v16 }
 0x31f   : > { %2440 = vrot.lane.b32.xlu0 %v2409_v49, %s14097_s17 }
 0x320   : > { %v937_v6 = vpop.permute.xlu1 %936 }
 0x321   : > { %972 = vst.msk [vmem:[#allocation2 + $0x13a] sm:$0x1] %vm717_vm2, %v937_v6  ;;  %12629 = vmatmul.mubr.msk.f32.gmra.mrb[22].mxu1 %vm296_vm4, %v16291_v59  ;;  %v1955_v14 = vpop.permute.xlu0 %1954 }
 0x322   : > { %12631 = vmatprep.mubr.msk.f32.mxu1 %vm296_vm4, %v16299_v13  ;;  %2202 = vrot.lane.b32.xlu1 %v2171_v23, %s14097_s17  ;;  %1990 = vst.msk [vmem:[#allocation2 + $0x13f] sm:$0x1] %vm717_vm2, %v1955_v14 }
 0x323   : > { %2916 = vrot.lane.b32.xlu0 %v2885_v48, %s14098_s18 }
 0x324   : > { %v1713_v0 = vpop.permute.xlu1 %1712  ;;  %v16309_v7 = vld [vmem:[#allocation2 + $0x128] sm:$0xff] }
 0x325   : > { %1748 = vst.msk [vmem:[#allocation2 + $0x13e] sm:$0x1] %vm717_vm2, %v1713_v0  ;;  %12632 = vmatmul.mubr.msk.f32.gmra.mrb[24].mxu1 %vm296_vm4, %v16309_v7  ;;  %v2435_v45 = vpop.permute.xlu0 %2434 }
 0x326   : > { %2678 = vrot.lane.b32.xlu1 %v2647_v31, %s14098_s18  ;;  %2470 = vst.msk [vmem:[#allocation2 + $0x141] sm:$0x1] %vm717_vm2, %v2435_v45 }
 0x327   : > { %3392 = vrot.lane.b32.xlu0 %v3361_v8, %s14099_s19 }
 0x328   : > { %v2197_v2 = vpop.permute.xlu1 %2196 }
 0x329   : > { %2232 = vst.msk [vmem:[#allocation2 + $0x140] sm:$0x1] %vm717_vm2, %v2197_v2  ;;  %v2911_v39 = vpop.permute.xlu0 %2910  ;;  %v4531_v2 = vld [vmem:[#allocation2 + $0x9] sm:$0xff] }
 0x32a   : > { %3154 = vrot.lane.b32.xlu1 %v3123_v32, %s14099_s19  ;;  %2946 = vst.msk [vmem:[#allocation2 + $0x143] sm:$0x1] %vm717_vm2, %v2911_v39  ;;  %v16405_v39 = vld [vmem:[#allocation2 + $0x19] sm:$0xff] }
 0x32b   : > { %3868 = vrot.lane.b32.xlu0 %v3837_v62, %s14100_s20 }
 0x32c   : > { %v2673_v34 = vpop.permute.xlu1 %2672  ;;  %v16331_v12 = vld [vmem:[#allocation2 + $0x138] sm:$0xff] }
 0x32d   : > { %2708 = vst.msk [vmem:[#allocation2 + $0x142] sm:$0x1] %vm717_vm2, %v2673_v34  ;;  %12634 = vmatprep.mubr.msk.f32.mxu1 %vm296_vm4, %v16331_v12  ;;  %v3387_v24 = vpop.permute.xlu0 %3386 }
 0x32e   : > { %3630 = vrot.lane.b32.xlu1 %v3599_v36, %s14100_s20  ;;  %3422 = vst.msk [vmem:[#allocation2 + $0x145] sm:$0x1] %vm717_vm2, %v3387_v24 }
 0x330   : > { %v3149_v15 = vpop.permute.xlu1 %3148 }
 0x331   : > { %3184 = vst.msk [vmem:[#allocation2 + $0x144] sm:$0x1] %vm717_vm2, %v3149_v15  ;;  %v3863_v47 = vpop.permute.xlu0 %3862 }
 0x332   : > { %4098 = vrot.lane.b32.xlu1 %v4067_v40, %s14102_s29  ;;  %3898 = vst.msk [vmem:[#allocation2 + $0x147] sm:$0x1] %vm717_vm2, %v3863_v47  ;;  %v16429_v40 = vld [vmem:[#allocation2 + $0x49] sm:$0xff] }
 0x334   : > { %v3625_v27 = vpop.permute.xlu1 %3624 }
 0x335   : > { %3660 = vst.msk [vmem:[#allocation2 + $0x146] sm:$0x1] %vm717_vm2, %v3625_v27  ;;  %v939_v37 = vpop.permute.xlu0 %938 }
 0x336   : > { %973 = vst.msk [vmem:[#allocation2 + $0x152] sm:$0x1] %vm717_vm2, %v939_v37 }
 0x338   : > { %v696_v26 = vpop.permute.xlu1 %695 }
 0x339   : > { %731 = vst.msk [vmem:[#allocation2 + $0x151] sm:$0x1] %vm717_vm2, %v696_v26  ;;  %v1715_v60 = vpop.permute.xlu0 %1714  ;;  %v16439_v26 = vld [vmem:[#allocation2 + $0x61] sm:$0xff] }
 0x33a   : > { %1749 = vst.msk [vmem:[#allocation2 + $0x156] sm:$0x1] %vm717_vm2, %v1715_v60 }
 0x33c   : > { %v1181_v19 = vpop.permute.xlu1 %1180  ;;  %v16349_v54 = vld [vmem:[#allocation2 + $0x140] sm:$0xff] }
 0x33d   : > { %1215 = vst.msk [vmem:[#allocation2 + $0x153] sm:$0x1] %vm717_vm2, %v1181_v19  ;;  %12635 = vmatmul.mubr.msk.f32.gmra.mrb[26].mxu1 %vm296_vm4, %v16349_v54  ;;  %v2199_v38 = vpop.permute.xlu0 %2198 }
 0x33e   : > { %2233 = vst.msk [vmem:[#allocation2 + $0x158] sm:$0x1] %vm717_vm2, %v2199_v38 }
 0x340   : > { %v1957_v9 = vpop.permute.xlu1 %1956 }
 0x341   : > { %1991 = vst.msk [vmem:[#allocation2 + $0x157] sm:$0x1] %vm717_vm2, %v1957_v9  ;;  %v2675_v53 = vpop.permute.xlu0 %2674  ;;  %v16449_v9 = vld [vmem:[#allocation2 + $0x79] sm:$0xff] }
 0x342   : > { %2709 = vst.msk [vmem:[#allocation2 + $0x15a] sm:$0x1] %vm717_vm2, %v2675_v53 }
 0x344   : > { %v2437_v18 = vpop.permute.xlu1 %2436 }
 0x345   : > { %2471 = vst.msk [vmem:[#allocation2 + $0x159] sm:$0x1] %vm717_vm2, %v2437_v18  ;;  %v3151_v42 = vpop.permute.xlu0 %3150 }
 0x346   : > { %3185 = vst.msk [vmem:[#allocation2 + $0x15c] sm:$0x1] %vm717_vm2, %v3151_v42 }
 0x348   : > { %v2913_v55 = vpop.permute.xlu1 %2912  ;;  %v16359_v44 = vld [vmem:[#allocation2 + $0x150] sm:$0xff] }
 0x349   : > { %2947 = vst.msk [vmem:[#allocation2 + $0x15b] sm:$0x1] %vm717_vm2, %v2913_v55  ;;  %12637 = vmatprep.mubr.msk.f32.mxu1 %vm296_vm4, %v16359_v44  ;;  %v3627_v63 = vpop.permute.xlu0 %3626  ;;  %v16459_v55 = vld [vmem:[#allocation2 + $0x91] sm:$0xff] }
 0x34a   : > { %3661 = vst.msk [vmem:[#allocation2 + $0x15e] sm:$0x1] %vm717_vm2, %v3627_v63 }
 0x34c   : > { %v3389_v30 = vpop.permute.xlu1 %3388 }
 0x34d   : > { %3423 = vst.msk [vmem:[#allocation2 + $0x15d] sm:$0x1] %vm717_vm2, %v3389_v30  ;;  %v698_v11 = vpop.permute.xlu0 %697 }
 0x34e   : > { %732 = vst.msk [vmem:[#allocation2 + $0x169] sm:$0x1] %vm717_vm2, %v698_v11 }
 0x350   : > { %v3865_v10 = vpop.permute.xlu1 %3864 }
 0x351   : > { %3899 = vst.msk [vmem:[#allocation2 + $0x15f] sm:$0x1] %vm717_vm2, %v3865_v10  ;;  %v1183_v20 = vpop.permute.xlu0 %1182  ;;  %v16469_v10 = vld [vmem:[#allocation2 + $0xa9] sm:$0xff] }
 0x352   : > { %1216 = vst.msk [vmem:[#allocation2 + $0x16b] sm:$0x1] %vm717_vm2, %v1183_v20 }
 0x354   : > { %v941_v50 = vpop.permute.xlu1 %940 }
 0x355   : > { %974 = vst.msk [vmem:[#allocation2 + $0x16a] sm:$0x1] %vm717_vm2, %v941_v50  ;;  %v1959_v4 = vpop.permute.xlu0 %1958 }
 0x356   : > { %1992 = vst.msk [vmem:[#allocation2 + $0x16f] sm:$0x1] %vm717_vm2, %v1959_v4 }
 0x358   : > { %v1717_v5 = vpop.permute.xlu1 %1716  ;;  %v16371_v43 = vld [vmem:[#allocation2 + $0x158] sm:$0xff] }
 0x359   : > { %1750 = vst.msk [vmem:[#allocation2 + $0x16e] sm:$0x1] %vm717_vm2, %v1717_v5  ;;  %12638 = vmatmul.mubr.msk.f32.gmra.mrb[28].mxu1 %vm296_vm4, %v16371_v43  ;;  %v2439_v57 = vpop.permute.xlu0 %2438  ;;  %v16479_v5 = vld [vmem:[#allocation2 + $0xc1] sm:$0xff] }
 0x35a   : > { %2472 = vst.msk [vmem:[#allocation2 + $0x171] sm:$0x1] %vm717_vm2, %v2439_v57 }
 0x35c   : > { %v2201_v16 = vpop.permute.xlu1 %2200 }
 0x35d   : > { %2234 = vst.msk [vmem:[#allocation2 + $0x170] sm:$0x1] %vm717_vm2, %v2201_v16  ;;  %v2915_v49 = vpop.permute.xlu0 %2914 }
 0x35e   : > { %2948 = vst.msk [vmem:[#allocation2 + $0x173] sm:$0x1] %vm717_vm2, %v2915_v49 }
 0x360   : > { %v2677_v17 = vpop.permute.xlu1 %2676  ;;  %v16379_v6 = vld [vmem:[#allocation2 + $0x168] sm:$0xff] }
 0x361   : > { %2710 = vst.msk [vmem:[#allocation2 + $0x172] sm:$0x1] %vm717_vm2, %v2677_v17  ;;  %12640 = vmatprep.mubr.msk.f32.mxu1 %vm296_vm4, %v16379_v6  ;;  %v3391_v23 = vpop.permute.xlu0 %3390  ;;  %v16489_v17 = vld [vmem:[#allocation2 + $0xd9] sm:$0xff] }
 0x362   : > { %3424 = vst.msk [vmem:[#allocation2 + $0x175] sm:$0x1] %vm717_vm2, %v3391_v23 }
 0x364   : > { %v3153_v41 = vpop.permute.xlu1 %3152 }
 0x365   : > { %3186 = vst.msk [vmem:[#allocation2 + $0x174] sm:$0x1] %vm717_vm2, %v3153_v41  ;;  %v3867_v14 = vpop.permute.xlu0 %3866 }
 0x366   : > { %3900 = vst.msk [vmem:[#allocation2 + $0x177] sm:$0x1] %vm717_vm2, %v3867_v14 }
 0x368   : > { %v3629_v48 = vpop.permute.xlu1 %3628 }
 0x369   : > { %3662 = vst.msk [vmem:[#allocation2 + $0x176] sm:$0x1] %vm717_vm2, %v3629_v48  ;;  %v4071_v33 = vpop.permute.xlu0 %4070  ;;  %v16499_v48 = vld [vmem:[#allocation2 + $0xf1] sm:$0xff] }
 0x36a   : > { %4117 = vst.msk [vmem:[#allocation2 + $0x40] sm:$0x1] %vm717_vm2, %v4071_v33 }
 0x36c   : > { %v4069_v0 = vpop.permute.xlu1 %4068 }
 0x36d   : > { %4116 = vst.msk [vmem:[#allocation2 + $0x28] sm:$0x1] %vm717_vm2, %v4069_v0  ;;  %v4075_v31 = vpop.permute.xlu0 %4074 }
 0x36e   : > { %4119 = vst.msk [vmem:[#allocation2 + $0x70] sm:$0x1] %vm717_vm2, %v4075_v31 }
 0x370   : > { %v4073_v45 = vpop.permute.xlu1 %4072  ;;  %v16391_v8 = vld [vmem:[#allocation2 + $0x170] sm:$0xff] }
 0x371   : > { %4118 = vst.msk [vmem:[#allocation2 + $0x58] sm:$0x1] %vm717_vm2, %v4073_v45  ;;  %12641 = vmatmul.mubr.msk.f32.gmra.mrb[30].mxu1 %vm296_vm4, %v16391_v8  ;;  %v4079_v35 = vpop.permute.xlu0 %4078  ;;  %v16424_v15 = vld [vmem:[#allocation2 + $0x39] sm:$0xff] }
 0x372   : > { %12645 = vmatprep.mubr.msk.f32.mxu1 %vm296_vm4, %v4530_v21  ;;  %4121 = vst.msk [vmem:[#allocation2 + $0xa0] sm:$0x1] %vm717_vm2, %v4079_v35  ;;  %v16509_v21 = vld [vmem:[#allocation2 + $0x109] sm:$0xff] }
 0x374   : > { %v4077_v32 = vpop.permute.xlu1 %4076  ;;  %v16414_v36 = vld [vmem:[#allocation2 + $0x21] sm:$0xff] }
 0x375   : > { %4120 = vst.msk [vmem:[#allocation2 + $0x88] sm:$0x1] %vm717_vm2, %v4077_v32  ;;  %12646 = vmatmul.mubr.msk.f32.vlgmr.msra.gmra.mrb[0].mxu1 %vm296_vm4, %v4531_v2  ;;  %v4083_v62 = vpop.permute.xlu0 %4082  ;;  %v16444_v38 = vld [vmem:[#allocation2 + $0x69] sm:$0xff]  ;;  %v16519_v32 = vld [vmem:[#allocation2 + $0x121] sm:$0xff] }
 0x376   : > { %12694 = vmatpush3.msk.msra.mxu1 %vm4269_vm3, %v16149_v61  ;;  %12648 = vmatprep.mubr.msk.f32.mxu1 %vm296_vm4, %v16405_v39  ;;  %4123 = vst.msk [vmem:[#allocation2 + $0xd0] sm:$0x1] %vm717_vm2, %v4083_v62 }
 0x377   : > { %12743 = vmatprep.subr.msk.mxu1 %vm4269_vm3, %v16401_v52 }
 0x378   : > { %v4081_v34 = vpop.permute.xlu1 %4080  ;;  %v16434_v37 = vld [vmem:[#allocation2 + $0x51] sm:$0xff] }
 0x379   : > { %4122 = vst.msk [vmem:[#allocation2 + $0xb8] sm:$0x1] %vm717_vm2, %v4081_v34  ;;  %12649 = vmatmul.mubr.msk.f32.gmra.mrb[2].mxu1 %vm296_vm4, %v16414_v36  ;;  %v4087_v24 = vpop.permute.xlu0 %4086  ;;  %v16464_v11 = vld [vmem:[#allocation2 + $0x99] sm:$0xff] }
 0x37a   : > { %12651 = vmatprep.mubr.msk.f32.mxu1 %vm296_vm4, %v16419_v29  ;;  %4125 = vst.msk [vmem:[#allocation2 + $0x100] sm:$0x1] %vm717_vm2, %v4087_v24  ;;  %v16528_v24 = vld [vmem:[#allocation2 + $0x139] sm:$0xff] }
 0x37c   : > { %v4085_v61 = vpop.permute.xlu1 %4084  ;;  %v16454_v42 = vld [vmem:[#allocation2 + $0x81] sm:$0xff] }
 0x37d   : > { %4124 = vst.msk [vmem:[#allocation2 + $0xe8] sm:$0x1] %vm717_vm2, %v4085_v61  ;;  %12652 = vmatmul.mubr.msk.f32.gmra.mrb[4].mxu1 %vm296_vm4, %v16424_v15  ;;  %v4091_v47 = vpop.permute.xlu0 %4090  ;;  %v16484_v49 = vld [vmem:[#allocation2 + $0xc9] sm:$0xff] }
 0x37e   : > { %12654 = vmatprep.mubr.msk.f32.mxu1 %vm296_vm4, %v16429_v40  ;;  %4127 = vst.msk [vmem:[#allocation2 + $0x130] sm:$0x1] %vm717_vm2, %v4091_v47  ;;  %v16536_v47 = vld [vmem:[#allocation2 + $0x151] sm:$0xff] }
 0x380   : > { %v4089_v27 = vpop.permute.xlu1 %4088  ;;  %v16474_v4 = vld [vmem:[#allocation2 + $0xb1] sm:$0xff] }
 0x381   : > { %4126 = vst.msk [vmem:[#allocation2 + $0x118] sm:$0x1] %vm717_vm2, %v4089_v27  ;;  %12655 = vmatmul.mubr.msk.f32.gmra.mrb[6].mxu1 %vm296_vm4, %v16434_v37  ;;  %v4095_v60 = vpop.permute.xlu0 %4094  ;;  %v16504_v31 = vld [vmem:[#allocation2 + $0xf9] sm:$0xff] }
 0x382   : > { %12657 = vmatprep.mubr.msk.f32.mxu1 %vm296_vm4, %v16439_v26  ;;  %4129 = vst.msk [vmem:[#allocation2 + $0x160] sm:$0x1] %vm717_vm2, %v4095_v60  ;;  %v16544_v60 = vld [vmem:[#allocation2 + $0x169] sm:$0xff] }
 0x384   : > { %v4093_v19 = vpop.permute.xlu1 %4092  ;;  %v16494_v14 = vld [vmem:[#allocation2 + $0xe1] sm:$0xff] }
 0x385   : > { %4128 = vst.msk [vmem:[#allocation2 + $0x148] sm:$0x1] %vm717_vm2, %v4093_v19  ;;  %12658 = vmatmul.mubr.msk.f32.gmra.mrb[8].mxu1 %vm296_vm4, %v16444_v38  ;;  %v700_v53 = vpop.permute.xlu0 %699  ;;  %v16523_v34 = vld [vmem:[#allocation2 + $0x129] sm:$0xff] }
 0x386   : > { %12660 = vmatprep.mubr.msk.f32.mxu1 %vm296_vm4, %v16449_v9  ;;  %733 = vst.msk [vmem:[#allocation2 + $0x181] sm:$0x1] %vm717_vm2, %v700_v53  ;;  %v4920_v19 = vld [vmem:[#allocation2 + $0x2] sm:$0xff] }
 0x388   : > { %v4097_v18 = vpop.permute.xlu1 %4096  ;;  %v16514_v2 = vld [vmem:[#allocation2 + $0x111] sm:$0xff] }
 0x389   : > { %4130 = vst.msk [vmem:[#allocation2 + $0x178] sm:$0x1] %vm717_vm2, %v4097_v18  ;;  %12661 = vmatmul.mubr.msk.f32.gmra.mrb[10].mxu1 %vm296_vm4, %v16454_v42  ;;  %v1185_v63 = vpop.permute.xlu0 %1184  ;;  %v16540_v27 = vld [vmem:[#allocation2 + $0x159] sm:$0xff]  ;;  %v4921_v18 = vld [vmem:[#allocation2 + $0xa] sm:$0xff] }
 0x38a   : > { %12663 = vmatprep.mubr.msk.f32.mxu1 %vm296_vm4, %v16459_v55  ;;  %1217 = vst.msk [vmem:[#allocation2 + $0x183] sm:$0x1] %vm717_vm2, %v1185_v63  ;;  %v16556_v63 = vld [vmem:[%s18096_s3 + $0x10] sm:$0xf] }
 0x38c   : > { %v943_v30 = vpop.permute.xlu1 %942  ;;  %v16532_v61 = vld [vmem:[#allocation2 + $0x141] sm:$0xff] }
 0x38d   : > { %975 = vst.msk [vmem:[#allocation2 + $0x182] sm:$0x1] %vm717_vm2, %v943_v30  ;;  %12664 = vmatmul.mubr.msk.f32.gmra.mrb[12].mxu1 %vm296_vm4, %v16464_v11  ;;  %v1961_v20 = vpop.permute.xlu0 %1960  ;;  %v16559_v30 = vld [vmem:[#allocation2 + $0x1a] sm:$0xff] }
 0x38e   : > { %12666 = vmatprep.mubr.msk.f32.mxu1 %vm296_vm4, %v16469_v10  ;;  %1993 = vst.msk [vmem:[#allocation2 + $0x187] sm:$0x1] %vm717_vm2, %v1961_v20  ;;  %v16567_v20 = vld [vmem:[#allocation2 + $0x22] sm:$0xff] }
 0x390   : > { %v1719_v50 = vpop.permute.xlu1 %1718  ;;  %v16548_v53 = vld [vmem:[#allocation2 + $0x171] sm:$0xff] }
 0x391   : > { %1751 = vst.msk [vmem:[#allocation2 + $0x186] sm:$0x1] %vm717_vm2, %v1719_v50  ;;  %12667 = vmatmul.mubr.msk.f32.gmra.mrb[14].mxu1 %vm296_vm4, %v16474_v4  ;;  %v2441_v57 = vpop.permute.xlu0 %2440  ;;  %v16571_v50 = vld [vmem:[#allocation2 + $0x32] sm:$0xff] }
 0x392   : > { %12669 = vmatprep.mubr.msk.f32.mxu1 %vm296_vm4, %v16479_v5  ;;  %2473 = vst.msk [vmem:[#allocation2 + $0x189] sm:$0x1] %vm717_vm2, %v2441_v57  ;;  %v16575_v57 = vld [vmem:[#allocation2 + $0x3a] sm:$0xff] }
 0x394   : > { %v2203_v16 = vpop.permute.xlu1 %2202 }
 0x395   : > { %2235 = vst.msk [vmem:[#allocation2 + $0x188] sm:$0x1] %vm717_vm2, %v2203_v16  ;;  %12670 = vmatmul.mubr.msk.f32.gmra.mrb[16].mxu1 %vm296_vm4, %v16484_v49  ;;  %v2917_v23 = vpop.permute.xlu0 %2916  ;;  %v16583_v16 = vld [vmem:[#allocation2 + $0x52] sm:$0xff] }
 0x396   : > { %12672 = vmatprep.mubr.msk.f32.mxu1 %vm296_vm4, %v16489_v17  ;;  %2949 = vst.msk [vmem:[#allocation2 + $0x18b] sm:$0x1] %vm717_vm2, %v2917_v23  ;;  %v16587_v23 = vld [vmem:[#allocation2 + $0x62] sm:$0xff] }
 0x398   : > { %v2679_v41 = vpop.permute.xlu1 %2678 }
 0x399   : > { %2711 = vst.msk [vmem:[#allocation2 + $0x18a] sm:$0x1] %vm717_vm2, %v2679_v41  ;;  %12673 = vmatmul.mubr.msk.f32.gmra.mrb[18].mxu1 %vm296_vm4, %v16494_v14  ;;  %v3393_v33 = vpop.permute.xlu0 %3392  ;;  %v16591_v41 = vld [vmem:[#allocation2 + $0x6a] sm:$0xff] }
 0x39a   : > { %12675 = vmatprep.mubr.msk.f32.mxu1 %vm296_vm4, %v16499_v48  ;;  %3425 = vst.msk [vmem:[#allocation2 + $0x18d] sm:$0x1] %vm717_vm2, %v3393_v33  ;;  %v16595_v33 = vld [vmem:[#allocation2 + $0x7a] sm:$0xff] }
 0x39c   : > { %v3155_v0 = vpop.permute.xlu1 %3154 }
 0x39d   : > { %3187 = vst.msk [vmem:[#allocation2 + $0x18c] sm:$0x1] %vm717_vm2, %v3155_v0  ;;  %12676 = vmatmul.mubr.msk.f32.gmra.mrb[20].mxu1 %vm296_vm4, %v16504_v31  ;;  %v3869_v45 = vpop.permute.xlu0 %3868  ;;  %v16599_v0 = vld [vmem:[#allocation2 + $0x82] sm:$0xff] }
 0x39e   : > { %12678 = vmatprep.mubr.msk.f32.mxu1 %vm296_vm4, %v16509_v21  ;;  %3901 = vst.msk [vmem:[#allocation2 + $0x18f] sm:$0x1] %vm717_vm2, %v3869_v45  ;;  %18316 = vst [vmem:[#allocation25_spill] sm:$0xff] %v16599_v0  ;;  %v16603_v45 = vld [vmem:[#allocation2 + $0x92] sm:$0xff] }
 0x39f   : > { %18317 = vst [vmem:[#allocation26_spill] sm:$0xff] %v16603_v45 }
 0x3a0   : > { %v3631_v35 = vpop.permute.xlu1 %3630 }
 0x3a1   : > { %3663 = vst.msk [vmem:[#allocation2 + $0x18e] sm:$0x1] %vm717_vm2, %v3631_v35  ;;  %12679 = vmatmul.mubr.msk.f32.gmra.mrb[22].mxu1 %vm296_vm4, %v16514_v2  ;;  %v16607_v35 = vld [vmem:[#allocation2 + $0x9a] sm:$0xff] }
 0x3a2   : > { %12681 = vmatprep.mubr.msk.f32.mxu1 %vm296_vm4, %v16519_v32  ;;  %18318 = vst [vmem:[#allocation29_spill] sm:$0xff] %v16607_v35 }
 0x3a4   : > { %v4099_v62 = vpop.permute.xlu1 %4098 }
 0x3a5   : > { %4131 = vst.msk [vmem:[#allocation2 + $0x190] sm:$0x1] %vm717_vm2, %v4099_v62  ;;  %12682 = vmatmul.mubr.msk.f32.gmra.mrb[24].mxu1 %vm296_vm4, %v16523_v34  ;;  %v16611_v62 = vld [vmem:[#allocation2 + $0xaa] sm:$0xff] }
 0x3a6   : > { %12684 = vmatprep.mubr.msk.f32.mxu1 %vm296_vm4, %v16528_v24  ;;  %18319 = vst [vmem:[#allocation30_spill] sm:$0xff] %v16611_v62 }
 0x3a9   : > { %12685 = vmatmul.mubr.msk.f32.gmra.mrb[26].mxu1 %vm296_vm4, %v16532_v61 }
 0x3aa   : > { %12687 = vmatprep.mubr.msk.f32.mxu1 %vm296_vm4, %v16536_v47 }
 0x3ad   : > { %12688 = vmatmul.mubr.msk.f32.gmra.mrb[28].mxu1 %vm296_vm4, %v16540_v27 }
 0x3ae   : > { %12690 = vmatprep.mubr.msk.f32.mxu1 %vm296_vm4, %v16544_v60 }
 0x3b1   : > { %12691 = vmatmul.mubr.msk.f32.gmra.mrb[30].mxu1 %vm296_vm4, %v16548_v53 }
 0x3b2   : > { %12695 = vmatprep.mubr.msk.f32.mxu1 %vm296_vm4, %v4920_v19  ;;  %v16615_v19 = vld [vmem:[#allocation2 + $0xb2] sm:$0xff] }
 0x3b3   : > { %18320 = vst [vmem:[#allocation32_spill] sm:$0xff] %v16615_v19 }
 0x3b5   : > { %12696 = vmatmul.mubr.msk.f32.vlgmr.msra.gmra.mrb[0].mxu1 %vm296_vm4, %v4921_v18  ;;  %v16619_v18 = vld [vmem:[#allocation2 + $0xc2] sm:$0xff] }
 0x3b6   : > { %12744 = vmatpush3.msk.msra.mxu1 %vm4269_vm3, %v16401_v52  ;;  %12698 = vmatprep.mubr.msk.f32.mxu1 %vm296_vm4, %v16559_v30  ;;  %v16579_v52 = vld [vmem:[#allocation2 + $0x4a] sm:$0xff]  ;;  %18321 = vst [vmem:[#allocation33_spill] sm:$0xff] %v16619_v18 }
 0x3b7   : > { %12793 = vmatprep.subr.msk.mxu1 %vm4269_vm3, %v16556_v63 }
 0x3b9   : > { %12699 = vmatmul.mubr.msk.f32.gmra.mrb[2].mxu1 %vm296_vm4, %v16567_v20 }
 0x3ba   : > { %12701 = vmatprep.mubr.msk.f32.mxu1 %vm296_vm4, %v16571_v50 }
 0x3bd   : > { %12702 = vmatmul.mubr.msk.f32.gmra.mrb[4].mxu1 %vm296_vm4, %v16575_v57 }
 0x3be   : > { %12704 = vmatprep.mubr.msk.f32.mxu1 %vm296_vm4, %v16579_v52 }
 0x3c1   : > { %12705 = vmatmul.mubr.msk.f32.gmra.mrb[6].mxu1 %vm296_vm4, %v16583_v16 }
 0x3c2   : > { %12707 = vmatprep.mubr.msk.f32.mxu1 %vm296_vm4, %v16587_v23 }
 0x3c5   : > { %12708 = vmatmul.mubr.msk.f32.gmra.mrb[8].mxu1 %vm296_vm4, %v16591_v41 }
 0x3c6   : > { %12710 = vmatprep.mubr.msk.f32.mxu1 %vm296_vm4, %v16595_v33 }
 0x3c9   : > { %12711 = vmatmul.mubr.msk.f32.gmra.mrb[10].mxu1 %vm296_vm4, %v16599_v0  ;;  %v5311_v0 = vld [vmem:[#allocation2 + $0x20] sm:$0xff] }
 0x3ca   : > { %12713 = vmatprep.mubr.msk.f32.mxu1 %vm296_vm4, %v16603_v45  ;;  %v16623_v45 = vld [vmem:[#allocation2 + $0xca] sm:$0xff] }
 0x3cb   : > { %18322 = vst [vmem:[#allocation20_spill] sm:$0xff] %v16623_v45 }
 0x3cd   : > { %12714 = vmatmul.mubr.msk.f32.gmra.mrb[12].mxu1 %vm296_vm4, %v16607_v35  ;;  %v16627_v35 = vld [vmem:[#allocation2 + $0xda] sm:$0xff] }
 0x3ce   : > { %12716 = vmatprep.mubr.msk.f32.mxu1 %vm296_vm4, %v16611_v62  ;;  %18323 = vst [vmem:[#allocation18_spill] sm:$0xff] %v16627_v35  ;;  %v16631_v62 = vld [vmem:[#allocation2 + $0xe2] sm:$0xff] }
 0x3cf   : > { %18324 = vst [vmem:[#allocation21_spill] sm:$0xff] %v16631_v62 }
 0x3d1   : > { %12717 = vmatmul.mubr.msk.f32.gmra.mrb[14].mxu1 %vm296_vm4, %v16615_v19  ;;  %v16635_v19 = vld [vmem:[#allocation2 + $0xf2] sm:$0xff] }
 0x3d2   : > { %12719 = vmatprep.mubr.msk.f32.mxu1 %vm296_vm4, %v16619_v18  ;;  %18325 = vst [vmem:[#allocation19_spill] sm:$0xff] %v16635_v19  ;;  %v16639_v18 = vld [vmem:[#allocation2 + $0xfa] sm:$0xff] }
 0x3d3   : > { %18326 = vst [vmem:[#allocation23_spill] sm:$0xff] %v16639_v18 }
 0x3d5   : > { %12720 = vmatmul.mubr.msk.f32.gmra.mrb[16].mxu1 %vm296_vm4, %v16623_v45  ;;  %v16643_v45 = vld [vmem:[#allocation2 + $0x10a] sm:$0xff] }
 0x3d6   : > { %12722 = vmatprep.mubr.msk.f32.mxu1 %vm296_vm4, %v16627_v35  ;;  %18327 = vst [vmem:[#allocation22_spill] sm:$0xff] %v16643_v45  ;;  %v16647_v35 = vld [vmem:[#allocation2 + $0x112] sm:$0xff] }
 0x3d7   : > { %18328 = vst [vmem:[#allocation27_spill] sm:$0xff] %v16647_v35 }
 0x3d9   : > { %12723 = vmatmul.mubr.msk.f32.gmra.mrb[18].mxu1 %vm296_vm4, %v16631_v62  ;;  %v16651_v62 = vld [vmem:[#allocation2 + $0x122] sm:$0xff] }
 0x3da   : > { %12725 = vmatprep.mubr.msk.f32.mxu1 %vm296_vm4, %v16635_v19  ;;  %18329 = vst [vmem:[#allocation24_spill] sm:$0xff] %v16651_v62  ;;  %v16655_v19 = vld [vmem:[#allocation2 + $0x12a] sm:$0xff] }
 0x3db   : > { %18330 = vst [vmem:[#allocation31_spill] sm:$0xff] %v16655_v19 }
 0x3dd   : > { %12726 = vmatmul.mubr.msk.f32.gmra.mrb[20].mxu1 %vm296_vm4, %v16639_v18  ;;  %v16659_v18 = vld [vmem:[#allocation2 + $0x13a] sm:$0xff] }
 0x3de   : > { %12728 = vmatprep.mubr.msk.f32.mxu1 %vm296_vm4, %v16643_v45  ;;  %18331 = vst [vmem:[#allocation28_spill] sm:$0xff] %v16659_v18  ;;  %v16663_v45 = vld [vmem:[#allocation2 + $0x142] sm:$0xff] }
 0x3df   : > { %18332 = vst [vmem:[#allocation35_spill] sm:$0xff] %v16663_v45 }
 0x3e1   : > { %12729 = vmatmul.mubr.msk.f32.gmra.mrb[22].mxu1 %vm296_vm4, %v16647_v35  ;;  %v16667_v35 = vld [vmem:[#allocation2 + $0x152] sm:$0xff] }
 0x3e2   : > { %12731 = vmatprep.mubr.msk.f32.mxu1 %vm296_vm4, %v16651_v62  ;;  %18333 = vst [vmem:[#allocation34_spill] sm:$0xff] %v16667_v35  ;;  %v16671_v62 = vld [vmem:[#allocation2 + $0x15a] sm:$0xff] }
 0x3e3   : > { %18334 = vst [vmem:[#allocation36_spill] sm:$0xff] %v16671_v62 }
 0x3e5   : > { %12732 = vmatmul.mubr.msk.f32.gmra.mrb[24].mxu1 %vm296_vm4, %v16655_v19  ;;  %v16675_v19 = vld [vmem:[#allocation2 + $0x16a] sm:$0xff] }
 0x3e6   : > { %12734 = vmatprep.mubr.msk.f32.mxu1 %vm296_vm4, %v16659_v18  ;;  %18335 = vst [vmem:[#allocation6_spill] sm:$0xff] %v16675_v19  ;;  %v16679_v18 = vld [vmem:[#allocation2 + $0x172] sm:$0xff] }
 0x3e7   : > { %18336 = vst [vmem:[#allocation8_spill] sm:$0xff] %v16679_v18 }
 0x3e9   : > { %12735 = vmatmul.mubr.msk.f32.gmra.mrb[26].mxu1 %vm296_vm4, %v16663_v45  ;;  %v5310_v45 = vld [vmem:[#allocation2 + $0x18] sm:$0xff] }
 0x3ea   : > { %12737 = vmatprep.mubr.msk.f32.mxu1 %vm296_vm4, %v16667_v35  ;;  %v11545_v35 = vld [vmem:[%s18096_s3 + $0x14] sm:$0xf] }
 0x3ed   : > { %12738 = vmatmul.mubr.msk.f32.gmra.mrb[28].mxu1 %vm296_vm4, %v16671_v62  ;;  %v16688_v62 = vld [vmem:[#allocation2 + $0x30] sm:$0xff] }
 0x3ee   : > { %12740 = vmatprep.mubr.msk.f32.mxu1 %vm296_vm4, %v16675_v19  ;;  %18337 = vst [vmem:[#allocation5_spill] sm:$0xff] %v16688_v62 }
 0x3f1   : > { %12741 = vmatmul.mubr.msk.f32.gmra.mrb[30].mxu1 %vm296_vm4, %v16679_v18  ;;  %v16695_v18 = vld [vmem:[#allocation2 + $0x38] sm:$0xff] }
 0x3f2   : > { %12745 = vmatprep.mubr.msk.f32.mxu1 %vm296_vm4, %v5310_v45  ;;  %18338 = vst [vmem:[#allocation10_spill] sm:$0xff] %v16695_v18  ;;  %v16699_v45 = vld [vmem:[#allocation2 + $0x48] sm:$0xff] }
 0x3f3   : > { %18339 = vst [vmem:[#allocation7_spill] sm:$0xff] %v16699_v45 }
 0x3f5   : > { %12746 = vmatmul.mubr.msk.f32.vlgmr.msra.gmra.mrb[0].mxu1 %vm296_vm4, %v5311_v0  ;;  %v16703_v0 = vld [vmem:[#allocation2 + $0x50] sm:$0xff] }
 0x3f6   : > { %12794 = vmatpush3.msk.msra.mxu1 %vm4269_vm3, %v16556_v63  ;;  %12748 = vmatprep.mubr.msk.f32.mxu1 %vm296_vm4, %v16688_v62  ;;  %18340 = vst [vmem:[#allocation12_spill] sm:$0xff] %v16703_v0  ;;  %v16707_v63 = vld [vmem:[#allocation2 + $0x60] sm:$0xff]  ;;  %v16711_v62 = vld [vmem:[#allocation2 + $0x68] sm:$0xff] }
 0x3f7   : > { %12843 = vmatprep.subr.msk.mxu1 %vm4269_vm3, %v11545_v35  ;;  %18341 = vst [vmem:[#allocation9_spill] sm:$0xff] %v16707_v63 }
 0x3f9   : > { %12749 = vmatmul.mubr.msk.f32.gmra.mrb[2].mxu1 %vm296_vm4, %v16695_v18  ;;  %v16715_v18 = vld [vmem:[#allocation2 + $0x78] sm:$0xff] }
 0x3fa   : > { %12751 = vmatprep.mubr.msk.f32.mxu1 %vm296_vm4, %v16699_v45  ;;  %v16719_v45 = vld [vmem:[#allocation2 + $0x80] sm:$0xff] }
 0x3fd   : > { %12752 = vmatmul.mubr.msk.f32.gmra.mrb[4].mxu1 %vm296_vm4, %v16703_v0  ;;  %v16723_v0 = vld [vmem:[#allocation2 + $0x90] sm:$0xff] }
 0x3fe   : > { %12754 = vmatprep.mubr.msk.f32.mxu1 %vm296_vm4, %v16707_v63  ;;  %v16727_v63 = vld [vmem:[#allocation2 + $0x98] sm:$0xff] }
 0x401   : > { %12755 = vmatmul.mubr.msk.f32.gmra.mrb[6].mxu1 %vm296_vm4, %v16711_v62 }
 0x402   : > { %12757 = vmatprep.mubr.msk.f32.mxu1 %vm296_vm4, %v16715_v18 }
 0x405   : > { %12758 = vmatmul.mubr.msk.f32.gmra.mrb[8].mxu1 %vm296_vm4, %v16719_v45 }
 0x406   : > { %12760 = vmatprep.mubr.msk.f32.mxu1 %vm296_vm4, %v16723_v0 }
 0x409   : > { %12761 = vmatmul.mubr.msk.f32.gmra.mrb[10].mxu1 %vm296_vm4, %v16727_v63 }
 0x40a   : > { %12763 = vmatprep.mubr.msk.f32.mxu1 %vm296_vm4, %v16109_v28  ;;  %v16767_v28 = vld [vmem:[#allocation2 + $0x180] sm:$0xff] }
 0x40d   : > { %12764 = vmatmul.mubr.msk.f32.gmra.mrb[12].mxu1 %vm296_vm4, %v16161_v1  ;;  %v16771_v1 = vld [vmem:[#allocation2 + $0x188] sm:$0xff] }
 0x40e   : > { %12766 = vmatprep.mubr.msk.f32.mxu1 %vm296_vm4, %v16198_v22  ;;  %v11579_v22 = vld [vmem:[%s18096_s3 + $0x18] sm:$0xf] }
 0x411   : > { %12767 = vmatmul.mubr.msk.f32.gmra.mrb[14].mxu1 %vm296_vm4, %v16237_v25  ;;  %v16840_v25 = vld [vmem:[#allocation2 + $0x181] sm:$0xff] }
 0x412   : > { %12769 = vmatprep.mubr.msk.f32.mxu1 %vm296_vm4, %v16245_v51  ;;  %v16844_v51 = vld [vmem:[#allocation2 + $0x189] sm:$0xff] }
 0x415   : > { %12770 = vmatmul.mubr.msk.f32.gmra.mrb[16].mxu1 %vm296_vm4, %v16255_v58  ;;  %v11613_v58 = vld [vmem:[%s18096_s3 + $0x1c] sm:$0xf] }
 0x416   : > { %12772 = vmatprep.mubr.msk.f32.mxu1 %vm296_vm4, %v16263_v56  ;;  %v18342_v56 = vld [vmem:[#allocation25_spill] sm:$0xff] }
 0x419   : > { %12773 = vmatmul.mubr.msk.f32.gmra.mrb[18].mxu1 %vm296_vm4, %v16273_v46  ;;  %v18343_v46 = vld [vmem:[#allocation26_spill] sm:$0xff] }
 0x41a   : > { %12775 = vmatprep.mubr.msk.f32.mxu1 %vm296_vm4, %v16281_v3  ;;  %v18344_v3 = vld [vmem:[#allocation29_spill] sm:$0xff] }
 0x41d   : > { %12776 = vmatmul.mubr.msk.f32.gmra.mrb[20].mxu1 %vm296_vm4, %v16291_v59  ;;  %v18345_v59 = vld [vmem:[#allocation30_spill] sm:$0xff] }
 0x41e   : > { %12778 = vmatprep.mubr.msk.f32.mxu1 %vm296_vm4, %v16299_v13  ;;  %v18346_v13 = vld [vmem:[#allocation32_spill] sm:$0xff] }
 0x421   : > { %12779 = vmatmul.mubr.msk.f32.gmra.mrb[22].mxu1 %vm296_vm4, %v16309_v7  ;;  %v18347_v7 = vld [vmem:[#allocation33_spill] sm:$0xff] }
 0x422   : > { %12781 = vmatprep.mubr.msk.f32.mxu1 %vm296_vm4, %v16331_v12  ;;  %v18348_v12 = vld [vmem:[#allocation20_spill] sm:$0xff] }
 0x425   : > { %12782 = vmatmul.mubr.msk.f32.gmra.mrb[24].mxu1 %vm296_vm4, %v16349_v54 }
 0x426   : > { %12784 = vmatprep.mubr.msk.f32.mxu1 %vm296_vm4, %v16359_v44 }
 0x429   : > { %12785 = vmatmul.mubr.msk.f32.gmra.mrb[26].mxu1 %vm296_vm4, %v16371_v43 }
 0x42a   : > { %12787 = vmatprep.mubr.msk.f32.mxu1 %vm296_vm4, %v16379_v6 }
 0x42d   : > { %12788 = vmatmul.mubr.msk.f32.gmra.mrb[28].mxu1 %vm296_vm4, %v16391_v8 }
 0x42e   : > { %12790 = vmatprep.mubr.msk.f32.mxu1 %vm296_vm4, %v16767_v28 }
 0x431   : > { %12791 = vmatmul.mubr.msk.f32.gmra.mrb[30].mxu1 %vm296_vm4, %v16771_v1 }
 0x432   : > { %12795 = vmatprep.mubr.msk.f32.mxu1 %vm296_vm4, %v16405_v39  ;;  %v18349_v39 = vld [vmem:[#allocation18_spill] sm:$0xff] }
 0x435   : > { %12796 = vmatmul.mubr.msk.f32.vlgmr.msra.gmra.mrb[0].mxu1 %vm296_vm4, %v16414_v36  ;;  %v18350_v36 = vld [vmem:[#allocation21_spill] sm:$0xff] }
 0x436   : > { %12844 = vmatpush3.msk.msra.mxu1 %vm4269_vm3, %v11545_v35  ;;  %12798 = vmatprep.mubr.msk.f32.mxu1 %vm296_vm4, %v16419_v29  ;;  %v18353_v35 = vld [vmem:[#allocation22_spill] sm:$0xff] }
 0x437   : > { %12893 = vmatprep.subr.msk.mxu1 %vm4269_vm3, %v11579_v22 }
 0x439   : > { %12799 = vmatmul.mubr.msk.f32.gmra.mrb[2].mxu1 %vm296_vm4, %v16424_v15 }
 0x43a   : > { %12801 = vmatprep.mubr.msk.f32.mxu1 %vm296_vm4, %v16429_v40 }
 0x43d   : > { %12802 = vmatmul.mubr.msk.f32.gmra.mrb[4].mxu1 %vm296_vm4, %v16434_v37 }
 0x43e   : > { %12804 = vmatprep.mubr.msk.f32.mxu1 %vm296_vm4, %v16439_v26 }
 0x441   : > { %12805 = vmatmul.mubr.msk.f32.gmra.mrb[6].mxu1 %vm296_vm4, %v16444_v38 }
 0x442   : > { %12807 = vmatprep.mubr.msk.f32.mxu1 %vm296_vm4, %v16449_v9 }
 0x445   : > { %12808 = vmatmul.mubr.msk.f32.gmra.mrb[8].mxu1 %vm296_vm4, %v16454_v42 }
 0x446   : > { %12810 = vmatprep.mubr.msk.f32.mxu1 %vm296_vm4, %v16459_v55 }
 0x449   : > { %12811 = vmatmul.mubr.msk.f32.gmra.mrb[10].mxu1 %vm296_vm4, %v16464_v11 }
 0x44a   : > { %12813 = vmatprep.mubr.msk.f32.mxu1 %vm296_vm4, %v16469_v10 }
 0x44d   : > { %12814 = vmatmul.mubr.msk.f32.gmra.mrb[12].mxu1 %vm296_vm4, %v16474_v4 }
 0x44e   : > { %12816 = vmatprep.mubr.msk.f32.mxu1 %vm296_vm4, %v16479_v5 }
 0x451   : > { %12817 = vmatmul.mubr.msk.f32.gmra.mrb[14].mxu1 %vm296_vm4, %v16484_v49 }
 0x452   : > { %12819 = vmatprep.mubr.msk.f32.mxu1 %vm296_vm4, %v16489_v17 }
 0x455   : > { %12820 = vmatmul.mubr.msk.f32.gmra.mrb[16].mxu1 %vm296_vm4, %v16494_v14 }
 0x456   : > { %12822 = vmatprep.mubr.msk.f32.mxu1 %vm296_vm4, %v16499_v48 }
 0x459   : > { %12823 = vmatmul.mubr.msk.f32.gmra.mrb[18].mxu1 %vm296_vm4, %v16504_v31 }
 0x45a   : > { %12825 = vmatprep.mubr.msk.f32.mxu1 %vm296_vm4, %v16509_v21 }
 0x45d   : > { %12826 = vmatmul.mubr.msk.f32.gmra.mrb[20].mxu1 %vm296_vm4, %v16514_v2 }
 0x45e   : > { %12828 = vmatprep.mubr.msk.f32.mxu1 %vm296_vm4, %v16519_v32 }
 0x461   : > { %12829 = vmatmul.mubr.msk.f32.gmra.mrb[22].mxu1 %vm296_vm4, %v16523_v34 }
 0x462   : > { %12831 = vmatprep.mubr.msk.f32.mxu1 %vm296_vm4, %v16528_v24 }
 0x465   : > { %12832 = vmatmul.mubr.msk.f32.gmra.mrb[24].mxu1 %vm296_vm4, %v16532_v61 }
 0x466   : > { %12834 = vmatprep.mubr.msk.f32.mxu1 %vm296_vm4, %v16536_v47 }
 0x469   : > { %12835 = vmatmul.mubr.msk.f32.gmra.mrb[26].mxu1 %vm296_vm4, %v16540_v27 }
 0x46a   : > { %12837 = vmatprep.mubr.msk.f32.mxu1 %vm296_vm4, %v16544_v60 }
 0x46d   : > { %12838 = vmatmul.mubr.msk.f32.gmra.mrb[28].mxu1 %vm296_vm4, %v16548_v53 }
 0x46e   : > { %12840 = vmatprep.mubr.msk.f32.mxu1 %vm296_vm4, %v16840_v25 }
 0x471   : > { %12841 = vmatmul.mubr.msk.f32.gmra.mrb[30].mxu1 %vm296_vm4, %v16844_v51 }
 0x472   : > { %12845 = vmatprep.mubr.msk.f32.mxu1 %vm296_vm4, %v16559_v30  ;;  %v18351_v30 = vld [vmem:[#allocation19_spill] sm:$0xff] }
 0x475   : > { %12846 = vmatmul.mubr.msk.f32.vlgmr.msra.gmra.mrb[0].mxu1 %vm296_vm4, %v16567_v20  ;;  %v18352_v20 = vld [vmem:[#allocation23_spill] sm:$0xff] }
 0x476   : > { %12894 = vmatpush3.msk.msra.mxu1 %vm4269_vm3, %v11579_v22  ;;  %12848 = vmatprep.mubr.msk.f32.mxu1 %vm296_vm4, %v16571_v50  ;;  %v18354_v22 = vld [vmem:[#allocation27_spill] sm:$0xff] }
 0x477   : > { %12943 = vmatprep.subr.msk.mxu1 %vm4269_vm3, %v11613_v58 }
 0x479   : > { %12849 = vmatmul.mubr.msk.f32.gmra.mrb[2].mxu1 %vm296_vm4, %v16575_v57 }
 0x47a   : > { %12851 = vmatprep.mubr.msk.f32.mxu1 %vm296_vm4, %v16579_v52 }
 0x47d   : > { %12852 = vmatmul.mubr.msk.f32.gmra.mrb[4].mxu1 %vm296_vm4, %v16583_v16 }
 0x47e   : > { %12854 = vmatprep.mubr.msk.f32.mxu1 %vm296_vm4, %v16587_v23 }
 0x481   : > { %12855 = vmatmul.mubr.msk.f32.gmra.mrb[6].mxu1 %vm296_vm4, %v16591_v41 }
 0x482   : > { %12857 = vmatprep.mubr.msk.f32.mxu1 %vm296_vm4, %v16595_v33 }
 0x485   : > { %12858 = vmatmul.mubr.msk.f32.gmra.mrb[8].mxu1 %vm296_vm4, %v18342_v56 }
 0x486   : > { %12860 = vmatprep.mubr.msk.f32.mxu1 %vm296_vm4, %v18343_v46 }
 0x489   : > { %12861 = vmatmul.mubr.msk.f32.gmra.mrb[10].mxu1 %vm296_vm4, %v18344_v3 }
 0x48a   : > { %12863 = vmatprep.mubr.msk.f32.mxu1 %vm296_vm4, %v18345_v59 }
 0x48d   : > { %12864 = vmatmul.mubr.msk.f32.gmra.mrb[12].mxu1 %vm296_vm4, %v18346_v13 }
 0x48e   : > { %12866 = vmatprep.mubr.msk.f32.mxu1 %vm296_vm4, %v18347_v7  ;;  %v18355_v7 = vld [vmem:[#allocation24_spill] sm:$0xff] }
 0x491   : > { %12867 = vmatmul.mubr.msk.f32.gmra.mrb[14].mxu1 %vm296_vm4, %v18348_v12  ;;  %v18356_v12 = vld [vmem:[#allocation31_spill] sm:$0xff] }
 0x492   : > { %12869 = vmatprep.mubr.msk.f32.mxu1 %vm296_vm4, %v18349_v39  ;;  %v18357_v39 = vld [vmem:[#allocation28_spill] sm:$0xff] }
 0x495   : > { %12870 = vmatmul.mubr.msk.f32.gmra.mrb[16].mxu1 %vm296_vm4, %v18350_v36  ;;  %v18358_v36 = vld [vmem:[#allocation35_spill] sm:$0xff] }
 0x496   : > { %12872 = vmatprep.mubr.msk.f32.mxu1 %vm296_vm4, %v18351_v30  ;;  %v18359_v30 = vld [vmem:[#allocation34_spill] sm:$0xff] }
 0x499   : > { %12873 = vmatmul.mubr.msk.f32.gmra.mrb[18].mxu1 %vm296_vm4, %v18352_v20  ;;  %v18360_v20 = vld [vmem:[#allocation36_spill] sm:$0xff] }
 0x49a   : > { %12875 = vmatprep.mubr.msk.f32.mxu1 %vm296_vm4, %v18353_v35 }
 0x49d   : > { %12876 = vmatmul.mubr.msk.f32.gmra.mrb[20].mxu1 %vm296_vm4, %v18354_v22  ;;  %v18361_v22 = vld [vmem:[#allocation8_spill] sm:$0xff] }
 0x49e   : > { %12878 = vmatprep.mubr.msk.f32.mxu1 %vm296_vm4, %v18355_v7  ;;  %v16913_v7 = vld [vmem:[#allocation2 + $0x182] sm:$0xff] }
 0x49f   : > { %18362 = vst [vmem:[#allocation14_spill] sm:$0xff] %v16913_v7 }
 0x4a1   : > { %12879 = vmatmul.mubr.msk.f32.gmra.mrb[22].mxu1 %vm296_vm4, %v18356_v12 }
 0x4a2   : > { %12881 = vmatprep.mubr.msk.f32.mxu1 %vm296_vm4, %v18357_v39  ;;  %v16917_v39 = vld [vmem:[#allocation2 + $0x18a] sm:$0xff] }
 0x4a3   : > { %18363 = vst [vmem:[#allocation11_spill] sm:$0xff] %v16917_v39 }
 0x4a5   : > { %12882 = vmatmul.mubr.msk.f32.gmra.mrb[24].mxu1 %vm296_vm4, %v18358_v36 }
 0x4a6   : > { %12884 = vmatprep.mubr.msk.f32.mxu1 %vm296_vm4, %v18359_v30  ;;  %v18364_v30 = vld [vmem:[#allocation5_spill] sm:$0xff] }
 0x4a9   : > { %12885 = vmatmul.mubr.msk.f32.gmra.mrb[26].mxu1 %vm296_vm4, %v18360_v20  ;;  %v18365_v20 = vld [vmem:[#allocation10_spill] sm:$0xff] }
 0x4aa   : > { %12887 = vmatprep.mubr.msk.f32.mxu1 %vm296_vm4, %v16675_v19  ;;  %v11647_v19 = vld [vmem:[%s18096_s3 + $0x20] sm:$0xf] }
 0x4ad   : > { %12888 = vmatmul.mubr.msk.f32.gmra.mrb[28].mxu1 %vm296_vm4, %v18361_v22  ;;  %v18366_v22 = vld [vmem:[#allocation7_spill] sm:$0xff] }
 0x4ae   : > { %12890 = vmatprep.mubr.msk.f32.mxu1 %vm296_vm4, %v16913_v7  ;;  %v18367_v7 = vld [vmem:[#allocation12_spill] sm:$0xff] }
 0x4b1   : > { %12891 = vmatmul.mubr.msk.f32.gmra.mrb[30].mxu1 %vm296_vm4, %v16917_v39  ;;  %v18368_v39 = vld [vmem:[#allocation9_spill] sm:$0xff] }
 0x4b2   : > { %12895 = vmatprep.mubr.msk.f32.mxu1 %vm296_vm4, %v18364_v30  ;;  %v6499_v30 = vld [vmem:[#allocation2 + $0x108] sm:$0xff] }
 0x4b5   : > { %12896 = vmatmul.mubr.msk.f32.vlgmr.msra.gmra.mrb[0].mxu1 %vm296_vm4, %v18365_v20  ;;  %v6500_v20 = vld [vmem:[#allocation2 + $0x110] sm:$0xff] }
 0x4b6   : > { %12944 = vmatpush3.msk.msra.mxu1 %vm4269_vm3, %v11613_v58  ;;  %12898 = vmatprep.mubr.msk.f32.mxu1 %vm296_vm4, %v18366_v22  ;;  %v6491_v58 = vld [vmem:[#allocation2 + $0xa8] sm:$0xff]  ;;  %v6501_v22 = vld [vmem:[#allocation2 + $0x120] sm:$0xff] }
 0x4b7   : > { %12993 = vmatprep.subr.msk.mxu1 %vm4269_vm3, %v11647_v19 }
 0x4b9   : > { %12899 = vmatmul.mubr.msk.f32.gmra.mrb[2].mxu1 %vm296_vm4, %v18367_v7  ;;  %v6492_v7 = vld [vmem:[#allocation2 + $0xb0] sm:$0xff] }
 0x4ba   : > { %12901 = vmatprep.mubr.msk.f32.mxu1 %vm296_vm4, %v18368_v39  ;;  %v6493_v39 = vld [vmem:[#allocation2 + $0xc0] sm:$0xff] }
 0x4bd   : > { %12902 = vmatmul.mubr.msk.f32.gmra.mrb[4].mxu1 %vm296_vm4, %v16711_v62  ;;  %v6494_v62 = vld [vmem:[#allocation2 + $0xc8] sm:$0xff] }
 0x4be   : > { %12904 = vmatprep.mubr.msk.f32.mxu1 %vm296_vm4, %v16715_v18  ;;  %v6495_v18 = vld [vmem:[#allocation2 + $0xd8] sm:$0xff] }
 0x4c1   : > { %12905 = vmatmul.mubr.msk.f32.gmra.mrb[6].mxu1 %vm296_vm4, %v16719_v45  ;;  %v6496_v45 = vld [vmem:[#allocation2 + $0xe0] sm:$0xff] }
 0x4c2   : > { %12907 = vmatprep.mubr.msk.f32.mxu1 %vm296_vm4, %v16723_v0  ;;  %v6497_v0 = vld [vmem:[#allocation2 + $0xf0] sm:$0xff] }
 0x4c5   : > { %12908 = vmatmul.mubr.msk.f32.gmra.mrb[8].mxu1 %vm296_vm4, %v16727_v63  ;;  %v6498_v63 = vld [vmem:[#allocation2 + $0xf8] sm:$0xff] }
 0x4c6   : > { %12910 = vmatprep.mubr.msk.f32.mxu1 %vm296_vm4, %v6491_v58  ;;  %v6502_v58 = vld [vmem:[#allocation2 + $0x128] sm:$0xff] }
 0x4c9   : > { %12911 = vmatmul.mubr.msk.f32.gmra.mrb[10].mxu1 %vm296_vm4, %v6492_v7  ;;  %v6503_v7 = vld [vmem:[#allocation2 + $0x138] sm:$0xff] }
 0x4ca   : > { %12913 = vmatprep.mubr.msk.f32.mxu1 %vm296_vm4, %v6493_v39  ;;  %v6511_v39 = vld [vmem:[#allocation2 + $0x198] sm:$0xff] }
 0x4cd   : > { %12914 = vmatmul.mubr.msk.f32.gmra.mrb[12].mxu1 %vm296_vm4, %v6494_v62 }
 0x4ce   : > { %12916 = vmatprep.mubr.msk.f32.mxu1 %vm296_vm4, %v6495_v18 }
 0x4d1   : > { %12917 = vmatmul.mubr.msk.f32.gmra.mrb[14].mxu1 %vm296_vm4, %v6496_v45 }
 0x4d2   : > { %12919 = vmatprep.mubr.msk.f32.mxu1 %vm296_vm4, %v6497_v0 }
 0x4d5   : > { %12920 = vmatmul.mubr.msk.f32.gmra.mrb[16].mxu1 %vm296_vm4, %v6498_v63 }
 0x4d6   : > { %12922 = vmatprep.mubr.msk.f32.mxu1 %vm296_vm4, %v6499_v30 }
 0x4d9   : > { %12923 = vmatmul.mubr.msk.f32.gmra.mrb[18].mxu1 %vm296_vm4, %v6500_v20 }
 0x4da   : > { %12925 = vmatprep.mubr.msk.f32.mxu1 %vm296_vm4, %v6501_v22 }
 0x4dd   : > { %12926 = vmatmul.mubr.msk.f32.gmra.mrb[20].mxu1 %vm296_vm4, %v6502_v58 }
 0x4de   : > { %12928 = vmatprep.mubr.msk.f32.mxu1 %vm296_vm4, %v6503_v7 }
 0x4e1   : > { %12929 = vmatmul.mubr.msk.f32.gmra.mrb[22].mxu1 %vm296_vm4, %v16349_v54  ;;  %v6512_v54 = vld [vmem:[#allocation2 + $0x1a0] sm:$0xff] }
 0x4e2   : > { %12931 = vmatprep.mubr.msk.f32.mxu1 %vm296_vm4, %v16359_v44  ;;  %v6901_v44 = vld [vmem:[#allocation2 + $0x199] sm:$0xff] }
 0x4e5   : > { %12932 = vmatmul.mubr.msk.f32.gmra.mrb[24].mxu1 %vm296_vm4, %v16371_v43  ;;  %v6902_v43 = vld [vmem:[#allocation2 + $0x1a1] sm:$0xff] }
 0x4e6   : > { %12934 = vmatprep.mubr.msk.f32.mxu1 %vm296_vm4, %v16379_v6  ;;  %v18369_v6 = vld [vmem:[#allocation33_spill] sm:$0xff] }
 0x4e9   : > { %12935 = vmatmul.mubr.msk.f32.gmra.mrb[26].mxu1 %vm296_vm4, %v16391_v8  ;;  %v18370_v8 = vld [vmem:[#allocation20_spill] sm:$0xff] }
 0x4ea   : > { %12937 = vmatprep.mubr.msk.f32.mxu1 %vm296_vm4, %v16767_v28 }
 0x4ed   : > { %12938 = vmatmul.mubr.msk.f32.gmra.mrb[28].mxu1 %vm296_vm4, %v16771_v1 }
 0x4ee   : > { %12940 = vmatprep.mubr.msk.f32.mxu1 %vm296_vm4, %v6511_v39 }
 0x4f1   : > { %12941 = vmatmul.mubr.msk.f32.gmra.mrb[30].mxu1 %vm296_vm4, %v6512_v54 }
 0x4f2   : > { %12945 = vmatprep.mubr.msk.f32.mxu1 %vm296_vm4, %v16419_v29  ;;  %v18371_v29 = vld [vmem:[#allocation18_spill] sm:$0xff] }
 0x4f5   : > { %12946 = vmatmul.mubr.msk.f32.vlgmr.msra.gmra.mrb[0].mxu1 %vm296_vm4, %v16424_v15  ;;  %v18372_v15 = vld [vmem:[#allocation21_spill] sm:$0xff] }
 0x4f6   : > { %12994 = vmatpush3.msk.msra.mxu1 %vm4269_vm3, %v11647_v19  ;;  %12948 = vmatprep.mubr.msk.f32.mxu1 %vm296_vm4, %v16429_v40  ;;  %v18373_v40 = vld [vmem:[#allocation19_spill] sm:$0xff] }
 0x4f9   : > { %12949 = vmatmul.mubr.msk.f32.gmra.mrb[2].mxu1 %vm296_vm4, %v16434_v37  ;;  %v18374_v37 = vld [vmem:[#allocation23_spill] sm:$0xff] }
 0x4fa   : > { %12951 = vmatprep.mubr.msk.f32.mxu1 %vm296_vm4, %v16439_v26  ;;  %v18375_v26 = vld [vmem:[#allocation27_spill] sm:$0xff] }
 0x4fd   : > { %12952 = vmatmul.mubr.msk.f32.gmra.mrb[4].mxu1 %vm296_vm4, %v16444_v38  ;;  %v18376_v38 = vld [vmem:[#allocation24_spill] sm:$0xff] }
 0x4fe   : > { %12954 = vmatprep.mubr.msk.f32.mxu1 %vm296_vm4, %v16449_v9  ;;  %v18377_v9 = vld [vmem:[#allocation28_spill] sm:$0xff] }
 0x501   : > { %12955 = vmatmul.mubr.msk.f32.gmra.mrb[6].mxu1 %vm296_vm4, %v16454_v42  ;;  %v18378_v42 = vld [vmem:[#allocation34_spill] sm:$0xff] }
 0x502   : > { %12957 = vmatprep.mubr.msk.f32.mxu1 %vm296_vm4, %v16459_v55  ;;  %v18379_v55 = vld [vmem:[#allocation36_spill] sm:$0xff] }
 0x505   : > { %12958 = vmatmul.mubr.msk.f32.gmra.mrb[8].mxu1 %vm296_vm4, %v16464_v11  ;;  %v18380_v11 = vld [vmem:[#allocation6_spill] sm:$0xff] }
 0x506   : > { %12960 = vmatprep.mubr.msk.f32.mxu1 %vm296_vm4, %v16469_v10  ;;  %v18381_v10 = vld [vmem:[#allocation8_spill] sm:$0xff] }
 0x509   : > { %12961 = vmatmul.mubr.msk.f32.gmra.mrb[10].mxu1 %vm296_vm4, %v16474_v4  ;;  %v18382_v4 = vld [vmem:[#allocation14_spill] sm:$0xff] }
 0x50a   : > { %12963 = vmatprep.mubr.msk.f32.mxu1 %vm296_vm4, %v16479_v5  ;;  %v7291_v5 = vld [vmem:[#allocation2 + $0x19a] sm:$0xff] }
 0x50d   : > { %12964 = vmatmul.mubr.msk.f32.gmra.mrb[12].mxu1 %vm296_vm4, %v16484_v49  ;;  %v18383_v49 = vld [vmem:[#allocation11_spill] sm:$0xff] }
 0x50e   : > { %12966 = vmatprep.mubr.msk.f32.mxu1 %vm296_vm4, %v16489_v17  ;;  %v7292_v17 = vld [vmem:[#allocation2 + $0x1a2] sm:$0xff] }
 0x511   : > { %12967 = vmatmul.mubr.msk.f32.gmra.mrb[14].mxu1 %vm296_vm4, %v16494_v14  ;;  %v7755_v14 = vld [vmem:[%s18098_s5] sm:$0xf] }
 0x512   : > { %12969 = vmatprep.mubr.msk.f32.mxu1 %vm296_vm4, %v16499_v48  ;;  %13043 = vmatprep.subr.msk.mxu0 %vm4269_vm3, %v7755_v14  ;;  %v7723_v48 = vld [vmem:[#allocation2] sm:$0xff] }
 0x513   : > { %13044 = vmatpush3.msk.msra.mxu0 %vm4269_vm3, %v7755_v14  ;;  %13045 = vmatprep.mubr.msk.f32.mxu0 %vm296_vm4, %v7723_v48 }
 0x515   : > { %12970 = vmatmul.mubr.msk.f32.gmra.mrb[16].mxu1 %vm296_vm4, %v16504_v31  ;;  %v11715_v31 = vld [vmem:[%s18098_s5 + $0x4] sm:$0xf] }
 0x516   : > { %12972 = vmatprep.mubr.msk.f32.mxu1 %vm296_vm4, %v16509_v21  ;;  %v7724_v21 = vld [vmem:[#allocation2 + $0x8] sm:$0xff]  ;;  %13093 = vmatprep.subr.msk.mxu0 %vm4269_vm3, %v11715_v31 }
 0x517   : > { %13046 = vmatmul.mubr.msk.f32.vlgmr.msra.gmra.mrb[2].mxu0 %vm296_vm4, %v7724_v21 }
 0x518   : > { %13094 = vmatpush3.msk.msra.mxu0 %vm4269_vm3, %v11715_v31 }
 0x519   : > { %12973 = vmatmul.mubr.msk.f32.gmra.mrb[18].mxu1 %vm296_vm4, %v16514_v2  ;;  %v17115_v2 = vld [vmem:[%s18098_s5 + $0x8] sm:$0xf] }
 0x51a   : > { %12975 = vmatprep.mubr.msk.f32.mxu1 %vm296_vm4, %v16519_v32  ;;  %13143 = vmatprep.subr.msk.mxu0 %vm4269_vm3, %v17115_v2  ;;  %v17122_v32 = vld [vmem:[%s18097_s4] ss:$0 sm:$0xff] }
 0x51d   : > { %12976 = vmatmul.mubr.msk.f32.gmra.mrb[20].mxu1 %vm296_vm4, %v16523_v34 }
 0x51e   : > { %12978 = vmatprep.mubr.msk.f32.mxu1 %vm296_vm4, %v16528_v24 }
 0x521   : > { %12979 = vmatmul.mubr.msk.f32.gmra.mrb[22].mxu1 %vm296_vm4, %v16532_v61 }
 0x522   : > { %12981 = vmatprep.mubr.msk.f32.mxu1 %vm296_vm4, %v16536_v47 }
 0x525   : > { %12982 = vmatmul.mubr.msk.f32.gmra.mrb[24].mxu1 %vm296_vm4, %v16540_v27 }
 0x526   : > { %12984 = vmatprep.mubr.msk.f32.mxu1 %vm296_vm4, %v16544_v60 }
 0x529   : > { %12985 = vmatmul.mubr.msk.f32.gmra.mrb[26].mxu1 %vm296_vm4, %v16548_v53 }
 0x52a   : > { %12987 = vmatprep.mubr.msk.f32.mxu1 %vm296_vm4, %v16840_v25 }
 0x52d   : > { %12988 = vmatmul.mubr.msk.f32.gmra.mrb[28].mxu1 %vm296_vm4, %v16844_v51 }
 0x52e   : > { %12990 = vmatprep.mubr.msk.f32.mxu1 %vm296_vm4, %v6901_v44 }
 0x531   : > { %12991 = vmatmul.mubr.msk.f32.gmra.mrb[30].mxu1 %vm296_vm4, %v6902_v43 }
 0x532   : > { %12995 = vmatprep.mubr.msk.f32.mxu1 %vm296_vm4, %v16571_v50 }
 0x535   : > { %12996 = vmatmul.mubr.msk.f32.vlgmr.msra.gmra.mrb[0].mxu1 %vm296_vm4, %v16575_v57 }
 0x536   : > { %12998 = vmatprep.mubr.msk.f32.mxu1 %vm296_vm4, %v16579_v52 }
 0x539   : > { %12999 = vmatmul.mubr.msk.f32.gmra.mrb[2].mxu1 %vm296_vm4, %v16583_v16 }
 0x53a   : > { %13001 = vmatprep.mubr.msk.f32.mxu1 %vm296_vm4, %v16587_v23 }
 0x53d   : > { %13002 = vmatmul.mubr.msk.f32.gmra.mrb[4].mxu1 %vm296_vm4, %v16591_v41 }
 0x53e   : > { %13004 = vmatprep.mubr.msk.f32.mxu1 %vm296_vm4, %v16595_v33 }
 0x541   : > { %13005 = vmatmul.mubr.msk.f32.gmra.mrb[6].mxu1 %vm296_vm4, %v18342_v56 }
 0x542   : > { %13007 = vmatprep.mubr.msk.f32.mxu1 %vm296_vm4, %v18343_v46 }
 0x545   : > { %13008 = vmatmul.mubr.msk.f32.gmra.mrb[8].mxu1 %vm296_vm4, %v18344_v3 }
 0x546   : > { %13010 = vmatprep.mubr.msk.f32.mxu1 %vm296_vm4, %v18345_v59 }
 0x549   : > { %13011 = vmatmul.mubr.msk.f32.gmra.mrb[10].mxu1 %vm296_vm4, %v18346_v13 }
 0x54a   : > { %13013 = vmatprep.mubr.msk.f32.mxu1 %vm296_vm4, %v18369_v6 }
 0x54d   : > { %13014 = vmatmul.mubr.msk.f32.gmra.mrb[12].mxu1 %vm296_vm4, %v18370_v8 }
 0x54e   : > { %13016 = vmatprep.mubr.msk.f32.mxu1 %vm296_vm4, %v18371_v29 }
 0x551   : > { %13017 = vmatmul.mubr.msk.f32.gmra.mrb[14].mxu1 %vm296_vm4, %v18372_v15 }
 0x552   : > { %13019 = vmatprep.mubr.msk.f32.mxu1 %vm296_vm4, %v18373_v40 }
 0x555   : > { %13020 = vmatmul.mubr.msk.f32.gmra.mrb[16].mxu1 %vm296_vm4, %v18374_v37 }
 0x556   : > { %13022 = vmatprep.mubr.msk.f32.mxu1 %vm296_vm4, %v18353_v35 }
 0x559   : > { %13023 = vmatmul.mubr.msk.f32.gmra.mrb[18].mxu1 %vm296_vm4, %v18375_v26 }
 0x55a   : > { %13025 = vmatprep.mubr.msk.f32.mxu1 %vm296_vm4, %v18376_v38 }
 0x55d   : > { %13026 = vmatmul.mubr.msk.f32.gmra.mrb[20].mxu1 %vm296_vm4, %v18356_v12 }
 0x55e   : > { %13028 = vmatprep.mubr.msk.f32.mxu1 %vm296_vm4, %v18377_v9 }
 0x561   : > { %13029 = vmatmul.mubr.msk.f32.gmra.mrb[22].mxu1 %vm296_vm4, %v18358_v36 }
 0x562   : > { %13031 = vmatprep.mubr.msk.f32.mxu1 %vm296_vm4, %v18378_v42 }
 0x565   : > { %13032 = vmatmul.mubr.msk.f32.gmra.mrb[24].mxu1 %vm296_vm4, %v18379_v55 }
 0x566   : > { %13034 = vmatprep.mubr.msk.f32.mxu1 %vm296_vm4, %v18380_v11 }
 0x569   : > { %13035 = vmatmul.mubr.msk.f32.gmra.mrb[26].mxu1 %vm296_vm4, %v18381_v10 }
 0x56a   : > { %13037 = vmatprep.mubr.msk.f32.mxu1 %vm296_vm4, %v18382_v4 }
 0x56d   : > { %13038 = vmatmul.mubr.msk.f32.gmra.mrb[28].mxu1 %vm296_vm4, %v18383_v49 }
 0x56e   : > { %13040 = vmatprep.mubr.msk.f32.mxu1 %vm296_vm4, %v7291_v5 }
 0x571   : > { %13041 = vmatmul.mubr.msk.f32.gmra.mrb[30].mxu1 %vm296_vm4, %v7292_v17 }
 0x608   : > { %v12997_v34 = vpop.f32.mrb[0].mxu1 }
 0x609   : > { %v13493_v24 = vadd.f32 %v12997_v34, %v17122_v32  ;;  %v7460_v61 = vpop.f32.mrb[1].mxu1 }
 0x60a   : > { %v13494_v47 = vadd.f32 %v17122_v32, %v7460_v61 }
 0x60b   : > { %v7652_v27 = vmax.f32 %v13493_v24, 0.0 }
 0x60c   : > { %v7651_v60 = vmax.f32 %v13494_v47, 0.0  ;;  %v13000_v53 = vpop.f32.mrb[2].mxu1 }
 0x60d   : > { %7684 = vst.msk [vmem:[#allocation2 + $0x21] sm:$0xff] %vm296_vm4, %v7652_v27  ;;  %v13495_v50 = vadd.f32 %v13000_v53, %v17122_v32  ;;  %v7470_v57 = vpop.f32.mrb[3].mxu1 }
 0x60e   : > { %7683 = vst.msk [vmem:[#allocation2 + $0x19] sm:$0xff] %vm296_vm4, %v7651_v60  ;;  %v13496_v52 = vadd.f32 %v17122_v32, %v7470_v57 }
 0x60f   : > { %v7654_v16 = vmax.f32 %v13495_v50, 0.0 }
 0x610   : > { %v7653_v23 = vmax.f32 %v13496_v52, 0.0  ;;  %v13003_v41 = vpop.f32.mrb[4].mxu1 }
 0x611   : > { %7686 = vst.msk [vmem:[#allocation2 + $0x39] sm:$0xff] %vm296_vm4, %v7654_v16  ;;  %v13497_v33 = vadd.f32 %v13003_v41, %v17122_v32  ;;  %v7480_v19 = vpop.f32.mrb[5].mxu1 }
 0x612   : > { %7685 = vst.msk [vmem:[#allocation2 + $0x31] sm:$0xff] %vm296_vm4, %v7653_v23  ;;  %v13498_v28 = vadd.f32 %v17122_v32, %v7480_v19 }
 0x613   : > { %v7656_v1 = vmax.f32 %v13497_v33, 0.0 }
 0x614   : > { %v7655_v25 = vmax.f32 %v13498_v28, 0.0  ;;  %v13006_v51 = vpop.f32.mrb[6].mxu1 }
 0x615   : > { %7688 = vst.msk [vmem:[#allocation2 + $0x51] sm:$0xff] %vm296_vm4, %v7656_v1  ;;  %v13499_v56 = vadd.f32 %v13006_v51, %v17122_v32  ;;  %v7490_v46 = vpop.f32.mrb[7].mxu1  ;;  %v17136_v3 = vld [vmem:[#allocation2 + $0x18] sm:$0xff]  ;;  %v17138_v59 = vld [vmem:[#allocation2 + $0x20] sm:$0xff] }
 0x616   : > { %7687 = vst.msk [vmem:[#allocation2 + $0x49] sm:$0xff] %vm296_vm4, %v7655_v25  ;;  %v13500_v13 = vadd.f32 %v17122_v32, %v7490_v46  ;;  %13048 = vmatprep.mubr.msk.f32.mxu0 %vm296_vm4, %v17136_v3 }
 0x617   : > { %v7658_v12 = vmax.f32 %v13499_v56, 0.0  ;;  %13049 = vmatmul.mubr.msk.f32.gmra.mrb[4].mxu0 %vm296_vm4, %v17138_v59 }
 0x618   : > { %v7657_v36 = vmax.f32 %v13500_v13, 0.0  ;;  %v13009_v35 = vpop.f32.mrb[8].mxu1 }
 0x619   : > { %7690 = vst.msk [vmem:[#allocation2 + $0x69] sm:$0xff] %vm296_vm4, %v7658_v12  ;;  %v13501_v62 = vadd.f32 %v13009_v35, %v17122_v32  ;;  %v7500_v18 = vpop.f32.mrb[9].mxu1  ;;  %v17148_v45 = vld [vmem:[#allocation2 + $0x30] sm:$0xff]  ;;  %v17150_v0 = vld [vmem:[#allocation2 + $0x38] sm:$0xff] }
 0x61a   : > { %7689 = vst.msk [vmem:[#allocation2 + $0x61] sm:$0xff] %vm296_vm4, %v7657_v36  ;;  %v13502_v63 = vadd.f32 %v17122_v32, %v7500_v18  ;;  %13051 = vmatprep.mubr.msk.f32.mxu0 %vm296_vm4, %v17148_v45 }
 0x61b   : > { %v7660_v30 = vmax.f32 %v13501_v62, 0.0  ;;  %13052 = vmatmul.mubr.msk.f32.gmra.mrb[6].mxu0 %vm296_vm4, %v17150_v0 }
 0x61c   : > { %v7659_v20 = vmax.f32 %v13502_v63, 0.0  ;;  %v13012_v22 = vpop.f32.mrb[10].mxu1 }
 0x61d   : > { %7692 = vst.msk [vmem:[#allocation2 + $0x81] sm:$0xff] %vm296_vm4, %v7660_v30  ;;  %v13503_v58 = vadd.f32 %v13012_v22, %v17122_v32  ;;  %v7510_v7 = vpop.f32.mrb[11].mxu1  ;;  %v17160_v39 = vld [vmem:[#allocation2 + $0x48] sm:$0xff]  ;;  %v17162_v54 = vld [vmem:[#allocation2 + $0x50] sm:$0xff] }
 0x61e   : > { %7691 = vst.msk [vmem:[#allocation2 + $0x79] sm:$0xff] %vm296_vm4, %v7659_v20  ;;  %v13504_v44 = vadd.f32 %v17122_v32, %v7510_v7  ;;  %13054 = vmatprep.mubr.msk.f32.mxu0 %vm296_vm4, %v17160_v39 }
 0x61f   : > { %v7662_v43 = vmax.f32 %v13503_v58, 0.0  ;;  %13055 = vmatmul.mubr.msk.f32.gmra.mrb[8].mxu0 %vm296_vm4, %v17162_v54 }
 0x620   : > { %v7661_v6 = vmax.f32 %v13504_v44, 0.0  ;;  %v13015_v8 = vpop.f32.mrb[12].mxu1 }
 0x621   : > { %7694 = vst.msk [vmem:[#allocation2 + $0x99] sm:$0xff] %vm296_vm4, %v7662_v43  ;;  %v13505_v29 = vadd.f32 %v13015_v8, %v17122_v32  ;;  %v7520_v15 = vpop.f32.mrb[13].mxu1  ;;  %v17172_v40 = vld [vmem:[#allocation2 + $0x60] sm:$0xff]  ;;  %v17174_v37 = vld [vmem:[#allocation2 + $0x68] sm:$0xff] }
 0x622   : > { %7693 = vst.msk [vmem:[#allocation2 + $0x91] sm:$0xff] %vm296_vm4, %v7661_v6  ;;  %v13506_v26 = vadd.f32 %v17122_v32, %v7520_v15  ;;  %13057 = vmatprep.mubr.msk.f32.mxu0 %vm296_vm4, %v17172_v40 }
 0x623   : > { %v7664_v38 = vmax.f32 %v13505_v29, 0.0  ;;  %13058 = vmatmul.mubr.msk.f32.gmra.mrb[10].mxu0 %vm296_vm4, %v17174_v37 }
 0x624   : > { %v7663_v9 = vmax.f32 %v13506_v26, 0.0  ;;  %v13018_v42 = vpop.f32.mrb[14].mxu1 }
 0x625   : > { %7696 = vst.msk [vmem:[#allocation2 + $0xb1] sm:$0xff] %vm296_vm4, %v7664_v38  ;;  %v13507_v55 = vadd.f32 %v13018_v42, %v17122_v32  ;;  %v7530_v11 = vpop.f32.mrb[15].mxu1  ;;  %v17184_v10 = vld [vmem:[#allocation2 + $0x78] sm:$0xff]  ;;  %v17186_v4 = vld [vmem:[#allocation2 + $0x80] sm:$0xff] }
 0x626   : > { %7695 = vst.msk [vmem:[#allocation2 + $0xa9] sm:$0xff] %vm296_vm4, %v7663_v9  ;;  %v13508_v5 = vadd.f32 %v17122_v32, %v7530_v11  ;;  %13060 = vmatprep.mubr.msk.f32.mxu0 %vm296_vm4, %v17184_v10 }
 0x627   : > { %v7666_v49 = vmax.f32 %v13507_v55, 0.0  ;;  %13061 = vmatmul.mubr.msk.f32.gmra.mrb[12].mxu0 %vm296_vm4, %v17186_v4 }
 0x628   : > { %v7665_v17 = vmax.f32 %v13508_v5, 0.0  ;;  %v13021_v14 = vpop.f32.mrb[16].mxu1 }
 0x629   : > { %7698 = vst.msk [vmem:[#allocation2 + $0xc9] sm:$0xff] %vm296_vm4, %v7666_v49  ;;  %v13509_v48 = vadd.f32 %v13021_v14, %v17122_v32  ;;  %v7540_v31 = vpop.f32.mrb[17].mxu1  ;;  %v17196_v21 = vld [vmem:[#allocation2 + $0x90] sm:$0xff]  ;;  %v17198_v34 = vld [vmem:[#allocation2 + $0x98] sm:$0xff] }
 0x62a   : > { %7697 = vst.msk [vmem:[#allocation2 + $0xc1] sm:$0xff] %vm296_vm4, %v7665_v17  ;;  %v13510_v24 = vadd.f32 %v17122_v32, %v7540_v31  ;;  %13063 = vmatprep.mubr.msk.f32.mxu0 %vm296_vm4, %v17196_v21 }
 0x62b   : > { %v7668_v61 = vmax.f32 %v13509_v48, 0.0  ;;  %13064 = vmatmul.mubr.msk.f32.gmra.mrb[14].mxu0 %vm296_vm4, %v17198_v34 }
 0x62c   : > { %v7667_v47 = vmax.f32 %v13510_v24, 0.0  ;;  %v13024_v27 = vpop.f32.mrb[18].mxu1 }
 0x62d   : > { %7700 = vst.msk [vmem:[#allocation2 + $0xe1] sm:$0xff] %vm296_vm4, %v7668_v61  ;;  %v13511_v60 = vadd.f32 %v13024_v27, %v17122_v32  ;;  %v7550_v53 = vpop.f32.mrb[19].mxu1  ;;  %v17208_v50 = vld [vmem:[#allocation2 + $0xa8] sm:$0xff]  ;;  %v17210_v57 = vld [vmem:[#allocation2 + $0xb0] sm:$0xff] }
 0x62e   : > { %7699 = vst.msk [vmem:[#allocation2 + $0xd9] sm:$0xff] %vm296_vm4, %v7667_v47  ;;  %v13512_v52 = vadd.f32 %v17122_v32, %v7550_v53  ;;  %13066 = vmatprep.mubr.msk.f32.mxu0 %vm296_vm4, %v17208_v50 }
 0x62f   : > { %v7670_v16 = vmax.f32 %v13511_v60, 0.0  ;;  %13067 = vmatmul.mubr.msk.f32.gmra.mrb[16].mxu0 %vm296_vm4, %v17210_v57 }
 0x630   : > { %v7669_v23 = vmax.f32 %v13512_v52, 0.0  ;;  %v13027_v41 = vpop.f32.mrb[20].mxu1 }
 0x631   : > { %7702 = vst.msk [vmem:[#allocation2 + $0xf9] sm:$0xff] %vm296_vm4, %v7670_v16  ;;  %v13513_v33 = vadd.f32 %v13027_v41, %v17122_v32  ;;  %v7560_v19 = vpop.f32.mrb[21].mxu1  ;;  %v17220_v28 = vld [vmem:[#allocation2 + $0xc0] sm:$0xff]  ;;  %v17222_v1 = vld [vmem:[#allocation2 + $0xc8] sm:$0xff] }
 0x632   : > { %7701 = vst.msk [vmem:[#allocation2 + $0xf1] sm:$0xff] %vm296_vm4, %v7669_v23  ;;  %v13514_v25 = vadd.f32 %v17122_v32, %v7560_v19  ;;  %13069 = vmatprep.mubr.msk.f32.mxu0 %vm296_vm4, %v17220_v28 }
 0x633   : > { %v7672_v51 = vmax.f32 %v13513_v33, 0.0  ;;  %13070 = vmatmul.mubr.msk.f32.gmra.mrb[18].mxu0 %vm296_vm4, %v17222_v1 }
 0x634   : > { %v7671_v56 = vmax.f32 %v13514_v25, 0.0  ;;  %v13030_v46 = vpop.f32.mrb[22].mxu1  ;;  %v8112_v25 = vld [vmem:[#allocation2 + $0x1] sm:$0xff] }
 0x635   : > { %7704 = vst.msk [vmem:[#allocation2 + $0x111] sm:$0xff] %vm296_vm4, %v7672_v51  ;;  %v13515_v13 = vadd.f32 %v13030_v46, %v17122_v32  ;;  %v7570_v12 = vpop.f32.mrb[23].mxu1  ;;  %v17232_v36 = vld [vmem:[#allocation2 + $0xd8] sm:$0xff]  ;;  %v17234_v35 = vld [vmem:[#allocation2 + $0xe0] sm:$0xff]  ;;  %v8113_v51 = vld [vmem:[#allocation2 + $0x9] sm:$0xff] }
 0x636   : > { %7703 = vst.msk [vmem:[#allocation2 + $0x109] sm:$0xff] %vm296_vm4, %v7671_v56  ;;  %v13516_v62 = vadd.f32 %v17122_v32, %v7570_v12  ;;  %13072 = vmatprep.mubr.msk.f32.mxu0 %vm296_vm4, %v17232_v36  ;;  %v17312_v56 = vld [vmem:[%s18098_s5 + $0xc] sm:$0xf]  ;;  %v17315_v46 = vld [vmem:[#allocation2 + $0x19] sm:$0xff]  ;;  %v17327_v12 = vld [vmem:[#allocation2 + $0x31] sm:$0xff] }
 0x637   : > { %v7674_v18 = vmax.f32 %v13515_v13, 0.0  ;;  %13073 = vmatmul.mubr.msk.f32.gmra.mrb[20].mxu0 %vm296_vm4, %v17234_v35  ;;  %v17323_v13 = vld [vmem:[#allocation2 + $0x21] sm:$0xff] }
 0x638   : > { %v7673_v63 = vmax.f32 %v13516_v62, 0.0  ;;  %v13033_v30 = vpop.f32.mrb[24].mxu1  ;;  %v17331_v62 = vld [vmem:[#allocation2 + $0x39] sm:$0xff] }
 0x639   : > { %7706 = vst.msk [vmem:[#allocation2 + $0x129] sm:$0xff] %vm296_vm4, %v7674_v18  ;;  %v13517_v20 = vadd.f32 %v13033_v30, %v17122_v32  ;;  %v7580_v22 = vpop.f32.mrb[25].mxu1  ;;  %v17244_v58 = vld [vmem:[#allocation2 + $0xf0] sm:$0xff]  ;;  %v17246_v7 = vld [vmem:[#allocation2 + $0xf8] sm:$0xff] }
 0x63a   : > { %7705 = vst.msk [vmem:[#allocation2 + $0x121] sm:$0xff] %vm296_vm4, %v7673_v63  ;;  %v13518_v44 = vadd.f32 %v17122_v32, %v7580_v22  ;;  %13075 = vmatprep.mubr.msk.f32.mxu0 %vm296_vm4, %v17244_v58  ;;  %v17339_v18 = vld [vmem:[#allocation2 + $0x51] sm:$0xff]  ;;  %v17343_v63 = vld [vmem:[#allocation2 + $0x61] sm:$0xff]  ;;  %v17347_v30 = vld [vmem:[#allocation2 + $0x69] sm:$0xff] }
 0x63b   : > { %v7676_v43 = vmax.f32 %v13517_v20, 0.0  ;;  %13076 = vmatmul.mubr.msk.f32.gmra.mrb[22].mxu0 %vm296_vm4, %v17246_v7  ;;  %v17351_v20 = vld [vmem:[#allocation2 + $0x79] sm:$0xff]  ;;  %v17355_v22 = vld [vmem:[#allocation2 + $0x81] sm:$0xff] }
 0x63c   : > { %v7675_v6 = vmax.f32 %v13518_v44, 0.0  ;;  %v13036_v8 = vpop.f32.mrb[26].mxu1  ;;  %v17359_v44 = vld [vmem:[#allocation2 + $0x91] sm:$0xff] }
 0x63d   : > { %7708 = vst.msk [vmem:[#allocation2 + $0x141] sm:$0xff] %vm296_vm4, %v7676_v43  ;;  %v13519_v29 = vadd.f32 %v13036_v8, %v17122_v32  ;;  %v7590_v15 = vpop.f32.mrb[27].mxu1  ;;  %v17256_v26 = vld [vmem:[#allocation2 + $0x108] sm:$0xff]  ;;  %v17258_v38 = vld [vmem:[#allocation2 + $0x110] sm:$0xff]  ;;  %v17363_v43 = vld [vmem:[#allocation2 + $0x99] sm:$0xff] }
 0x63e   : > { %7707 = vst.msk [vmem:[#allocation2 + $0x139] sm:$0xff] %vm296_vm4, %v7675_v6  ;;  %v13520_v9 = vadd.f32 %v17122_v32, %v7590_v15  ;;  %13078 = vmatprep.mubr.msk.f32.mxu0 %vm296_vm4, %v17256_v26  ;;  %v17367_v6 = vld [vmem:[#allocation2 + $0xa9] sm:$0xff]  ;;  %v17371_v8 = vld [vmem:[#allocation2 + $0xb1] sm:$0xff] }
 0x63f   : > { %v7678_v42 = vmax.f32 %v13519_v29, 0.0  ;;  %13079 = vmatmul.mubr.msk.f32.gmra.mrb[24].mxu0 %vm296_vm4, %v17258_v38  ;;  %v17375_v29 = vld [vmem:[#allocation2 + $0xc1] sm:$0xff]  ;;  %v17379_v15 = vld [vmem:[#allocation2 + $0xc9] sm:$0xff] }
 0x640   : > { %v7677_v55 = vmax.f32 %v13520_v9, 0.0  ;;  %v13039_v11 = vpop.f32.mrb[28].mxu1  ;;  %v17383_v9 = vld [vmem:[#allocation2 + $0xd9] sm:$0xff] }
 0x641   : > { %7710 = vst.msk [vmem:[#allocation2 + $0x159] sm:$0xff] %vm296_vm4, %v7678_v42  ;;  %v13521_v5 = vadd.f32 %v13039_v11, %v17122_v32  ;;  %v7600_v49 = vpop.f32.mrb[29].mxu1  ;;  %v17268_v17 = vld [vmem:[#allocation2 + $0x120] sm:$0xff]  ;;  %v17270_v14 = vld [vmem:[#allocation2 + $0x128] sm:$0xff] }
 0x642   : > { %7709 = vst.msk [vmem:[#allocation2 + $0x151] sm:$0xff] %vm296_vm4, %v7677_v55  ;;  %v13522_v48 = vadd.f32 %v17122_v32, %v7600_v49  ;;  %13081 = vmatprep.mubr.msk.f32.mxu0 %vm296_vm4, %v17268_v17  ;;  %v17387_v42 = vld [vmem:[#allocation2 + $0xe1] sm:$0xff]  ;;  %v17391_v55 = vld [vmem:[#allocation2 + $0xf1] sm:$0xff]  ;;  %v17395_v11 = vld [vmem:[#allocation2 + $0xf9] sm:$0xff] }
 0x643   : > { %v7680_v31 = vmax.f32 %v13521_v5, 0.0  ;;  %13082 = vmatmul.mubr.msk.f32.gmra.mrb[26].mxu0 %vm296_vm4, %v17270_v14  ;;  %v17399_v5 = vld [vmem:[#allocation2 + $0x109] sm:$0xff]  ;;  %v17403_v49 = vld [vmem:[#allocation2 + $0x111] sm:$0xff] }
 0x644   : > { %v7679_v24 = vmax.f32 %v13522_v48, 0.0  ;;  %v13042_v61 = vpop.f32.mrb[30].mxu1  ;;  %v17407_v48 = vld [vmem:[#allocation2 + $0x121] sm:$0xff] }
 0x645   : > { %7712 = vst.msk [vmem:[#allocation2 + $0x171] sm:$0xff] %vm296_vm4, %v7680_v31  ;;  %v13523_v47 = vadd.f32 %v13042_v61, %v17122_v32  ;;  %v7610_v27 = vpop.f32.mrb[31].mxu1  ;;  %v17280_v60 = vld [vmem:[#allocation2 + $0x138] sm:$0xff]  ;;  %v17282_v53 = vld [vmem:[#allocation2 + $0x140] sm:$0xff]  ;;  %v17411_v31 = vld [vmem:[#allocation2 + $0x129] sm:$0xff] }
 0x646   : > { %7711 = vst.msk [vmem:[#allocation2 + $0x169] sm:$0xff] %vm296_vm4, %v7679_v24  ;;  %v13524_v52 = vadd.f32 %v17122_v32, %v7610_v27  ;;  %13084 = vmatprep.mubr.msk.f32.mxu0 %vm296_vm4, %v17280_v60  ;;  %18384 = vst [vmem:[#allocation16_spill] sm:$0xff] %v17411_v31  ;;  %v17415_v24 = vld [vmem:[#allocation2 + $0x139] sm:$0xff]  ;;  %v17419_v61 = vld [vmem:[#allocation2 + $0x141] sm:$0xff] }
 0x647   : > { %v7682_v16 = vmax.f32 %v13523_v47, 0.0  ;;  %13085 = vmatmul.mubr.msk.f32.gmra.mrb[28].mxu0 %vm296_vm4, %v17282_v53  ;;  %18385 = vst [vmem:[#allocation13_spill] sm:$0xff] %v17415_v24  ;;  %18386 = vst [vmem:[#allocation17_spill] sm:$0xff] %v17419_v61 }
 0x648   : > { %v7681_v23 = vmax.f32 %v13524_v52, 0.0  ;;  %v17427_v27 = vld [vmem:[#allocation2 + $0x159] sm:$0xff] }
 0x649   : > { %7714 = vst.msk [vmem:[#allocation2 + $0x189] sm:$0xff] %vm296_vm4, %v7682_v16  ;;  %v17291_v41 = vld [vmem:[#allocation2 + $0x150] sm:$0xff]  ;;  %v17293_v33 = vld [vmem:[#allocation2 + $0x158] sm:$0xff]  ;;  %18388 = vst [vmem:[#allocation4_spill] sm:$0xff] %v17427_v27 }
 0x64a   : > { %7713 = vst.msk [vmem:[#allocation2 + $0x181] sm:$0xff] %vm296_vm4, %v7681_v23  ;;  %13087 = vmatprep.mubr.msk.f32.mxu0 %vm296_vm4, %v17291_v41  ;;  %v17423_v47 = vld [vmem:[#allocation2 + $0x151] sm:$0xff]  ;;  %v8502_v16 = vld [vmem:[#allocation2 + $0x2] sm:$0xff] }
 0x64b   : > { %13088 = vmatmul.mubr.msk.f32.gmra.mrb[30].mxu0 %vm296_vm4, %v17293_v33  ;;  %18387 = vst [vmem:[#allocation15_spill] sm:$0xff] %v17423_v47 }
 0x64c   : > { %v17435_v23 = vld [vmem:[#allocation2 + $0x171] sm:$0xff] }
 0x64d   : > { %v17300_v32 = vld [vmem:[#allocation2 + $0x168] sm:$0xff]  ;;  %v17302_v19 = vld [vmem:[#allocation2 + $0x170] sm:$0xff]  ;;  %18390 = vst [vmem:[#allocation25_spill] sm:$0xff] %v17435_v23 }
 0x64e   : > { %13090 = vmatprep.mubr.msk.f32.mxu0 %vm296_vm4, %v17300_v32  ;;  %v17431_v52 = vld [vmem:[#allocation2 + $0x169] sm:$0xff] }
 0x64f   : > { %13091 = vmatmul.mubr.msk.f32.gmra.mrb[32].mxu0 %vm296_vm4, %v17302_v19  ;;  %18389 = vst [vmem:[#allocation3_spill] sm:$0xff] %v17431_v52 }
 0x650   : > { %13095 = vmatprep.mubr.msk.f32.mxu0 %vm296_vm4, %v8112_v25  ;;  %v8503_v25 = vld [vmem:[#allocation2 + $0xa] sm:$0xff] }
 0x653   : > { %13096 = vmatmul.mubr.msk.f32.vlgmr.msra.gmra.mrb[2].mxu0 %vm296_vm4, %v8113_v51  ;;  %v17443_v51 = vld [vmem:[%s18098_s5 + $0x10] sm:$0xf] }
 0x654   : > { %13144 = vmatpush3.msk.msra.mxu0 %vm4269_vm3, %v17115_v2  ;;  %13098 = vmatprep.mubr.msk.f32.mxu0 %vm296_vm4, %v17315_v46  ;;  %v17335_v2 = vld [vmem:[#allocation2 + $0x49] sm:$0xff] }
 0x655   : > { %13193 = vmatprep.subr.msk.mxu0 %vm4269_vm3, %v17312_v56 }
 0x657   : > { %13099 = vmatmul.mubr.msk.f32.gmra.mrb[4].mxu0 %vm296_vm4, %v17323_v13 }
 0x658   : > { %13101 = vmatprep.mubr.msk.f32.mxu0 %vm296_vm4, %v17327_v12 }
 0x65b   : > { %13102 = vmatmul.mubr.msk.f32.gmra.mrb[6].mxu0 %vm296_vm4, %v17331_v62 }
 0x65c   : > { %13104 = vmatprep.mubr.msk.f32.mxu0 %vm296_vm4, %v17335_v2 }
 0x65f   : > { %13105 = vmatmul.mubr.msk.f32.gmra.mrb[8].mxu0 %vm296_vm4, %v17339_v18 }
 0x660   : > { %13107 = vmatprep.mubr.msk.f32.mxu0 %vm296_vm4, %v17343_v63 }
 0x663   : > { %13108 = vmatmul.mubr.msk.f32.gmra.mrb[10].mxu0 %vm296_vm4, %v17347_v30 }
 0x664   : > { %13110 = vmatprep.mubr.msk.f32.mxu0 %vm296_vm4, %v17351_v20 }
 0x667   : > { %13111 = vmatmul.mubr.msk.f32.gmra.mrb[12].mxu0 %vm296_vm4, %v17355_v22 }
 0x668   : > { %13113 = vmatprep.mubr.msk.f32.mxu0 %vm296_vm4, %v17359_v44 }
 0x66b   : > { %13114 = vmatmul.mubr.msk.f32.gmra.mrb[14].mxu0 %vm296_vm4, %v17363_v43 }
 0x66c   : > { %13116 = vmatprep.mubr.msk.f32.mxu0 %vm296_vm4, %v17367_v6 }
 0x66f   : > { %13117 = vmatmul.mubr.msk.f32.gmra.mrb[16].mxu0 %vm296_vm4, %v17371_v8 }
 0x670   : > { %13119 = vmatprep.mubr.msk.f32.mxu0 %vm296_vm4, %v17375_v29 }
 0x673   : > { %13120 = vmatmul.mubr.msk.f32.gmra.mrb[18].mxu0 %vm296_vm4, %v17379_v15 }
 0x674   : > { %13122 = vmatprep.mubr.msk.f32.mxu0 %vm296_vm4, %v17383_v9 }
 0x677   : > { %13123 = vmatmul.mubr.msk.f32.gmra.mrb[20].mxu0 %vm296_vm4, %v17387_v42 }
 0x678   : > { %13125 = vmatprep.mubr.msk.f32.mxu0 %vm296_vm4, %v17391_v55 }
 0x67b   : > { %13126 = vmatmul.mubr.msk.f32.gmra.mrb[22].mxu0 %vm296_vm4, %v17395_v11 }
 0x67c   : > { %13128 = vmatprep.mubr.msk.f32.mxu0 %vm296_vm4, %v17399_v5 }
 0x67f   : > { %13129 = vmatmul.mubr.msk.f32.gmra.mrb[24].mxu0 %vm296_vm4, %v17403_v49 }
 0x680   : > { %13131 = vmatprep.mubr.msk.f32.mxu0 %vm296_vm4, %v17407_v48 }
 0x683   : > { %13132 = vmatmul.mubr.msk.f32.gmra.mrb[26].mxu0 %vm296_vm4, %v17411_v31 }
 0x684   : > { %13134 = vmatprep.mubr.msk.f32.mxu0 %vm296_vm4, %v17415_v24 }
 0x687   : > { %13135 = vmatmul.mubr.msk.f32.gmra.mrb[28].mxu0 %vm296_vm4, %v17419_v61 }
 0x688   : > { %13137 = vmatprep.mubr.msk.f32.mxu0 %vm296_vm4, %v17423_v47 }
 0x68b   : > { %13138 = vmatmul.mubr.msk.f32.gmra.mrb[30].mxu0 %vm296_vm4, %v17427_v27  ;;  %v17446_v27 = vld [vmem:[#allocation2 + $0x1a] sm:$0xff] }
 0x68c   : > { %13140 = vmatprep.mubr.msk.f32.mxu0 %vm296_vm4, %v17431_v52  ;;  %18391 = vst [vmem:[#allocation26_spill] sm:$0xff] %v17446_v27 }
 0x68f   : > { %13141 = vmatmul.mubr.msk.f32.gmra.mrb[32].mxu0 %vm296_vm4, %v17435_v23  ;;  %v17458_v23 = vld [vmem:[#allocation2 + $0x32] sm:$0xff] }
 0x690   : > { %13145 = vmatprep.mubr.msk.f32.mxu0 %vm296_vm4, %v8502_v16  ;;  %v17454_v16 = vld [vmem:[#allocation2 + $0x22] sm:$0xff]  ;;  %18393 = vst [vmem:[#allocation30_spill] sm:$0xff] %v17458_v23 }
 0x691   : > { %18392 = vst [vmem:[#allocation29_spill] sm:$0xff] %v17454_v16 }
 0x693   : > { %13146 = vmatmul.mubr.msk.f32.vlgmr.msra.gmra.mrb[2].mxu0 %vm296_vm4, %v8503_v25  ;;  %v17462_v25 = vld [vmem:[#allocation2 + $0x3a] sm:$0xff] }
 0x694   : > { %13194 = vmatpush3.msk.msra.mxu0 %vm4269_vm3, %v17312_v56  ;;  %13148 = vmatprep.mubr.msk.f32.mxu0 %vm296_vm4, %v17446_v27  ;;  %18394 = vst [vmem:[#allocation32_spill] sm:$0xff] %v17462_v25  ;;  %v17466_v56 = vld [vmem:[#allocation2 + $0x4a] sm:$0xff]  ;;  %v17470_v27 = vld [vmem:[#allocation2 + $0x52] sm:$0xff] }
 0x695   : > { %13243 = vmatprep.subr.msk.mxu0 %vm4269_vm3, %v17443_v51  ;;  %18395 = vst [vmem:[#allocation22_spill] sm:$0xff] %v17466_v56  ;;  %18396 = vst [vmem:[#allocation31_spill] sm:$0xff] %v17470_v27 }
 0x697   : > { %13149 = vmatmul.mubr.msk.f32.gmra.mrb[4].mxu0 %vm296_vm4, %v17454_v16  ;;  %v17474_v16 = vld [vmem:[#allocation2 + $0x62] sm:$0xff] }
 0x698   : > { %13151 = vmatprep.mubr.msk.f32.mxu0 %vm296_vm4, %v17458_v23  ;;  %18397 = vst [vmem:[#allocation35_spill] sm:$0xff] %v17474_v16  ;;  %v17478_v23 = vld [vmem:[#allocation2 + $0x6a] sm:$0xff] }
 0x699   : > { %18398 = vst [vmem:[#allocation5_spill] sm:$0xff] %v17478_v23 }
 0x69b   : > { %13152 = vmatmul.mubr.msk.f32.gmra.mrb[6].mxu0 %vm296_vm4, %v17462_v25  ;;  %v17482_v25 = vld [vmem:[#allocation2 + $0x7a] sm:$0xff] }
 0x69c   : > { %13154 = vmatprep.mubr.msk.f32.mxu0 %vm296_vm4, %v17466_v56  ;;  %18399 = vst [vmem:[#allocation10_spill] sm:$0xff] %v17482_v25  ;;  %v17486_v56 = vld [vmem:[#allocation2 + $0x82] sm:$0xff] }
 0x69d   : > { %18400 = vst [vmem:[#allocation7_spill] sm:$0xff] %v17486_v56 }
 0x69f   : > { %13155 = vmatmul.mubr.msk.f32.gmra.mrb[8].mxu0 %vm296_vm4, %v17470_v27  ;;  %v17490_v27 = vld [vmem:[#allocation2 + $0x92] sm:$0xff] }
 0x6a0   : > { %13157 = vmatprep.mubr.msk.f32.mxu0 %vm296_vm4, %v17474_v16  ;;  %18401 = vst [vmem:[#allocation12_spill] sm:$0xff] %v17490_v27  ;;  %v17494_v16 = vld [vmem:[#allocation2 + $0x9a] sm:$0xff] }
 0x6a1   : > { %18402 = vst [vmem:[#allocation9_spill] sm:$0xff] %v17494_v16 }
 0x6a3   : > { %13158 = vmatmul.mubr.msk.f32.gmra.mrb[10].mxu0 %vm296_vm4, %v17478_v23  ;;  %v17498_v23 = vld [vmem:[#allocation2 + $0xaa] sm:$0xff] }
 0x6a4   : > { %13160 = vmatprep.mubr.msk.f32.mxu0 %vm296_vm4, %v17482_v25  ;;  %18403 = vst [vmem:[#allocation33_spill] sm:$0xff] %v17498_v23  ;;  %v17502_v25 = vld [vmem:[#allocation2 + $0xb2] sm:$0xff] }
 0x6a5   : > { %18404 = vst [vmem:[#allocation20_spill] sm:$0xff] %v17502_v25 }
 0x6a7   : > { %13161 = vmatmul.mubr.msk.f32.gmra.mrb[12].mxu0 %vm296_vm4, %v17486_v56  ;;  %v17506_v56 = vld [vmem:[#allocation2 + $0xc2] sm:$0xff] }
 0x6a8   : > { %13163 = vmatprep.mubr.msk.f32.mxu0 %vm296_vm4, %v17490_v27  ;;  %18405 = vst [vmem:[#allocation18_spill] sm:$0xff] %v17506_v56  ;;  %v17510_v27 = vld [vmem:[#allocation2 + $0xca] sm:$0xff] }
 0x6a9   : > { %18406 = vst [vmem:[#allocation21_spill] sm:$0xff] %v17510_v27 }
 0x6ab   : > { %13164 = vmatmul.mubr.msk.f32.gmra.mrb[14].mxu0 %vm296_vm4, %v17494_v16  ;;  %v17514_v16 = vld [vmem:[#allocation2 + $0xda] sm:$0xff] }
 0x6ac   : > { %13166 = vmatprep.mubr.msk.f32.mxu0 %vm296_vm4, %v17498_v23  ;;  %18407 = vst [vmem:[#allocation19_spill] sm:$0xff] %v17514_v16  ;;  %v17518_v23 = vld [vmem:[#allocation2 + $0xe2] sm:$0xff] }
 0x6ad   : > { %18408 = vst [vmem:[#allocation23_spill] sm:$0xff] %v17518_v23 }
 0x6af   : > { %13167 = vmatmul.mubr.msk.f32.gmra.mrb[16].mxu0 %vm296_vm4, %v17502_v25  ;;  %v17522_v25 = vld [vmem:[#allocation2 + $0xf2] sm:$0xff] }
 0x6b0   : > { %13169 = vmatprep.mubr.msk.f32.mxu0 %vm296_vm4, %v17506_v56  ;;  %18409 = vst [vmem:[#allocation27_spill] sm:$0xff] %v17522_v25  ;;  %v17526_v56 = vld [vmem:[#allocation2 + $0xfa] sm:$0xff] }
 0x6b1   : > { %18410 = vst [vmem:[#allocation24_spill] sm:$0xff] %v17526_v56 }
 0x6b3   : > { %13170 = vmatmul.mubr.msk.f32.gmra.mrb[18].mxu0 %vm296_vm4, %v17510_v27  ;;  %v17530_v27 = vld [vmem:[#allocation2 + $0x10a] sm:$0xff] }
 0x6b4   : > { %13172 = vmatprep.mubr.msk.f32.mxu0 %vm296_vm4, %v17514_v16  ;;  %18411 = vst [vmem:[#allocation28_spill] sm:$0xff] %v17530_v27  ;;  %v17534_v16 = vld [vmem:[#allocation2 + $0x112] sm:$0xff] }
 0x6b5   : > { %18412 = vst [vmem:[#allocation34_spill] sm:$0xff] %v17534_v16 }
 0x6b7   : > { %13173 = vmatmul.mubr.msk.f32.gmra.mrb[20].mxu0 %vm296_vm4, %v17518_v23  ;;  %v17538_v23 = vld [vmem:[#allocation2 + $0x122] sm:$0xff] }
 0x6b8   : > { %13175 = vmatprep.mubr.msk.f32.mxu0 %vm296_vm4, %v17522_v25  ;;  %18413 = vst [vmem:[#allocation36_spill] sm:$0xff] %v17538_v23  ;;  %v17542_v25 = vld [vmem:[#allocation2 + $0x12a] sm:$0xff] }
 0x6b9   : > { %18414 = vst [vmem:[#allocation6_spill] sm:$0xff] %v17542_v25 }
 0x6bb   : > { %13176 = vmatmul.mubr.msk.f32.gmra.mrb[22].mxu0 %vm296_vm4, %v17526_v56  ;;  %v17546_v56 = vld [vmem:[#allocation2 + $0x13a] sm:$0xff] }
 0x6bc   : > { %13178 = vmatprep.mubr.msk.f32.mxu0 %vm296_vm4, %v17530_v27  ;;  %18415 = vst [vmem:[#allocation8_spill] sm:$0xff] %v17546_v56  ;;  %v17550_v27 = vld [vmem:[#allocation2 + $0x142] sm:$0xff] }
 0x6bf   : > { %13179 = vmatmul.mubr.msk.f32.gmra.mrb[24].mxu0 %vm296_vm4, %v17534_v16  ;;  %v17554_v16 = vld [vmem:[#allocation2 + $0x152] sm:$0xff] }
 0x6c0   : > { %13181 = vmatprep.mubr.msk.f32.mxu0 %vm296_vm4, %v17538_v23  ;;  %18416 = vst [vmem:[#allocation14_spill] sm:$0xff] %v17554_v16  ;;  %v17558_v23 = vld [vmem:[#allocation2 + $0x15a] sm:$0xff] }
 0x6c3   : > { %13182 = vmatmul.mubr.msk.f32.gmra.mrb[26].mxu0 %vm296_vm4, %v17542_v25  ;;  %v17562_v25 = vld [vmem:[#allocation2 + $0x16a] sm:$0xff] }
 0x6c4   : > { %13184 = vmatprep.mubr.msk.f32.mxu0 %vm296_vm4, %v17546_v56  ;;  %18417 = vst [vmem:[#allocation11_spill] sm:$0xff] %v17562_v25  ;;  %v17566_v56 = vld [vmem:[#allocation2 + $0x172] sm:$0xff] }
 0x6c7   : > { %13185 = vmatmul.mubr.msk.f32.gmra.mrb[28].mxu0 %vm296_vm4, %v17550_v27 }
 0x6c8   : > { %13187 = vmatprep.mubr.msk.f32.mxu0 %vm296_vm4, %v17554_v16  ;;  %v11851_v16 = vld [vmem:[%s18098_s5 + $0x14] sm:$0xf] }
 0x6cb   : > { %13188 = vmatmul.mubr.msk.f32.gmra.mrb[30].mxu0 %vm296_vm4, %v17558_v23 }
 0x6cc   : > { %13190 = vmatprep.mubr.msk.f32.mxu0 %vm296_vm4, %v17562_v25 }
 0x6cf   : > { %13191 = vmatmul.mubr.msk.f32.gmra.mrb[32].mxu0 %vm296_vm4, %v17566_v56 }
 0x6d0   : > { %13195 = vmatprep.mubr.msk.f32.mxu0 %vm296_vm4, %v17136_v3  ;;  %v17636_v3 = vld [vmem:[#allocation2 + $0x180] sm:$0xff] }
 0x6d3   : > { %13196 = vmatmul.mubr.msk.f32.vlgmr.msra.gmra.mrb[2].mxu0 %vm296_vm4, %v17138_v59  ;;  %v17640_v59 = vld [vmem:[#allocation2 + $0x188] sm:$0xff] }
 0x6d4   : > { %13244 = vmatpush3.msk.msra.mxu0 %vm4269_vm3, %v17443_v51  ;;  %13198 = vmatprep.mubr.msk.f32.mxu0 %vm296_vm4, %v17148_v45  ;;  %v11885_v51 = vld [vmem:[%s18098_s5 + $0x18] sm:$0xf] }
 0x6d5   : > { %13293 = vmatprep.subr.msk.mxu0 %vm4269_vm3, %v11851_v16 }
 0x6d7   : > { %13199 = vmatmul.mubr.msk.f32.gmra.mrb[4].mxu0 %vm296_vm4, %v17150_v0 }
 0x6d8   : > { %13201 = vmatprep.mubr.msk.f32.mxu0 %vm296_vm4, %v17160_v39 }
 0x6db   : > { %13202 = vmatmul.mubr.msk.f32.gmra.mrb[6].mxu0 %vm296_vm4, %v17162_v54 }
 0x6dc   : > { %13204 = vmatprep.mubr.msk.f32.mxu0 %vm296_vm4, %v17172_v40 }
 0x6df   : > { %13205 = vmatmul.mubr.msk.f32.gmra.mrb[8].mxu0 %vm296_vm4, %v17174_v37 }
 0x6e0   : > { %13207 = vmatprep.mubr.msk.f32.mxu0 %vm296_vm4, %v17184_v10 }
 0x6e3   : > { %13208 = vmatmul.mubr.msk.f32.gmra.mrb[10].mxu0 %vm296_vm4, %v17186_v4 }
 0x6e4   : > { %13210 = vmatprep.mubr.msk.f32.mxu0 %vm296_vm4, %v17196_v21 }
 0x6e7   : > { %13211 = vmatmul.mubr.msk.f32.gmra.mrb[12].mxu0 %vm296_vm4, %v17198_v34 }
 0x6e8   : > { %13213 = vmatprep.mubr.msk.f32.mxu0 %vm296_vm4, %v17208_v50 }
 0x6eb   : > { %13214 = vmatmul.mubr.msk.f32.gmra.mrb[14].mxu0 %vm296_vm4, %v17210_v57 }
 0x6ec   : > { %13216 = vmatprep.mubr.msk.f32.mxu0 %vm296_vm4, %v17220_v28 }
 0x6ef   : > { %13217 = vmatmul.mubr.msk.f32.gmra.mrb[16].mxu0 %vm296_vm4, %v17222_v1 }
 0x6f0   : > { %13219 = vmatprep.mubr.msk.f32.mxu0 %vm296_vm4, %v17232_v36 }
 0x6f3   : > { %13220 = vmatmul.mubr.msk.f32.gmra.mrb[18].mxu0 %vm296_vm4, %v17234_v35 }
 0x6f4   : > { %13222 = vmatprep.mubr.msk.f32.mxu0 %vm296_vm4, %v17244_v58 }
 0x6f7   : > { %13223 = vmatmul.mubr.msk.f32.gmra.mrb[20].mxu0 %vm296_vm4, %v17246_v7 }
 0x6f8   : > { %13225 = vmatprep.mubr.msk.f32.mxu0 %vm296_vm4, %v17256_v26 }
 0x6fb   : > { %13226 = vmatmul.mubr.msk.f32.gmra.mrb[22].mxu0 %vm296_vm4, %v17258_v38 }
 0x6fc   : > { %13228 = vmatprep.mubr.msk.f32.mxu0 %vm296_vm4, %v17268_v17 }
 0x6ff   : > { %13229 = vmatmul.mubr.msk.f32.gmra.mrb[24].mxu0 %vm296_vm4, %v17270_v14 }
 0x700   : > { %13231 = vmatprep.mubr.msk.f32.mxu0 %vm296_vm4, %v17280_v60 }
 0x703   : > { %13232 = vmatmul.mubr.msk.f32.gmra.mrb[26].mxu0 %vm296_vm4, %v17282_v53 }
 0x704   : > { %13234 = vmatprep.mubr.msk.f32.mxu0 %vm296_vm4, %v17291_v41 }
 0x707   : > { %13235 = vmatmul.mubr.msk.f32.gmra.mrb[28].mxu0 %vm296_vm4, %v17293_v33 }
 0x708   : > { %13237 = vmatprep.mubr.msk.f32.mxu0 %vm296_vm4, %v17300_v32 }
 0x70b   : > { %13238 = vmatmul.mubr.msk.f32.gmra.mrb[30].mxu0 %vm296_vm4, %v17302_v19 }
 0x70c   : > { %13240 = vmatprep.mubr.msk.f32.mxu0 %vm296_vm4, %v17636_v3 }
 0x70f   : > { %13241 = vmatmul.mubr.msk.f32.gmra.mrb[32].mxu0 %vm296_vm4, %v17640_v59 }
 0x710   : > { %13245 = vmatprep.mubr.msk.f32.mxu0 %vm296_vm4, %v17315_v46  ;;  %v18418_v46 = vld [vmem:[#allocation4_spill] sm:$0xff] }
 0x713   : > { %13246 = vmatmul.mubr.msk.f32.vlgmr.msra.gmra.mrb[2].mxu0 %vm296_vm4, %v17323_v13  ;;  %v18419_v13 = vld [vmem:[#allocation25_spill] sm:$0xff] }
 0x714   : > { %13294 = vmatpush3.msk.msra.mxu0 %vm4269_vm3, %v11851_v16  ;;  %13248 = vmatprep.mubr.msk.f32.mxu0 %vm296_vm4, %v17327_v12  ;;  %v17709_v16 = vld [vmem:[#allocation2 + $0x181] sm:$0xff] }
 0x715   : > { %13343 = vmatprep.subr.msk.mxu0 %vm4269_vm3, %v11885_v51  ;;  %18420 = vst [vmem:[#allocation37_spill] sm:$0xff] %v17709_v16 }
 0x717   : > { %13249 = vmatmul.mubr.msk.f32.gmra.mrb[4].mxu0 %vm296_vm4, %v17331_v62 }
 0x718   : > { %13251 = vmatprep.mubr.msk.f32.mxu0 %vm296_vm4, %v17335_v2 }
 0x71b   : > { %13252 = vmatmul.mubr.msk.f32.gmra.mrb[6].mxu0 %vm296_vm4, %v17339_v18 }
 0x71c   : > { %13254 = vmatprep.mubr.msk.f32.mxu0 %vm296_vm4, %v17343_v63 }
 0x71f   : > { %13255 = vmatmul.mubr.msk.f32.gmra.mrb[8].mxu0 %vm296_vm4, %v17347_v30 }
 0x720   : > { %13257 = vmatprep.mubr.msk.f32.mxu0 %vm296_vm4, %v17351_v20 }
 0x723   : > { %13258 = vmatmul.mubr.msk.f32.gmra.mrb[10].mxu0 %vm296_vm4, %v17355_v22 }
 0x724   : > { %13260 = vmatprep.mubr.msk.f32.mxu0 %vm296_vm4, %v17359_v44 }
 0x727   : > { %13261 = vmatmul.mubr.msk.f32.gmra.mrb[12].mxu0 %vm296_vm4, %v17363_v43 }
 0x728   : > { %13263 = vmatprep.mubr.msk.f32.mxu0 %vm296_vm4, %v17367_v6 }
 0x72b   : > { %13264 = vmatmul.mubr.msk.f32.gmra.mrb[14].mxu0 %vm296_vm4, %v17371_v8 }
 0x72c   : > { %13266 = vmatprep.mubr.msk.f32.mxu0 %vm296_vm4, %v17375_v29 }
 0x72f   : > { %13267 = vmatmul.mubr.msk.f32.gmra.mrb[16].mxu0 %vm296_vm4, %v17379_v15 }
 0x730   : > { %13269 = vmatprep.mubr.msk.f32.mxu0 %vm296_vm4, %v17383_v9 }
 0x733   : > { %13270 = vmatmul.mubr.msk.f32.gmra.mrb[18].mxu0 %vm296_vm4, %v17387_v42 }
 0x734   : > { %13272 = vmatprep.mubr.msk.f32.mxu0 %vm296_vm4, %v17391_v55 }
 0x737   : > { %13273 = vmatmul.mubr.msk.f32.gmra.mrb[20].mxu0 %vm296_vm4, %v17395_v11 }
 0x738   : > { %13275 = vmatprep.mubr.msk.f32.mxu0 %vm296_vm4, %v17399_v5 }
 0x73b   : > { %13276 = vmatmul.mubr.msk.f32.gmra.mrb[22].mxu0 %vm296_vm4, %v17403_v49 }
 0x73c   : > { %13278 = vmatprep.mubr.msk.f32.mxu0 %vm296_vm4, %v17407_v48 }
 0x73f   : > { %13279 = vmatmul.mubr.msk.f32.gmra.mrb[24].mxu0 %vm296_vm4, %v17411_v31  ;;  %v18432_v31 = vld [vmem:[#allocation12_spill] sm:$0xff] }
 0x740   : > { %13281 = vmatprep.mubr.msk.f32.mxu0 %vm296_vm4, %v17415_v24  ;;  %v17713_v24 = vld [vmem:[#allocation2 + $0x189] sm:$0xff] }
 0x741   : > { %18421 = vst [vmem:[#allocation38_spill] sm:$0xff] %v17713_v24 }
 0x743   : > { %13282 = vmatmul.mubr.msk.f32.gmra.mrb[26].mxu0 %vm296_vm4, %v17419_v61  ;;  %v18428_v61 = vld [vmem:[#allocation35_spill] sm:$0xff] }
 0x744   : > { %13284 = vmatprep.mubr.msk.f32.mxu0 %vm296_vm4, %v17423_v47  ;;  %v18422_v47 = vld [vmem:[#allocation26_spill] sm:$0xff] }
 0x747   : > { %13285 = vmatmul.mubr.msk.f32.gmra.mrb[28].mxu0 %vm296_vm4, %v18418_v46  ;;  %v18423_v46 = vld [vmem:[#allocation29_spill] sm:$0xff] }
 0x748   : > { %13287 = vmatprep.mubr.msk.f32.mxu0 %vm296_vm4, %v17431_v52  ;;  %v11919_v52 = vld [vmem:[%s18098_s5 + $0x1c] sm:$0xf] }
 0x74b   : > { %13288 = vmatmul.mubr.msk.f32.gmra.mrb[30].mxu0 %vm296_vm4, %v18419_v13  ;;  %v18424_v13 = vld [vmem:[#allocation30_spill] sm:$0xff] }
 0x74c   : > { %13290 = vmatprep.mubr.msk.f32.mxu0 %vm296_vm4, %v17709_v16  ;;  %v18425_v16 = vld [vmem:[#allocation32_spill] sm:$0xff] }
 0x74f   : > { %13291 = vmatmul.mubr.msk.f32.gmra.mrb[32].mxu0 %vm296_vm4, %v17713_v24  ;;  %v18426_v24 = vld [vmem:[#allocation22_spill] sm:$0xff] }
 0x750   : > { %13295 = vmatprep.mubr.msk.f32.mxu0 %vm296_vm4, %v18422_v47  ;;  %v18427_v47 = vld [vmem:[#allocation31_spill] sm:$0xff] }
 0x753   : > { %13296 = vmatmul.mubr.msk.f32.vlgmr.msra.gmra.mrb[2].mxu0 %vm296_vm4, %v18423_v46  ;;  %v18429_v46 = vld [vmem:[#allocation5_spill] sm:$0xff] }
 0x754   : > { %13344 = vmatpush3.msk.msra.mxu0 %vm4269_vm3, %v11885_v51  ;;  %13298 = vmatprep.mubr.msk.f32.mxu0 %vm296_vm4, %v18424_v13  ;;  %v18430_v51 = vld [vmem:[#allocation10_spill] sm:$0xff]  ;;  %v18431_v13 = vld [vmem:[#allocation7_spill] sm:$0xff] }
 0x755   : > { %13393 = vmatprep.subr.msk.mxu0 %vm4269_vm3, %v11919_v52 }
 0x757   : > { %13299 = vmatmul.mubr.msk.f32.gmra.mrb[4].mxu0 %vm296_vm4, %v18425_v16  ;;  %v18433_v16 = vld [vmem:[#allocation9_spill] sm:$0xff] }
 0x758   : > { %13301 = vmatprep.mubr.msk.f32.mxu0 %vm296_vm4, %v18426_v24  ;;  %v18434_v24 = vld [vmem:[#allocation33_spill] sm:$0xff] }
 0x75b   : > { %13302 = vmatmul.mubr.msk.f32.gmra.mrb[6].mxu0 %vm296_vm4, %v18427_v47  ;;  %v18435_v47 = vld [vmem:[#allocation20_spill] sm:$0xff] }
 0x75c   : > { %13304 = vmatprep.mubr.msk.f32.mxu0 %vm296_vm4, %v18428_v61  ;;  %v18436_v61 = vld [vmem:[#allocation18_spill] sm:$0xff] }
 0x75f   : > { %13305 = vmatmul.mubr.msk.f32.gmra.mrb[8].mxu0 %vm296_vm4, %v18429_v46  ;;  %v18437_v46 = vld [vmem:[#allocation21_spill] sm:$0xff] }
 0x760   : > { %13307 = vmatprep.mubr.msk.f32.mxu0 %vm296_vm4, %v18430_v51  ;;  %v18438_v51 = vld [vmem:[#allocation19_spill] sm:$0xff] }
 0x763   : > { %13308 = vmatmul.mubr.msk.f32.gmra.mrb[10].mxu0 %vm296_vm4, %v18431_v13  ;;  %v18439_v13 = vld [vmem:[#allocation23_spill] sm:$0xff] }
 0x764   : > { %13310 = vmatprep.mubr.msk.f32.mxu0 %vm296_vm4, %v18432_v31  ;;  %v18440_v31 = vld [vmem:[#allocation27_spill] sm:$0xff] }
 0x767   : > { %13311 = vmatmul.mubr.msk.f32.gmra.mrb[12].mxu0 %vm296_vm4, %v18433_v16  ;;  %v18441_v16 = vld [vmem:[#allocation24_spill] sm:$0xff] }
 0x768   : > { %13313 = vmatprep.mubr.msk.f32.mxu0 %vm296_vm4, %v18434_v24  ;;  %v18442_v24 = vld [vmem:[#allocation28_spill] sm:$0xff] }
 0x76b   : > { %13314 = vmatmul.mubr.msk.f32.gmra.mrb[14].mxu0 %vm296_vm4, %v18435_v47  ;;  %v18443_v47 = vld [vmem:[#allocation34_spill] sm:$0xff] }
 0x76c   : > { %13316 = vmatprep.mubr.msk.f32.mxu0 %vm296_vm4, %v18436_v61  ;;  %v18444_v61 = vld [vmem:[#allocation36_spill] sm:$0xff] }
 0x76f   : > { %13317 = vmatmul.mubr.msk.f32.gmra.mrb[16].mxu0 %vm296_vm4, %v18437_v46  ;;  %v18445_v46 = vld [vmem:[#allocation6_spill] sm:$0xff] }
 0x770   : > { %13319 = vmatprep.mubr.msk.f32.mxu0 %vm296_vm4, %v18438_v51  ;;  %v18446_v51 = vld [vmem:[#allocation8_spill] sm:$0xff] }
 0x773   : > { %13320 = vmatmul.mubr.msk.f32.gmra.mrb[18].mxu0 %vm296_vm4, %v18439_v13 }
 0x774   : > { %13322 = vmatprep.mubr.msk.f32.mxu0 %vm296_vm4, %v18440_v31  ;;  %v18447_v31 = vld [vmem:[#allocation14_spill] sm:$0xff] }
 0x777   : > { %13323 = vmatmul.mubr.msk.f32.gmra.mrb[20].mxu0 %vm296_vm4, %v18441_v16 }
 0x778   : > { %13325 = vmatprep.mubr.msk.f32.mxu0 %vm296_vm4, %v18442_v24 }
 0x77b   : > { %13326 = vmatmul.mubr.msk.f32.gmra.mrb[22].mxu0 %vm296_vm4, %v18443_v47 }
 0x77c   : > { %13328 = vmatprep.mubr.msk.f32.mxu0 %vm296_vm4, %v18444_v61  ;;  %v17782_v61 = vld [vmem:[#allocation2 + $0x182] sm:$0xff] }
 0x77f   : > { %13329 = vmatmul.mubr.msk.f32.gmra.mrb[24].mxu0 %vm296_vm4, %v18445_v46 }
 0x780   : > { %13331 = vmatprep.mubr.msk.f32.mxu0 %vm296_vm4, %v18446_v51  ;;  %v17786_v51 = vld [vmem:[#allocation2 + $0x18a] sm:$0xff] }
 0x783   : > { %13332 = vmatmul.mubr.msk.f32.gmra.mrb[26].mxu0 %vm296_vm4, %v17550_v27 }
 0x784   : > { %13334 = vmatprep.mubr.msk.f32.mxu0 %vm296_vm4, %v18447_v31 }
 0x787   : > { %13335 = vmatmul.mubr.msk.f32.gmra.mrb[28].mxu0 %vm296_vm4, %v17558_v23 }
 0x788   : > { %13337 = vmatprep.mubr.msk.f32.mxu0 %vm296_vm4, %v17562_v25  ;;  %v11953_v25 = vld [vmem:[%s18098_s5 + $0x20] sm:$0xf] }
 0x78b   : > { %13338 = vmatmul.mubr.msk.f32.gmra.mrb[30].mxu0 %vm296_vm4, %v17566_v56 }
 0x78c   : > { %13340 = vmatprep.mubr.msk.f32.mxu0 %vm296_vm4, %v17782_v61 }
 0x78f   : > { %13341 = vmatmul.mubr.msk.f32.gmra.mrb[32].mxu0 %vm296_vm4, %v17786_v51 }
 0x790   : > { %13345 = vmatprep.mubr.msk.f32.mxu0 %vm296_vm4, %v17148_v45  ;;  %v10092_v45 = vld [vmem:[#allocation2 + $0x198] sm:$0xff] }
 0x793   : > { %13346 = vmatmul.mubr.msk.f32.vlgmr.msra.gmra.mrb[2].mxu0 %vm296_vm4, %v17150_v0  ;;  %v10093_v0 = vld [vmem:[#allocation2 + $0x1a0] sm:$0xff] }
 0x794   : > { %13394 = vmatpush3.msk.msra.mxu0 %vm4269_vm3, %v11919_v52  ;;  %13348 = vmatprep.mubr.msk.f32.mxu0 %vm296_vm4, %v17160_v39  ;;  %v18448_v39 = vld [vmem:[#allocation16_spill] sm:$0xff] }
 0x795   : > { %13443 = vmatprep.subr.msk.mxu0 %vm4269_vm3, %v11953_v25 }
 0x797   : > { %13349 = vmatmul.mubr.msk.f32.gmra.mrb[4].mxu0 %vm296_vm4, %v17162_v54  ;;  %v18449_v54 = vld [vmem:[#allocation13_spill] sm:$0xff] }
 0x798   : > { %13351 = vmatprep.mubr.msk.f32.mxu0 %vm296_vm4, %v17172_v40  ;;  %v18450_v40 = vld [vmem:[#allocation17_spill] sm:$0xff] }
 0x79b   : > { %13352 = vmatmul.mubr.msk.f32.gmra.mrb[6].mxu0 %vm296_vm4, %v17174_v37  ;;  %v18451_v37 = vld [vmem:[#allocation15_spill] sm:$0xff] }
 0x79c   : > { %13354 = vmatprep.mubr.msk.f32.mxu0 %vm296_vm4, %v17184_v10  ;;  %v18452_v10 = vld [vmem:[#allocation4_spill] sm:$0xff] }
 0x79f   : > { %13355 = vmatmul.mubr.msk.f32.gmra.mrb[8].mxu0 %vm296_vm4, %v17186_v4  ;;  %v18453_v4 = vld [vmem:[#allocation3_spill] sm:$0xff] }
 0x7a0   : > { %13357 = vmatprep.mubr.msk.f32.mxu0 %vm296_vm4, %v17196_v21  ;;  %v18454_v21 = vld [vmem:[#allocation25_spill] sm:$0xff] }
 0x7a3   : > { %13358 = vmatmul.mubr.msk.f32.gmra.mrb[10].mxu0 %vm296_vm4, %v17198_v34  ;;  %v18455_v34 = vld [vmem:[#allocation37_spill] sm:$0xff] }
 0x7a4   : > { %13360 = vmatprep.mubr.msk.f32.mxu0 %vm296_vm4, %v17208_v50  ;;  %v10482_v50 = vld [vmem:[#allocation2 + $0x199] sm:$0xff] }
 0x7a7   : > { %13361 = vmatmul.mubr.msk.f32.gmra.mrb[12].mxu0 %vm296_vm4, %v17210_v57  ;;  %v18456_v57 = vld [vmem:[#allocation38_spill] sm:$0xff] }
 0x7a8   : > { %13363 = vmatprep.mubr.msk.f32.mxu0 %vm296_vm4, %v17220_v28  ;;  %v10483_v28 = vld [vmem:[#allocation2 + $0x1a1] sm:$0xff] }
 0x7ab   : > { %13364 = vmatmul.mubr.msk.f32.gmra.mrb[14].mxu0 %vm296_vm4, %v17222_v1  ;;  %v18457_v1 = vld [vmem:[#allocation30_spill] sm:$0xff] }
 0x7ac   : > { %13366 = vmatprep.mubr.msk.f32.mxu0 %vm296_vm4, %v17232_v36  ;;  %v18458_v36 = vld [vmem:[#allocation32_spill] sm:$0xff] }
 0x7af   : > { %13367 = vmatmul.mubr.msk.f32.gmra.mrb[16].mxu0 %vm296_vm4, %v17234_v35  ;;  %v18459_v35 = vld [vmem:[#allocation22_spill] sm:$0xff] }
 0x7b0   : > { %13369 = vmatprep.mubr.msk.f32.mxu0 %vm296_vm4, %v17244_v58  ;;  %v18460_v58 = vld [vmem:[#allocation31_spill] sm:$0xff] }
 0x7b3   : > { %13370 = vmatmul.mubr.msk.f32.gmra.mrb[18].mxu0 %vm296_vm4, %v17246_v7  ;;  %v18461_v7 = vld [vmem:[#allocation35_spill] sm:$0xff] }
 0x7b4   : > { %13372 = vmatprep.mubr.msk.f32.mxu0 %vm296_vm4, %v17256_v26  ;;  %v18462_v26 = vld [vmem:[#allocation5_spill] sm:$0xff] }
 0x7b7   : > { %13373 = vmatmul.mubr.msk.f32.gmra.mrb[20].mxu0 %vm296_vm4, %v17258_v38  ;;  %v18463_v38 = vld [vmem:[#allocation10_spill] sm:$0xff] }
 0x7b8   : > { %13375 = vmatprep.mubr.msk.f32.mxu0 %vm296_vm4, %v17268_v17  ;;  %v18464_v17 = vld [vmem:[#allocation7_spill] sm:$0xff] }
 0x7bb   : > { %13376 = vmatmul.mubr.msk.f32.gmra.mrb[22].mxu0 %vm296_vm4, %v17270_v14  ;;  %v18465_v14 = vld [vmem:[#allocation12_spill] sm:$0xff] }
 0x7bc   : > { %13378 = vmatprep.mubr.msk.f32.mxu0 %vm296_vm4, %v17280_v60  ;;  %v18466_v60 = vld [vmem:[#allocation9_spill] sm:$0xff] }
 0x7bf   : > { %13379 = vmatmul.mubr.msk.f32.gmra.mrb[24].mxu0 %vm296_vm4, %v17282_v53  ;;  %v18467_v53 = vld [vmem:[#allocation33_spill] sm:$0xff] }
 0x7c0   : > { %13381 = vmatprep.mubr.msk.f32.mxu0 %vm296_vm4, %v17291_v41  ;;  %v18468_v41 = vld [vmem:[#allocation20_spill] sm:$0xff] }
 0x7c3   : > { %13382 = vmatmul.mubr.msk.f32.gmra.mrb[26].mxu0 %vm296_vm4, %v17293_v33  ;;  %v18469_v33 = vld [vmem:[#allocation18_spill] sm:$0xff] }
 0x7c4   : > { %13384 = vmatprep.mubr.msk.f32.mxu0 %vm296_vm4, %v17300_v32  ;;  %v18470_v32 = vld [vmem:[#allocation21_spill] sm:$0xff] }
 0x7c7   : > { %13385 = vmatmul.mubr.msk.f32.gmra.mrb[28].mxu0 %vm296_vm4, %v17302_v19  ;;  %v18471_v19 = vld [vmem:[#allocation19_spill] sm:$0xff] }
 0x7c8   : > { %13387 = vmatprep.mubr.msk.f32.mxu0 %vm296_vm4, %v17636_v3 }
 0x7cb   : > { %13388 = vmatmul.mubr.msk.f32.gmra.mrb[30].mxu0 %vm296_vm4, %v17640_v59 }
 0x7cc   : > { %13390 = vmatprep.mubr.msk.f32.mxu0 %vm296_vm4, %v10092_v45 }
 0x7cf   : > { %13391 = vmatmul.mubr.msk.f32.gmra.mrb[32].mxu0 %vm296_vm4, %v10093_v0 }
 0x7d0   : > { %13395 = vmatprep.mubr.msk.f32.mxu0 %vm296_vm4, %v17327_v12  ;;  %v18472_v12 = vld [vmem:[#allocation27_spill] sm:$0xff] }
 0x7d3   : > { %13396 = vmatmul.mubr.msk.f32.vlgmr.msra.gmra.mrb[2].mxu0 %vm296_vm4, %v17331_v62  ;;  %v18473_v62 = vld [vmem:[#allocation36_spill] sm:$0xff] }
 0x7d4   : > { %13444 = vmatpush3.msk.msra.mxu0 %vm4269_vm3, %v11953_v25  ;;  %13398 = vmatprep.mubr.msk.f32.mxu0 %vm296_vm4, %v17335_v2  ;;  %v18474_v2 = vld [vmem:[#allocation8_spill] sm:$0xff] }
 0x7d7   : > { %13399 = vmatmul.mubr.msk.f32.gmra.mrb[4].mxu0 %vm296_vm4, %v17339_v18  ;;  %v18475_v18 = vld [vmem:[#allocation11_spill] sm:$0xff] }
 0x7d8   : > { %13401 = vmatprep.mubr.msk.f32.mxu0 %vm296_vm4, %v17343_v63  ;;  %v10872_v63 = vld [vmem:[#allocation2 + $0x19a] sm:$0xff] }
 0x7db   : > { %13402 = vmatmul.mubr.msk.f32.gmra.mrb[6].mxu0 %vm296_vm4, %v17347_v30  ;;  %v10873_v30 = vld [vmem:[#allocation2 + $0x1a2] sm:$0xff] }
 0x7dc   : > { %13404 = vmatprep.mubr.msk.f32.mxu0 %vm296_vm4, %v17351_v20  ;;  %v17985_v20 = vld [vmem:[%s18099_s6] ss:$0 sm:$0xff] }
 0x7df   : > { %13405 = vmatmul.mubr.msk.f32.gmra.mrb[8].mxu0 %vm296_vm4, %v17355_v22 }
 0x7e0   : > { %13407 = vmatprep.mubr.msk.f32.mxu0 %vm296_vm4, %v17359_v44 }
 0x7e3   : > { %13408 = vmatmul.mubr.msk.f32.gmra.mrb[10].mxu0 %vm296_vm4, %v17363_v43 }
 0x7e4   : > { %13410 = vmatprep.mubr.msk.f32.mxu0 %vm296_vm4, %v17367_v6 }
 0x7e7   : > { %13411 = vmatmul.mubr.msk.f32.gmra.mrb[12].mxu0 %vm296_vm4, %v17371_v8 }
 0x7e8   : > { %13413 = vmatprep.mubr.msk.f32.mxu0 %vm296_vm4, %v17375_v29 }
 0x7eb   : > { %13414 = vmatmul.mubr.msk.f32.gmra.mrb[14].mxu0 %vm296_vm4, %v17379_v15 }
 0x7ec   : > { %13416 = vmatprep.mubr.msk.f32.mxu0 %vm296_vm4, %v17383_v9 }
 0x7ef   : > { %13417 = vmatmul.mubr.msk.f32.gmra.mrb[16].mxu0 %vm296_vm4, %v17387_v42 }
 0x7f0   : > { %13419 = vmatprep.mubr.msk.f32.mxu0 %vm296_vm4, %v17391_v55 }
 0x7f3   : > { %13420 = vmatmul.mubr.msk.f32.gmra.mrb[18].mxu0 %vm296_vm4, %v17395_v11 }
 0x7f4   : > { %13422 = vmatprep.mubr.msk.f32.mxu0 %vm296_vm4, %v17399_v5 }
 0x7f7   : > { %13423 = vmatmul.mubr.msk.f32.gmra.mrb[20].mxu0 %vm296_vm4, %v17403_v49 }
 0x7f8   : > { %13425 = vmatprep.mubr.msk.f32.mxu0 %vm296_vm4, %v17407_v48 }
 0x7fb   : > { %13426 = vmatmul.mubr.msk.f32.gmra.mrb[22].mxu0 %vm296_vm4, %v18448_v39 }
 0x7fc   : > { %13428 = vmatprep.mubr.msk.f32.mxu0 %vm296_vm4, %v18449_v54 }
 0x7ff   : > { %13429 = vmatmul.mubr.msk.f32.gmra.mrb[24].mxu0 %vm296_vm4, %v18450_v40 }
 0x800   : > { %13431 = vmatprep.mubr.msk.f32.mxu0 %vm296_vm4, %v18451_v37 }
 0x803   : > { %13432 = vmatmul.mubr.msk.f32.gmra.mrb[26].mxu0 %vm296_vm4, %v18452_v10 }
 0x804   : > { %13434 = vmatprep.mubr.msk.f32.mxu0 %vm296_vm4, %v18453_v4 }
 0x807   : > { %13435 = vmatmul.mubr.msk.f32.gmra.mrb[28].mxu0 %vm296_vm4, %v18454_v21 }
 0x808   : > { %13437 = vmatprep.mubr.msk.f32.mxu0 %vm296_vm4, %v18455_v34 }
 0x80b   : > { %13438 = vmatmul.mubr.msk.f32.gmra.mrb[30].mxu0 %vm296_vm4, %v18456_v57 }
 0x80c   : > { %13440 = vmatprep.mubr.msk.f32.mxu0 %vm296_vm4, %v10482_v50 }
 0x80f   : > { %13441 = vmatmul.mubr.msk.f32.gmra.mrb[32].mxu0 %vm296_vm4, %v10483_v28 }
 0x810   : > { %13445 = vmatprep.mubr.msk.f32.mxu0 %vm296_vm4, %v18457_v1 }
 0x813   : > { %13446 = vmatmul.mubr.msk.f32.vlgmr.msra.gmra.mrb[2].mxu0 %vm296_vm4, %v18458_v36 }
 0x814   : > { %13448 = vmatprep.mubr.msk.f32.mxu0 %vm296_vm4, %v18459_v35 }
 0x817   : > { %13449 = vmatmul.mubr.msk.f32.gmra.mrb[4].mxu0 %vm296_vm4, %v18460_v58 }
 0x818   : > { %13451 = vmatprep.mubr.msk.f32.mxu0 %vm296_vm4, %v18461_v7 }
 0x81b   : > { %13452 = vmatmul.mubr.msk.f32.gmra.mrb[6].mxu0 %vm296_vm4, %v18462_v26 }
 0x81c   : > { %13454 = vmatprep.mubr.msk.f32.mxu0 %vm296_vm4, %v18463_v38 }
 0x81f   : > { %13455 = vmatmul.mubr.msk.f32.gmra.mrb[8].mxu0 %vm296_vm4, %v18464_v17 }
 0x820   : > { %13457 = vmatprep.mubr.msk.f32.mxu0 %vm296_vm4, %v18465_v14 }
 0x823   : > { %13458 = vmatmul.mubr.msk.f32.gmra.mrb[10].mxu0 %vm296_vm4, %v18466_v60 }
 0x824   : > { %13460 = vmatprep.mubr.msk.f32.mxu0 %vm296_vm4, %v18467_v53 }
 0x827   : > { %13461 = vmatmul.mubr.msk.f32.gmra.mrb[12].mxu0 %vm296_vm4, %v18468_v41 }
 0x828   : > { %13463 = vmatprep.mubr.msk.f32.mxu0 %vm296_vm4, %v18469_v33 }
 0x82b   : > { %13464 = vmatmul.mubr.msk.f32.gmra.mrb[14].mxu0 %vm296_vm4, %v18470_v32 }
 0x82c   : > { %13466 = vmatprep.mubr.msk.f32.mxu0 %vm296_vm4, %v18471_v19 }
 0x82f   : > { %13467 = vmatmul.mubr.msk.f32.gmra.mrb[16].mxu0 %vm296_vm4, %v18439_v13 }
 0x830   : > { %13469 = vmatprep.mubr.msk.f32.mxu0 %vm296_vm4, %v18472_v12 }
 0x833   : > { %13470 = vmatmul.mubr.msk.f32.gmra.mrb[18].mxu0 %vm296_vm4, %v18441_v16 }
 0x834   : > { %13472 = vmatprep.mubr.msk.f32.mxu0 %vm296_vm4, %v18442_v24 }
 0x837   : > { %13473 = vmatmul.mubr.msk.f32.gmra.mrb[20].mxu0 %vm296_vm4, %v18443_v47 }
 0x838   : > { %13475 = vmatprep.mubr.msk.f32.mxu0 %vm296_vm4, %v18473_v62 }
 0x83b   : > { %13476 = vmatmul.mubr.msk.f32.gmra.mrb[22].mxu0 %vm296_vm4, %v18445_v46 }
 0x83c   : > { %13478 = vmatprep.mubr.msk.f32.mxu0 %vm296_vm4, %v18474_v2 }
 0x83f   : > { %13479 = vmatmul.mubr.msk.f32.gmra.mrb[24].mxu0 %vm296_vm4, %v17550_v27 }
 0x840   : > { %13481 = vmatprep.mubr.msk.f32.mxu0 %vm296_vm4, %v18447_v31 }
 0x843   : > { %13482 = vmatmul.mubr.msk.f32.gmra.mrb[26].mxu0 %vm296_vm4, %v17558_v23 }
 0x844   : > { %13484 = vmatprep.mubr.msk.f32.mxu0 %vm296_vm4, %v18475_v18 }
 0x847   : > { %13485 = vmatmul.mubr.msk.f32.gmra.mrb[28].mxu0 %vm296_vm4, %v17566_v56 }
 0x848   : > { %13487 = vmatprep.mubr.msk.f32.mxu0 %vm296_vm4, %v17782_v61 }
 0x84b   : > { %13488 = vmatmul.mubr.msk.f32.gmra.mrb[30].mxu0 %vm296_vm4, %v17786_v51 }
 0x84c   : > { %13490 = vmatprep.mubr.msk.f32.mxu0 %vm296_vm4, %v10872_v63 }
 0x84f   : > { %13491 = vmatmul.mubr.msk.f32.gmra.mrb[32].mxu0 %vm296_vm4, %v10873_v30 }
 0x8e6   : > { %v13447_v22 = vpop.f32.mrb[2].mxu0 }
 0x8e7   : > { %v13525_v44 = vadd.f32 %v13447_v22, %v17985_v20  ;;  %v11041_v43 = vpop.f32.mrb[3].mxu0 }
 0x8e8   : > { %v13526_v6 = vadd.f32 %v17985_v20, %v11041_v43 }
 0x8e9   : > { %v11233_v8 = vmax.f32 %v13525_v44, 0.0 }
 0x8ea   : > { %v11232_v29 = vmax.f32 %v13526_v6, 0.0  ;;  %v13450_v15 = vpop.f32.mrb[4].mxu0 }
 0x8eb   : > { %11265 = vst.msk [vmem:[%s17993_s26 + $0x8] sm:$0xff] %vm296_vm4, %v11233_v8  ;;  %v13527_v9 = vadd.f32 %v13450_v15, %v17985_v20  ;;  %v11051_v42 = vpop.f32.mrb[5].mxu0 }
 0x8ec   : > { %11264 = vst.msk [vmem:[%s17993_s26] sm:$0xff] %vm296_vm4, %v11232_v29  ;;  %v13528_v55 = vadd.f32 %v17985_v20, %v11051_v42 }
 0x8ed   : > { %v11235_v11 = vmax.f32 %v13527_v9, 0.0 }
 0x8ee   : > { %v11234_v5 = vmax.f32 %v13528_v55, 0.0  ;;  %v13453_v49 = vpop.f32.mrb[6].mxu0 }
 0x8ef   : > { %11267 = vst.msk [vmem:[%s17993_s26 + $0x18] sm:$0xff] %vm296_vm4, %v11235_v11  ;;  %v13529_v48 = vadd.f32 %v13453_v49, %v17985_v20  ;;  %v11061_v31 = vpop.f32.mrb[7].mxu0 }
 0x8f0   : > { %11266 = vst.msk [vmem:[%s17993_s26 + $0x10] sm:$0xff] %vm296_vm4, %v11234_v5  ;;  %v13530_v24 = vadd.f32 %v17985_v20, %v11061_v31 }
 0x8f1   : > { %v11237_v61 = vmax.f32 %v13529_v48, 0.0 }
 0x8f2   : > { %v11236_v27 = vmax.f32 %v13530_v24, 0.0  ;;  %v13456_v52 = vpop.f32.mrb[8].mxu0 }
 0x8f3   : > { %11269 = vst.msk [vmem:[%s17993_s26 + $0x28] sm:$0xff] %vm296_vm4, %v11237_v61  ;;  %v13531_v23 = vadd.f32 %v13456_v52, %v17985_v20  ;;  %v11071_v25 = vpop.f32.mrb[9].mxu0 }
 0x8f4   : > { %11268 = vst.msk [vmem:[%s17993_s26 + $0x20] sm:$0xff] %vm296_vm4, %v11236_v27  ;;  %v13532_v56 = vadd.f32 %v17985_v20, %v11071_v25 }
 0x8f5   : > { %v11239_v3 = vmax.f32 %v13531_v23, 0.0 }
 0x8f6   : > { %v11238_v59 = vmax.f32 %v13532_v56, 0.0  ;;  %v13459_v13 = vpop.f32.mrb[10].mxu0 }
 0x8f7   : > { %11271 = vst.msk [vmem:[%s17993_s26 + $0x38] sm:$0xff] %vm296_vm4, %v11239_v3  ;;  %v13533_v16 = vadd.f32 %v13459_v13, %v17985_v20  ;;  %v11081_v47 = vpop.f32.mrb[11].mxu0 }
 0x8f8   : > { %11270 = vst.msk [vmem:[%s17993_s26 + $0x30] sm:$0xff] %vm296_vm4, %v11238_v59  ;;  %v13534_v46 = vadd.f32 %v17985_v20, %v11081_v47 }
 0x8f9   : > { %v11241_v51 = vmax.f32 %v13533_v16, 0.0 }
 0x8fa   : > { %v11240_v45 = vmax.f32 %v13534_v46, 0.0  ;;  %v13462_v0 = vpop.f32.mrb[12].mxu0 }
 0x8fb   : > { %11273 = vst.msk [vmem:[%s17993_s26 + $0x48] sm:$0xff] %vm296_vm4, %v11241_v51  ;;  %v13535_v39 = vadd.f32 %v13462_v0, %v17985_v20  ;;  %v11091_v54 = vpop.f32.mrb[13].mxu0 }
 0x8fc   : > { %11272 = vst.msk [vmem:[%s17993_s26 + $0x40] sm:$0xff] %vm296_vm4, %v11240_v45  ;;  %v13536_v40 = vadd.f32 %v17985_v20, %v11091_v54 }
 0x8fd   : > { %v11243_v37 = vmax.f32 %v13535_v39, 0.0 }
 0x8fe   : > { %v11242_v10 = vmax.f32 %v13536_v40, 0.0  ;;  %v13465_v4 = vpop.f32.mrb[14].mxu0 }
 0x8ff   : > { %11275 = vst.msk [vmem:[%s17993_s26 + $0x58] sm:$0xff] %vm296_vm4, %v11243_v37  ;;  %v13537_v21 = vadd.f32 %v13465_v4, %v17985_v20  ;;  %v11101_v34 = vpop.f32.mrb[15].mxu0 }
 0x900   : > { %11274 = vst.msk [vmem:[%s17993_s26 + $0x50] sm:$0xff] %vm296_vm4, %v11242_v10  ;;  %v13538_v50 = vadd.f32 %v17985_v20, %v11101_v34 }
 0x901   : > { %v11245_v57 = vmax.f32 %v13537_v21, 0.0 }
 0x902   : > { %v11244_v28 = vmax.f32 %v13538_v50, 0.0  ;;  %v13468_v1 = vpop.f32.mrb[16].mxu0 }
 0x903   : > { %11277 = vst.msk [vmem:[%s17993_s26 + $0x68] sm:$0xff] %vm296_vm4, %v11245_v57  ;;  %v13539_v36 = vadd.f32 %v13468_v1, %v17985_v20  ;;  %v11111_v35 = vpop.f32.mrb[17].mxu0 }
 0x904   : > { %11276 = vst.msk [vmem:[%s17993_s26 + $0x60] sm:$0xff] %vm296_vm4, %v11244_v28  ;;  %v13540_v58 = vadd.f32 %v17985_v20, %v11111_v35 }
 0x905   : > { %v11247_v7 = vmax.f32 %v13539_v36, 0.0 }
 0x906   : > { %v11246_v26 = vmax.f32 %v13540_v58, 0.0  ;;  %v13471_v38 = vpop.f32.mrb[18].mxu0 }
 0x907   : > { %11279 = vst.msk [vmem:[%s17993_s26 + $0x78] sm:$0xff] %vm296_vm4, %v11247_v7  ;;  %v13541_v17 = vadd.f32 %v13471_v38, %v17985_v20  ;;  %v11121_v14 = vpop.f32.mrb[19].mxu0 }
 0x908   : > { %11278 = vst.msk [vmem:[%s17993_s26 + $0x70] sm:$0xff] %vm296_vm4, %v11246_v26  ;;  %v13542_v60 = vadd.f32 %v17985_v20, %v11121_v14 }
 0x909   : > { %v11249_v53 = vmax.f32 %v13541_v17, 0.0 }
 0x90a   : > { %v11248_v41 = vmax.f32 %v13542_v60, 0.0  ;;  %v13474_v33 = vpop.f32.mrb[20].mxu0 }
 0x90b   : > { %11281 = vst.msk [vmem:[%s17993_s26 + $0x88] sm:$0xff] %vm296_vm4, %v11249_v53  ;;  %v13543_v32 = vadd.f32 %v13474_v33, %v17985_v20  ;;  %v11131_v19 = vpop.f32.mrb[21].mxu0 }
 0x90c   : > { %11280 = vst.msk [vmem:[%s17993_s26 + $0x80] sm:$0xff] %vm296_vm4, %v11248_v41  ;;  %v13544_v12 = vadd.f32 %v17985_v20, %v11131_v19 }
 0x90d   : > { %v11251_v62 = vmax.f32 %v13543_v32, 0.0 }
 0x90e   : > { %v11250_v2 = vmax.f32 %v13544_v12, 0.0  ;;  %v13477_v18 = vpop.f32.mrb[22].mxu0 }
 0x90f   : > { %11283 = vst.msk [vmem:[%s17993_s26 + $0x98] sm:$0xff] %vm296_vm4, %v11251_v62  ;;  %v13545_v63 = vadd.f32 %v13477_v18, %v17985_v20  ;;  %v11141_v30 = vpop.f32.mrb[23].mxu0 }
 0x910   : > { %11282 = vst.msk [vmem:[%s17993_s26 + $0x90] sm:$0xff] %vm296_vm4, %v11250_v2  ;;  %v13546_v22 = vadd.f32 %v17985_v20, %v11141_v30 }
 0x911   : > { %v11253_v44 = vmax.f32 %v13545_v63, 0.0 }
 0x912   : > { %v11252_v43 = vmax.f32 %v13546_v22, 0.0  ;;  %v13480_v6 = vpop.f32.mrb[24].mxu0 }
 0x913   : > { %11285 = vst.msk [vmem:[%s17993_s26 + $0xa8] sm:$0xff] %vm296_vm4, %v11253_v44  ;;  %v13547_v8 = vadd.f32 %v13480_v6, %v17985_v20  ;;  %v11151_v29 = vpop.f32.mrb[25].mxu0 }
 0x914   : > { %11284 = vst.msk [vmem:[%s17993_s26 + $0xa0] sm:$0xff] %vm296_vm4, %v11252_v43  ;;  %v13548_v15 = vadd.f32 %v17985_v20, %v11151_v29 }
 0x915   : > { %v11255_v9 = vmax.f32 %v13547_v8, 0.0 }
 0x916   : > { %v11254_v42 = vmax.f32 %v13548_v15, 0.0  ;;  %v13483_v55 = vpop.f32.mrb[26].mxu0 }
 0x917   : > { %11287 = vst.msk [vmem:[%s17993_s26 + $0xb8] sm:$0xff] %vm296_vm4, %v11255_v9  ;;  %v13549_v11 = vadd.f32 %v13483_v55, %v17985_v20  ;;  %v11161_v5 = vpop.f32.mrb[27].mxu0 }
 0x918   : > { %11286 = vst.msk [vmem:[%s17993_s26 + $0xb0] sm:$0xff] %vm296_vm4, %v11254_v42  ;;  %v13550_v49 = vadd.f32 %v17985_v20, %v11161_v5 }
 0x919   : > { %v11257_v48 = vmax.f32 %v13549_v11, 0.0 }
 0x91a   : > { %v11256_v31 = vmax.f32 %v13550_v49, 0.0  ;;  %v13486_v24 = vpop.f32.mrb[28].mxu0 }
 0x91b   : > { %11289 = vst.msk [vmem:[%s17993_s26 + $0xc8] sm:$0xff] %vm296_vm4, %v11257_v48  ;;  %v13551_v61 = vadd.f32 %v13486_v24, %v17985_v20  ;;  %v11171_v27 = vpop.f32.mrb[29].mxu0 }
 0x91c   : > { %11288 = vst.msk [vmem:[%s17993_s26 + $0xc0] sm:$0xff] %vm296_vm4, %v11256_v31  ;;  %v13552_v52 = vadd.f32 %v17985_v20, %v11171_v27 }
 0x91d   : > { %v11259_v23 = vmax.f32 %v13551_v61, 0.0 }
 0x91e   : > { %v11258_v25 = vmax.f32 %v13552_v52, 0.0  ;;  %v13489_v56 = vpop.f32.mrb[30].mxu0 }
 0x91f   : > { %11291 = vst.msk [vmem:[%s17993_s26 + $0xd8] sm:$0xff] %vm296_vm4, %v11259_v23  ;;  %v13553_v3 = vadd.f32 %v13489_v56, %v17985_v20  ;;  %v11181_v59 = vpop.f32.mrb[31].mxu0 }
 0x920   : > { %11290 = vst.msk [vmem:[%s17993_s26 + $0xd0] sm:$0xff] %vm296_vm4, %v11258_v25  ;;  %v13554_v13 = vadd.f32 %v17985_v20, %v11181_v59 }
 0x921   : > { %v11261_v16 = vmax.f32 %v13553_v3, 0.0 }
 0x922   : > { %v11260_v47 = vmax.f32 %v13554_v13, 0.0  ;;  %v13492_v46 = vpop.f32.mrb[32].mxu0 }
 0x923   : > { %11293 = vst.msk [vmem:[%s17993_s26 + $0xe8] sm:$0xff] %vm296_vm4, %v11261_v16  ;;  %v13555_v51 = vadd.f32 %v13492_v46, %v17985_v20  ;;  %v11191_v45 = vpop.f32.mrb[33].mxu0 }
 0x924   : > { %11292 = vst.msk [vmem:[%s17993_s26 + $0xe0] sm:$0xff] %vm296_vm4, %v11260_v47  ;;  %v13556_v0 = vadd.f32 %v17985_v20, %v11191_v45 }
 0x925   : > { %v11263_v39 = vmax.f32 %v13555_v51, 0.0 }
 0x926   : > { %v11262_v54 = vmax.f32 %v13556_v0, 0.0 }
 0x927   : > { %11295 = vst.msk [vmem:[%s17993_s26 + $0xf8] sm:$0xff] %vm296_vm4, %v11263_v39 }
 0x928   : > { %11294 = vst.msk [vmem:[%s17993_s26 + $0xf0] sm:$0xff] %vm296_vm4, %v11262_v54 }
 0x929 PF: > { %s17_s24 = sadd.s32 1, %s14092_s24  }
 0x92a   : > { %p14_p4 = scmp.ge.s32.totalorder %s17_s24, 4  }
 0x92c   :  { %16 = sbr.rel (!%p14_p4) target bundleno = 1 (0x1), region = 100 }

</bundles_post_ra>
